<compile_context>
chip_gen: v6e
topology: v6e:2x2x1
jax: 0.10.0
libtpu: 0.0.40
codegen_flags: <defaults>
</compile_context>

<pallas_src>
import jax
import jax.numpy as jnp
from jax.experimental import pallas as pl
from jax.experimental.pallas import tpu as pltpu

EPS = 1e-5

_COMPILER_PARAMS = pltpu.CompilerParams(
    dimension_semantics=("parallel",),
    vmem_limit_bytes=32 * 1024 * 1024,  # fits v5e/v6e (128 MiB) and v7x (64 MiB)
)


# --------------------------------------------------------------------------- #
# Kernels
# --------------------------------------------------------------------------- #
def _conv1_kernel(x_ref, w1_ref, h1_ref, st1_ref):
    """1x1 conv (channel matmul on MXU) + per-image channel sum / sum-of-squares."""
    x = x_ref[0]                                               # (HW, Cin) f32
    h = jnp.dot(x.astype(jnp.bfloat16), w1_ref[...],
                preferred_element_type=jnp.float32)            # (HW, C0) f32
    H, W, C0 = h1_ref.shape[1:]
    h1_ref[0] = h.reshape(H, W, C0)
    s = jnp.sum(h, axis=0, keepdims=True)                      # (1, C0)
    sq = jnp.sum(h * h, axis=0, keepdims=True)                 # (1, C0)
    st1_ref[0] = jnp.concatenate([s, sq], axis=0)              # (2, C0)


def _conv2_kernel(h1_ref, sc1_ref, sh1_ref, w2_ref, h2_ref, st2_ref):
    """BN1 (scale/shift FMA) + relu, 3x3 conv as ONE im2col matmul, + BN2 partials."""
    _, H, W, C0 = h1_ref.shape
    a = jnp.maximum(h1_ref[0] * sc1_ref[...] + sh1_ref[...], 0.0)
    a = a.astype(jnp.bfloat16)                                 # (H, W, C0)

    # pad H only; build W-shifted views by concatenation (no W padding/relayout)
    zrow = jnp.zeros((1, W, C0), jnp.bfloat16)
    ap = jnp.concatenate([zrow, a, zrow], axis=0)              # (H+2, W, C0)
    zcol = jnp.zeros((H + 2, 1, C0), jnp.bfloat16)
    left = jnp.concatenate([zcol, ap[:, :W - 1, :]], axis=1)   # kx = 0  (x-1)
    right = jnp.concatenate([ap[:, 1:, :], zcol], axis=1)      # kx = 2  (x+1)
    shifted = jnp.concatenate([left, ap, right], axis=-1)      # (H+2, W, 3*C0)

    patches = jnp.concatenate(
        [shifted[ky:ky + H].reshape(H * W, 3 * C0) for ky in range(3)],
        axis=-1)                                               # (HW, 9*C0) bf16
    h = jnp.dot(patches, w2_ref[...],
                preferred_element_type=jnp.float32)            # (HW, C1) f32
    h2_ref[0] = h
    s = jnp.sum(h, axis=0, keepdims=True)
    sq = jnp.sum(h * h, axis=0, keepdims=True)
    st2_ref[0] = jnp.concatenate([s, sq], axis=0)


def _conv3_kernel(h2_ref, sc2_ref, sh2_ref, w3_ref, h3_ref, st3_ref):
    """BN2 FMA + relu, 1x1 conv (channel matmul), + BN3 partials."""
    a = jnp.maximum(h2_ref[0] * sc2_ref[...] + sh2_ref[...], 0.0)
    h = jnp.dot(a.astype(jnp.bfloat16), w3_ref[...],
                preferred_element_type=jnp.float32)            # (HW, C2) f32
    h3_ref[0] = h
    s = jnp.sum(h, axis=0, keepdims=True)
    sq = jnp.sum(h * h, axis=0, keepdims=True)
    st3_ref[0] = jnp.concatenate([s, sq], axis=0)


def _finalize_kernel(h3_ref, sc3_ref, sh3_ref, x_ref, o_ref):
    """BN3 FMA + residual add + relu (lane-dense 128-channel store)."""
    y = h3_ref[0] * sc3_ref[...] + sh3_ref[...] + x_ref[0]
    o_ref[0] = jnp.maximum(y, 0.0)


# --------------------------------------------------------------------------- #
# Host-side BN finalize (tiny O(C) work between pallas_calls)
# --------------------------------------------------------------------------- #
def _bn_scale_shift(partial_stats, gamma, beta, count):
    """Combine per-image (sum, sumsq) partials into training-mode BN scale/shift."""
    s = jnp.sum(partial_stats[:, 0, :], axis=0)
    sq = jnp.sum(partial_stats[:, 1, :], axis=0)
    mean = s / count
    var = jnp.maximum(sq / count - mean * mean, 0.0)
    scale = gamma * jax.lax.rsqrt(var + EPS)
    shift = beta - mean * scale
    return scale.reshape(1, -1), shift.reshape(1, -1)


# --------------------------------------------------------------------------- #
# Wrapper
# --------------------------------------------------------------------------- #
@jax.jit
def resnet50_basic_block(x_nhwc, params):
    """x_nhwc: (N, H, W, Cin) float32. Returns (N, H, W, C2) float32."""
    N, H, W, Cin = x_nhwc.shape
    HW = H * W
    C0 = params["w1"].shape[1]
    C1 = params["w2"].shape[3]
    C2 = params["w3"].shape[1]
    assert Cin == C2, "residual add requires in_channel == outs[2]"
    count = float(N * HW)

    x2d = x_nhwc.reshape(N, HW, Cin)
    w1 = params["w1"].astype(jnp.bfloat16)                         # (Cin, C0)
    w2 = params["w2"].reshape(9 * C0, C1).astype(jnp.bfloat16)     # (ky,kx,C0) rows
    w3 = params["w3"].astype(jnp.bfloat16)                         # (C1, C2)

    # resident (constant-index) blocks for weights / BN affine params
    full2d = lambda shape: pl.BlockSpec(shape, lambda i: (0, 0))
    per_img2d = lambda r, c: pl.BlockSpec((1, r, c), lambda i: (i, 0, 0))

    # ---- stage 1: conv1 (1x1) + per-image BN1 partial stats ----
    h1_pre, st1 = pl.pallas_call(
        _conv1_kernel,
        grid=(N,),
        in_specs=[per_img2d(HW, Cin), full2d((Cin, C0))],
        out_specs=(pl.BlockSpec((1, H, W, C0), lambda i: (i, 0, 0, 0)),
                   per_img2d(2, C0)),
        out_shape=(jax.ShapeDtypeStruct((N, H, W, C0), jnp.float32),
                   jax.ShapeDtypeStruct((N, 2, C0), jnp.float32)),
        compiler_params=_COMPILER_PARAMS,
    )(x2d, w1)
    sc1, sh1 = _bn_scale_shift(st1, params["g1"], params["be1"], count)

    # ---- stage 2: BN1+relu, conv2 (3x3 pad 1) as one im2col matmul, BN2 partials ----
    h2_pre, st2 = pl.pallas_call(
        _conv2_kernel,
        grid=(N,),
        in_specs=[pl.BlockSpec((1, H, W, C0), lambda i: (i, 0, 0, 0)),
                  full2d((1, C0)), full2d((1, C0)), full2d((9 * C0, C1))],
        out_specs=(per_img2d(HW, C1), per_img2d(2, C1)),
        out_shape=(jax.ShapeDtypeStruct((N, HW, C1), jnp.float32),
                   jax.ShapeDtypeStruct((N, 2, C1), jnp.float32)),
        compiler_params=_COMPILER_PARAMS,
    )(h1_pre, sc1, sh1, w2)
    sc2, sh2 = _bn_scale_shift(st2, params["g2"], params["be2"], count)

    # ---- stage 3: BN2+relu, conv3 (1x1), BN3 partials ----
    h3_pre, st3 = pl.pallas_call(
        _conv3_kernel,
        grid=(N,),
        in_specs=[per_img2d(HW, C1), full2d((1, C1)), full2d((1, C1)),
                  full2d((C1, C2))],
        out_specs=(per_img2d(HW, C2), per_img2d(2, C2)),
        out_shape=(jax.ShapeDtypeStruct((N, HW, C2), jnp.float32),
                   jax.ShapeDtypeStruct((N, 2, C2), jnp.float32)),
        compiler_params=_COMPILER_PARAMS,
    )(h2_pre, sc2, sh2, w3)
    sc3, sh3 = _bn_scale_shift(st3, params["g3"], params["be3"], count)

    # ---- stage 4: BN3 + residual add + relu ----
    out2d = pl.pallas_call(
        _finalize_kernel,
        grid=(N,),
        in_specs=[per_img2d(HW, C2), full2d((1, C2)), full2d((1, C2)),
                  per_img2d(HW, Cin)],
        out_specs=per_img2d(HW, C2),
        out_shape=jax.ShapeDtypeStruct((N, HW, C2), jnp.float32),
        compiler_params=_COMPILER_PARAMS,
    )(h3_pre, sc3, sh3, x2d)

    return out2d.reshape(N, H, W, C2)


# --------------------------------------------------------------------------- #
# Parameters / reference / test
# --------------------------------------------------------------------------- #
def make_params(key, in_channel, outs):
    """Synthetic parameters following the nn.Module __init__ (channels-last
    storage: (Cin, Cout) for 1x1 convs, (kh, kw, Cin, Cout) for the 3x3)."""
    c0, c1, c2 = outs
    ks = jax.random.split(key, 12)
    return {
        "w1": 0.1 * jax.random.normal(ks[0], (in_channel, c0), jnp.float32),
        "b1": 0.1 * jax.random.normal(ks[1], (c0,), jnp.float32),
        "w2": 0.1 * jax.random.normal(ks[2], (3, 3, c0, c1), jnp.float32),
        "b2": 0.1 * jax.random.normal(ks[3], (c1,), jnp.float32),
        "w3": 0.1 * jax.random.normal(ks[4], (c1, c2), jnp.float32),
        "b3": 0.1 * jax.random.normal(ks[5], (c2,), jnp.float32),
        "g1": 1.0 + 0.1 * jax.random.normal(ks[6], (c0,), jnp.float32),
        "be1": 0.1 * jax.random.normal(ks[7], (c0,), jnp.float32),
        "g2": 1.0 + 0.1 * jax.random.normal(ks[8], (c1,), jnp.float32),
        "be2": 0.1 * jax.random.normal(ks[9], (c1,), jnp.float32),
        "g3": 1.0 + 0.1 * jax.random.normal(ks[10], (c2,), jnp.float32),
        "be3": 0.1 * jax.random.normal(ks[11], (c2,), jnp.float32),
    }


def ref_forward(x, p):
    """Pure-JAX NHWC reference (f32, highest precision). Keeps the conv biases,
    which training-mode BN cancels — validates dropping them in the kernels."""
    def conv(h, w, b, pad):
        y = jax.lax.conv_general_dilated(
            h, w, (1, 1), [(pad, pad), (pad, pad)],
            dimension_numbers=("NHWC", "HWIO", "NHWC"),
            precision=jax.lax.Precision.HIGHEST)
        return y + b

    def bn(h, g, be):
        mean = jnp.mean(h, axis=(0, 1, 2), keepdims=True)
        var = jnp.mean((h - mean) ** 2, axis=(0, 1, 2), keepdims=True)
        return (h - mean) * jax.lax.rsqrt(var + EPS) * g + be

    h = jax.nn.relu(bn(conv(x, p["w1"][None, None], p["b1"], 0), p["g1"], p["be1"]))
    h = jax.nn.relu(bn(conv(h, p["w2"], p["b2"], 1), p["g2"], p["be2"]))
    h = bn(conv(h, p["w3"][None, None], p["b3"], 0), p["g3"], p["be3"])
    return jax.nn.relu(h + x)


if __name__ == "__main__":
    # Bottleneck config: kernel sizes [1, 3, 1], stride [1, 1, 1], padding [0, 1, 0],
    # in_channel == outs[2] so the residual add is valid. 4x bottleneck ratio, and
    # the residual/output channel count is a full 128-lane vreg width.
    N, H, W = 2, 16, 16
    Cin = 128
    outs = (32, 32, 128)

    key = jax.random.PRNGKey(0)
    kx, kp = jax.random.split(key)
    x = jax.random.normal(kx, (N, H, W, Cin), jnp.float32)    # NHWC end-to-end
    params = make_params(kp, Cin, outs)

    out = jax.block_until_ready(resnet50_basic_block(x, params))
    assert out.shape == (N, H, W, outs[2]), out.shape

    ref = jax.block_until_ready(ref_forward(x, params))
    max_err = float(jnp.max(jnp.abs(out - ref)))
    assert jnp.allclose(out, ref, atol=5e-2, rtol=5e-2), max_err

    print("KERNEL_OK")
</pallas_src>

<mosaic_0001>
module attributes {stable_mosaic.version = 11 : i64} {
  func.func @_conv1_kernel(%arg0: i32, %arg1: memref<1x256x128xf32, #tpu.memory_space<vmem>>, %arg2: memref<128x32xbf16, #tpu.memory_space<vmem>>, %arg3: memref<1x16x16x32xf32, #tpu.memory_space<vmem>>, %arg4: memref<1x2x32xf32, #tpu.memory_space<vmem>>) attributes {dimension_semantics = [#tpu.dimension_semantics<parallel>], iteration_bounds = array<i64: 2>, scalar_prefetch = 0 : i64, scratch_operands = 0 : i64, tpu.core_type = #tpu.core_type<tc>, window_params = [{transform_indices = @transform_0, window_bounds = array<i64: 1, 256, 128>}, {pipeline_mode = #tpu.pipeline_mode<synchronous>, transform_indices = @transform_1, window_bounds = array<i64: 128, 32>}, {transform_indices = @transform_2, window_bounds = array<i64: 1, 16, 16, 32>}, {transform_indices = @transform_3, window_bounds = array<i64: 1, 2, 32>}]} {
    %c0 = arith.constant 0 : index
    %c0_0 = arith.constant 0 : index
    %c0_1 = arith.constant 0 : index
    %0 = vector.load %arg1[%c0, %c0_0, %c0_1] : memref<1x256x128xf32, #tpu.memory_space<vmem>>, vector<1x256x128xf32>
    %1 = vector.shape_cast %0 : vector<1x256x128xf32> to vector<256x128xf32>
    %2 = arith.truncf %1 : vector<256x128xf32> to vector<256x128xbf16>
    %c0_2 = arith.constant 0 : index
    %c0_3 = arith.constant 0 : index
    %3 = vector.load %arg2[%c0_2, %c0_3] : memref<128x32xbf16, #tpu.memory_space<vmem>>, vector<128x32xbf16>
    %cst = arith.constant dense<0.000000e+00> : vector<256x32xf32>
    %4 = tpu.matmul %2, %3, %cst {dimension_numbers = #tpu.dot_dimension_numbers<[1], [0], [0], [1], [0, 0, 1, 1], [], []>} : vector<256x128xbf16>, vector<128x32xbf16>, vector<256x32xf32> -> vector<256x32xf32>
    %5 = vector.shape_cast %4 : vector<256x32xf32> to vector<16x16x32xf32>
    %c0_4 = arith.constant 0 : index
    %c0_5 = arith.constant 0 : index
    %c0_6 = arith.constant 0 : index
    %c0_7 = arith.constant 0 : index
    %6 = vector.load %arg3[%c0_4, %c0_5, %c0_6, %c0_7] : memref<1x16x16x32xf32, #tpu.memory_space<vmem>>, vector<1x16x16x32xf32>
    %7 = vector.shape_cast %6 : vector<1x16x16x32xf32> to vector<16x16x32xf32>
    %8 = vector.shape_cast %5 : vector<16x16x32xf32> to vector<1x16x16x32xf32>
    tpu.vector_store %arg3[%c0_4, %c0_5, %c0_6, %c0_7], %8 {strides = array<i32>} : memref<1x16x16x32xf32, #tpu.memory_space<vmem>>, vector<1x16x16x32xf32>,
    %cst_8 = arith.constant dense<0.000000e+00> : vector<32xf32>
    %9 = vector.multi_reduction <add>, %4, %cst_8 [0] : vector<256x32xf32> to vector<32xf32>
    %10 = vector.shape_cast %9 : vector<32xf32> to vector<1x32xf32>
    %11 = arith.mulf %4, %4 : vector<256x32xf32>
    %cst_9 = arith.constant dense<0.000000e+00> : vector<32xf32>
    %12 = vector.multi_reduction <add>, %11, %cst_9 [0] : vector<256x32xf32> to vector<32xf32>
    %13 = vector.shape_cast %12 : vector<32xf32> to vector<1x32xf32>
    %14 = tpu.concatenate %10, %13 in 0 : vector<1x32xf32>, vector<1x32xf32> -> vector<2x32xf32>
    %c0_10 = arith.constant 0 : index
    %c0_11 = arith.constant 0 : index
    %c0_12 = arith.constant 0 : index
    %15 = vector.load %arg4[%c0_10, %c0_11, %c0_12] : memref<1x2x32xf32, #tpu.memory_space<vmem>>, vector<1x2x32xf32>
    %16 = vector.shape_cast %15 : vector<1x2x32xf32> to vector<2x32xf32>
    %17 = vector.shape_cast %14 : vector<2x32xf32> to vector<1x2x32xf32>
    tpu.vector_store %arg4[%c0_10, %c0_11, %c0_12], %17 {strides = array<i32>} : memref<1x2x32xf32, #tpu.memory_space<vmem>>, vector<1x2x32xf32>,
    return
  }
  func.func @transform_0(%arg0: i32) -> (i32, i32, i32) {
    %c0_i32 = arith.constant 0 : i32
    %c0_i32_0 = arith.constant 0 : i32
    %c0_i32_1 = arith.constant 0 : i32
    return %arg0, %c0_i32, %c0_i32_0 : i32, i32, i32
  }
  func.func @transform_1(%arg0: i32) -> (i32, i32) {
    %c0_i32 = arith.constant 0 : i32
    %c0_i32_0 = arith.constant 0 : i32
    %c0_i32_1 = arith.constant 0 : i32
    return %c0_i32, %c0_i32_0 : i32, i32
  }
  func.func @transform_2(%arg0: i32) -> (i32, i32, i32, i32) {
    %c0_i32 = arith.constant 0 : i32
    %c0_i32_0 = arith.constant 0 : i32
    %c0_i32_1 = arith.constant 0 : i32
    %c0_i32_2 = arith.constant 0 : i32
    return %arg0, %c0_i32, %c0_i32_0, %c0_i32_1 : i32, i32, i32, i32
  }
  func.func @transform_3(%arg0: i32) -> (i32, i32, i32) {
    %c0_i32 = arith.constant 0 : i32
    %c0_i32_0 = arith.constant 0 : i32
    %c0_i32_1 = arith.constant 0 : i32
    return %arg0, %c0_i32, %c0_i32_0 : i32, i32, i32
  }
}

module attributes {stable_mosaic.version = 11 : i64} {
  func.func @_conv2_kernel(%arg0: i32, %arg1: memref<1x16x16x32xf32, #tpu.memory_space<vmem>>, %arg2: memref<1x32xf32, #tpu.memory_space<vmem>>, %arg3: memref<1x32xf32, #tpu.memory_space<vmem>>, %arg4: memref<288x32xbf16, #tpu.memory_space<vmem>>, %arg5: memref<1x256x32xf32, #tpu.memory_space<vmem>>, %arg6: memref<1x2x32xf32, #tpu.memory_space<vmem>>) attributes {dimension_semantics = [#tpu.dimension_semantics<parallel>], iteration_bounds = array<i64: 2>, scalar_prefetch = 0 : i64, scratch_operands = 0 : i64, tpu.core_type = #tpu.core_type<tc>, window_params = [{transform_indices = @transform_0, window_bounds = array<i64: 1, 16, 16, 32>}, {pipeline_mode = #tpu.pipeline_mode<synchronous>, transform_indices = @transform_1, window_bounds = array<i64: 1, 32>}, {pipeline_mode = #tpu.pipeline_mode<synchronous>, transform_indices = @transform_2, window_bounds = array<i64: 1, 32>}, {pipeline_mode = #tpu.pipeline_mode<synchronous>, transform_indices = @transform_3, window_bounds = array<i64: 288, 32>}, {transform_indices = @transform_4, window_bounds = array<i64: 1, 256, 32>}, {transform_indices = @transform_5, window_bounds = array<i64: 1, 2, 32>}]} {
    %c0 = arith.constant 0 : index
    %c0_0 = arith.constant 0 : index
    %c0_1 = arith.constant 0 : index
    %c0_2 = arith.constant 0 : index
    %0 = vector.load %arg1[%c0, %c0_0, %c0_1, %c0_2] : memref<1x16x16x32xf32, #tpu.memory_space<vmem>>, vector<1x16x16x32xf32>
    %1 = vector.shape_cast %0 : vector<1x16x16x32xf32> to vector<16x16x32xf32>
    %c0_3 = arith.constant 0 : index
    %c0_4 = arith.constant 0 : index
    %2 = vector.load %arg2[%c0_3, %c0_4] : memref<1x32xf32, #tpu.memory_space<vmem>>, vector<1x32xf32>
    %3 = vector.shape_cast %2 : vector<1x32xf32> to vector<1x1x32xf32>
    %4 = vector.broadcast %3 : vector<1x1x32xf32> to vector<16x16x32xf32>
    %5 = arith.mulf %1, %4 : vector<16x16x32xf32>
    %c0_5 = arith.constant 0 : index
    %c0_6 = arith.constant 0 : index
    %6 = vector.load %arg3[%c0_5, %c0_6] : memref<1x32xf32, #tpu.memory_space<vmem>>, vector<1x32xf32>
    %7 = vector.shape_cast %6 : vector<1x32xf32> to vector<1x1x32xf32>
    %8 = vector.broadcast %7 : vector<1x1x32xf32> to vector<16x16x32xf32>
    %9 = arith.addf %5, %8 : vector<16x16x32xf32>
    %cst = arith.constant 0.000000e+00 : f32
    %10 = vector.broadcast %cst : f32 to vector<16x16x32xf32>
    %11 = arith.maximumf %9, %10 : vector<16x16x32xf32>
    %12 = arith.truncf %11 : vector<16x16x32xf32> to vector<16x16x32xbf16>
    %cst_7 = arith.constant 0.000000e+00 : bf16
    %13 = vector.broadcast %cst_7 : bf16 to vector<1x16x32xbf16>
    %14 = tpu.concatenate %13, %12, %13 in 0 : vector<1x16x32xbf16>, vector<16x16x32xbf16>, vector<1x16x32xbf16> -> vector<18x16x32xbf16>
    %cst_8 = arith.constant 0.000000e+00 : bf16
    %15 = vector.broadcast %cst_8 : bf16 to vector<18x1x32xbf16>
    %16 = vector.extract_strided_slice %14 {offsets = [0, 0, 0], sizes = [18, 15, 32], strides = [1, 1, 1]} : vector<18x16x32xbf16> to vector<18x15x32xbf16>
    %17 = tpu.concatenate %15, %16 in 1 : vector<18x1x32xbf16>, vector<18x15x32xbf16> -> vector<18x16x32xbf16>
    %18 = vector.extract_strided_slice %14 {offsets = [0, 1, 0], sizes = [18, 15, 32], strides = [1, 1, 1]} : vector<18x16x32xbf16> to vector<18x15x32xbf16>
    %19 = tpu.concatenate %18, %15 in 1 : vector<18x15x32xbf16>, vector<18x1x32xbf16> -> vector<18x16x32xbf16>
    %20 = tpu.concatenate %17, %14, %19 in 2 : vector<18x16x32xbf16>, vector<18x16x32xbf16>, vector<18x16x32xbf16> -> vector<18x16x96xbf16>
    %21 = vector.extract_strided_slice %20 {offsets = [0, 0, 0], sizes = [16, 16, 96], strides = [1, 1, 1]} : vector<18x16x96xbf16> to vector<16x16x96xbf16>
    %22 = vector.shape_cast %21 : vector<16x16x96xbf16> to vector<256x96xbf16>
    %23 = vector.extract_strided_slice %20 {offsets = [1, 0, 0], sizes = [16, 16, 96], strides = [1, 1, 1]} : vector<18x16x96xbf16> to vector<16x16x96xbf16>
    %24 = vector.shape_cast %23 : vector<16x16x96xbf16> to vector<256x96xbf16>
    %25 = vector.extract_strided_slice %20 {offsets = [2, 0, 0], sizes = [16, 16, 96], strides = [1, 1, 1]} : vector<18x16x96xbf16> to vector<16x16x96xbf16>
    %26 = vector.shape_cast %25 : vector<16x16x96xbf16> to vector<256x96xbf16>
    %27 = tpu.concatenate %22, %24, %26 in 1 : vector<256x96xbf16>, vector<256x96xbf16>, vector<256x96xbf16> -> vector<256x288xbf16>
    %c0_9 = arith.constant 0 : index
    %c0_10 = arith.constant 0 : index
    %28 = vector.load %arg4[%c0_9, %c0_10] : memref<288x32xbf16, #tpu.memory_space<vmem>>, vector<288x32xbf16>
    %cst_11 = arith.constant dense<0.000000e+00> : vector<256x32xf32>
    %29 = tpu.matmul %27, %28, %cst_11 {dimension_numbers = #tpu.dot_dimension_numbers<[1], [0], [0], [1], [0, 0, 1, 1], [], []>} : vector<256x288xbf16>, vector<288x32xbf16>, vector<256x32xf32> -> vector<256x32xf32>
    %c0_12 = arith.constant 0 : index
    %c0_13 = arith.constant 0 : index
    %c0_14 = arith.constant 0 : index
    %30 = vector.load %arg5[%c0_12, %c0_13, %c0_14] : memref<1x256x32xf32, #tpu.memory_space<vmem>>, vector<1x256x32xf32>
    %31 = vector.shape_cast %30 : vector<1x256x32xf32> to vector<256x32xf32>
    %32 = vector.shape_cast %29 : vector<256x32xf32> to vector<1x256x32xf32>
    tpu.vector_store %arg5[%c0_12, %c0_13, %c0_14], %32 {strides = array<i32>} : memref<1x256x32xf32, #tpu.memory_space<vmem>>, vector<1x256x32xf32>,
    %cst_15 = arith.constant dense<0.000000e+00> : vector<32xf32>
    %33 = vector.multi_reduction <add>, %29, %cst_15 [0] : vector<256x32xf32> to vector<32xf32>
    %34 = vector.shape_cast %33 : vector<32xf32> to vector<1x32xf32>
    %35 = arith.mulf %29, %29 : vector<256x32xf32>
    %cst_16 = arith.constant dense<0.000000e+00> : vector<32xf32>
    %36 = vector.multi_reduction <add>, %35, %cst_16 [0] : vector<256x32xf32> to vector<32xf32>
    %37 = vector.shape_cast %36 : vector<32xf32> to vector<1x32xf32>
    %38 = tpu.concatenate %34, %37 in 0 : vector<1x32xf32>, vector<1x32xf32> -> vector<2x32xf32>
    %c0_17 = arith.constant 0 : index
    %c0_18 = arith.constant 0 : index
    %c0_19 = arith.constant 0 : index
    %39 = vector.load %arg6[%c0_17, %c0_18, %c0_19] : memref<1x2x32xf32, #tpu.memory_space<vmem>>, vector<1x2x32xf32>
    %40 = vector.shape_cast %39 : vector<1x2x32xf32> to vector<2x32xf32>
    %41 = vector.shape_cast %38 : vector<2x32xf32> to vector<1x2x32xf32>
    tpu.vector_store %arg6[%c0_17, %c0_18, %c0_19], %41 {strides = array<i32>} : memref<1x2x32xf32, #tpu.memory_space<vmem>>, vector<1x2x32xf32>,
    return
  }
  func.func @transform_0(%arg0: i32) -> (i32, i32, i32, i32) {
    %c0_i32 = arith.constant 0 : i32
    %c0_i32_0 = arith.constant 0 : i32
    %c0_i32_1 = arith.constant 0 : i32
    %c0_i32_2 = arith.constant 0 : i32
    return %arg0, %c0_i32, %c0_i32_0, %c0_i32_1 : i32, i32, i32, i32
  }
  func.func @transform_1(%arg0: i32) -> (i32, i32) {
    %c0_i32 = arith.constant 0 : i32
    %c0_i32_0 = arith.constant 0 : i32
    %c0_i32_1 = arith.constant 0 : i32
    return %c0_i32, %c0_i32_0 : i32, i32
  }
  func.func @transform_2(%arg0: i32) -> (i32, i32) {
    %c0_i32 = arith.constant 0 : i32
    %c0_i32_0 = arith.constant 0 : i32
    %c0_i32_1 = arith.constant 0 : i32
    return %c0_i32, %c0_i32_0 : i32, i32
  }
  func.func @transform_3(%arg0: i32) -> (i32, i32) {
    %c0_i32 = arith.constant 0 : i32
    %c0_i32_0 = arith.constant 0 : i32
    %c0_i32_1 = arith.constant 0 : i32
    return %c0_i32, %c0_i32_0 : i32, i32
  }
  func.func @transform_4(%arg0: i32) -> (i32, i32, i32) {
    %c0_i32 = arith.constant 0 : i32
    %c0_i32_0 = arith.constant 0 : i32
    %c0_i32_1 = arith.constant 0 : i32
    return %arg0, %c0_i32, %c0_i32_0 : i32, i32, i32
  }
  func.func @transform_5(%arg0: i32) -> (i32, i32, i32) {
    %c0_i32 = arith.constant 0 : i32
    %c0_i32_0 = arith.constant 0 : i32
    %c0_i32_1 = arith.constant 0 : i32
    return %arg0, %c0_i32, %c0_i32_0 : i32, i32, i32
  }
}

module attributes {stable_mosaic.version = 11 : i64} {
  func.func @_conv3_kernel(%arg0: i32, %arg1: memref<1x256x32xf32, #tpu.memory_space<vmem>>, %arg2: memref<1x32xf32, #tpu.memory_space<vmem>>, %arg3: memref<1x32xf32, #tpu.memory_space<vmem>>, %arg4: memref<32x128xbf16, #tpu.memory_space<vmem>>, %arg5: memref<1x256x128xf32, #tpu.memory_space<vmem>>, %arg6: memref<1x2x128xf32, #tpu.memory_space<vmem>>) attributes {dimension_semantics = [#tpu.dimension_semantics<parallel>], iteration_bounds = array<i64: 2>, scalar_prefetch = 0 : i64, scratch_operands = 0 : i64, tpu.core_type = #tpu.core_type<tc>, window_params = [{transform_indices = @transform_0, window_bounds = array<i64: 1, 256, 32>}, {pipeline_mode = #tpu.pipeline_mode<synchronous>, transform_indices = @transform_1, window_bounds = array<i64: 1, 32>}, {pipeline_mode = #tpu.pipeline_mode<synchronous>, transform_indices = @transform_2, window_bounds = array<i64: 1, 32>}, {pipeline_mode = #tpu.pipeline_mode<synchronous>, transform_indices = @transform_3, window_bounds = array<i64: 32, 128>}, {transform_indices = @transform_4, window_bounds = array<i64: 1, 256, 128>}, {transform_indices = @transform_5, window_bounds = array<i64: 1, 2, 128>}]} {
    %c0 = arith.constant 0 : index
    %c0_0 = arith.constant 0 : index
    %c0_1 = arith.constant 0 : index
    %0 = vector.load %arg1[%c0, %c0_0, %c0_1] : memref<1x256x32xf32, #tpu.memory_space<vmem>>, vector<1x256x32xf32>
    %1 = vector.shape_cast %0 : vector<1x256x32xf32> to vector<256x32xf32>
    %c0_2 = arith.constant 0 : index
    %c0_3 = arith.constant 0 : index
    %2 = vector.load %arg2[%c0_2, %c0_3] : memref<1x32xf32, #tpu.memory_space<vmem>>, vector<1x32xf32>
    %3 = vector.broadcast %2 : vector<1x32xf32> to vector<256x32xf32>
    %4 = arith.mulf %1, %3 : vector<256x32xf32>
    %c0_4 = arith.constant 0 : index
    %c0_5 = arith.constant 0 : index
    %5 = vector.load %arg3[%c0_4, %c0_5] : memref<1x32xf32, #tpu.memory_space<vmem>>, vector<1x32xf32>
    %6 = vector.broadcast %5 : vector<1x32xf32> to vector<256x32xf32>
    %7 = arith.addf %4, %6 : vector<256x32xf32>
    %cst = arith.constant 0.000000e+00 : f32
    %8 = vector.broadcast %cst : f32 to vector<256x32xf32>
    %9 = arith.maximumf %7, %8 : vector<256x32xf32>
    %10 = arith.truncf %9 : vector<256x32xf32> to vector<256x32xbf16>
    %c0_6 = arith.constant 0 : index
    %c0_7 = arith.constant 0 : index
    %11 = vector.load %arg4[%c0_6, %c0_7] : memref<32x128xbf16, #tpu.memory_space<vmem>>, vector<32x128xbf16>
    %cst_8 = arith.constant dense<0.000000e+00> : vector<256x128xf32>
    %12 = tpu.matmul %10, %11, %cst_8 {dimension_numbers = #tpu.dot_dimension_numbers<[1], [0], [0], [1], [0, 0, 1, 1], [], []>} : vector<256x32xbf16>, vector<32x128xbf16>, vector<256x128xf32> -> vector<256x128xf32>
    %c0_9 = arith.constant 0 : index
    %c0_10 = arith.constant 0 : index
    %c0_11 = arith.constant 0 : index
    %13 = vector.load %arg5[%c0_9, %c0_10, %c0_11] : memref<1x256x128xf32, #tpu.memory_space<vmem>>, vector<1x256x128xf32>
    %14 = vector.shape_cast %13 : vector<1x256x128xf32> to vector<256x128xf32>
    %15 = vector.shape_cast %12 : vector<256x128xf32> to vector<1x256x128xf32>
    tpu.vector_store %arg5[%c0_9, %c0_10, %c0_11], %15 {strides = array<i32>} : memref<1x256x128xf32, #tpu.memory_space<vmem>>, vector<1x256x128xf32>,
    %cst_12 = arith.constant dense<0.000000e+00> : vector<128xf32>
    %16 = vector.multi_reduction <add>, %12, %cst_12 [0] : vector<256x128xf32> to vector<128xf32>
    %17 = vector.shape_cast %16 : vector<128xf32> to vector<1x128xf32>
    %18 = arith.mulf %12, %12 : vector<256x128xf32>
    %cst_13 = arith.constant dense<0.000000e+00> : vector<128xf32>
    %19 = vector.multi_reduction <add>, %18, %cst_13 [0] : vector<256x128xf32> to vector<128xf32>
    %20 = vector.shape_cast %19 : vector<128xf32> to vector<1x128xf32>
    %21 = tpu.concatenate %17, %20 in 0 : vector<1x128xf32>, vector<1x128xf32> -> vector<2x128xf32>
    %c0_14 = arith.constant 0 : index
    %c0_15 = arith.constant 0 : index
    %c0_16 = arith.constant 0 : index
    %22 = vector.load %arg6[%c0_14, %c0_15, %c0_16] : memref<1x2x128xf32, #tpu.memory_space<vmem>>, vector<1x2x128xf32>
    %23 = vector.shape_cast %22 : vector<1x2x128xf32> to vector<2x128xf32>
    %24 = vector.shape_cast %21 : vector<2x128xf32> to vector<1x2x128xf32>
    tpu.vector_store %arg6[%c0_14, %c0_15, %c0_16], %24 {strides = array<i32>} : memref<1x2x128xf32, #tpu.memory_space<vmem>>, vector<1x2x128xf32>,
    return
  }
  func.func @transform_0(%arg0: i32) -> (i32, i32, i32) {
    %c0_i32 = arith.constant 0 : i32
    %c0_i32_0 = arith.constant 0 : i32
    %c0_i32_1 = arith.constant 0 : i32
    return %arg0, %c0_i32, %c0_i32_0 : i32, i32, i32
  }
  func.func @transform_1(%arg0: i32) -> (i32, i32) {
    %c0_i32 = arith.constant 0 : i32
    %c0_i32_0 = arith.constant 0 : i32
    %c0_i32_1 = arith.constant 0 : i32
    return %c0_i32, %c0_i32_0 : i32, i32
  }
  func.func @transform_2(%arg0: i32) -> (i32, i32) {
    %c0_i32 = arith.constant 0 : i32
    %c0_i32_0 = arith.constant 0 : i32
    %c0_i32_1 = arith.constant 0 : i32
    return %c0_i32, %c0_i32_0 : i32, i32
  }
  func.func @transform_3(%arg0: i32) -> (i32, i32) {
    %c0_i32 = arith.constant 0 : i32
    %c0_i32_0 = arith.constant 0 : i32
    %c0_i32_1 = arith.constant 0 : i32
    return %c0_i32, %c0_i32_0 : i32, i32
  }
  func.func @transform_4(%arg0: i32) -> (i32, i32, i32) {
    %c0_i32 = arith.constant 0 : i32
    %c0_i32_0 = arith.constant 0 : i32
    %c0_i32_1 = arith.constant 0 : i32
    return %arg0, %c0_i32, %c0_i32_0 : i32, i32, i32
  }
  func.func @transform_5(%arg0: i32) -> (i32, i32, i32) {
    %c0_i32 = arith.constant 0 : i32
    %c0_i32_0 = arith.constant 0 : i32
    %c0_i32_1 = arith.constant 0 : i32
    return %arg0, %c0_i32, %c0_i32_0 : i32, i32, i32
  }
}

module attributes {stable_mosaic.version = 11 : i64} {
  func.func @_finalize_kernel(%arg0: i32, %arg1: memref<1x256x128xf32, #tpu.memory_space<vmem>>, %arg2: memref<1x128xf32, #tpu.memory_space<vmem>>, %arg3: memref<1x128xf32, #tpu.memory_space<vmem>>, %arg4: memref<1x256x128xf32, #tpu.memory_space<vmem>>, %arg5: memref<1x256x128xf32, #tpu.memory_space<vmem>>) attributes {dimension_semantics = [#tpu.dimension_semantics<parallel>], iteration_bounds = array<i64: 2>, scalar_prefetch = 0 : i64, scratch_operands = 0 : i64, tpu.core_type = #tpu.core_type<tc>, window_params = [{transform_indices = @transform_0, window_bounds = array<i64: 1, 256, 128>}, {pipeline_mode = #tpu.pipeline_mode<synchronous>, transform_indices = @transform_1, window_bounds = array<i64: 1, 128>}, {pipeline_mode = #tpu.pipeline_mode<synchronous>, transform_indices = @transform_2, window_bounds = array<i64: 1, 128>}, {transform_indices = @transform_3, window_bounds = array<i64: 1, 256, 128>}, {transform_indices = @transform_4, window_bounds = array<i64: 1, 256, 128>}]} {
    %c0 = arith.constant 0 : index
    %c0_0 = arith.constant 0 : index
    %c0_1 = arith.constant 0 : index
    %0 = vector.load %arg1[%c0, %c0_0, %c0_1] : memref<1x256x128xf32, #tpu.memory_space<vmem>>, vector<1x256x128xf32>
    %1 = vector.shape_cast %0 : vector<1x256x128xf32> to vector<256x128xf32>
    %c0_2 = arith.constant 0 : index
    %c0_3 = arith.constant 0 : index
    %2 = vector.load %arg2[%c0_2, %c0_3] : memref<1x128xf32, #tpu.memory_space<vmem>>, vector<1x128xf32>
    %3 = vector.broadcast %2 : vector<1x128xf32> to vector<256x128xf32>
    %4 = arith.mulf %1, %3 : vector<256x128xf32>
    %c0_4 = arith.constant 0 : index
    %c0_5 = arith.constant 0 : index
    %5 = vector.load %arg3[%c0_4, %c0_5] : memref<1x128xf32, #tpu.memory_space<vmem>>, vector<1x128xf32>
    %6 = vector.broadcast %5 : vector<1x128xf32> to vector<256x128xf32>
    %7 = arith.addf %4, %6 : vector<256x128xf32>
    %c0_6 = arith.constant 0 : index
    %c0_7 = arith.constant 0 : index
    %c0_8 = arith.constant 0 : index
    %8 = vector.load %arg4[%c0_6, %c0_7, %c0_8] : memref<1x256x128xf32, #tpu.memory_space<vmem>>, vector<1x256x128xf32>
    %9 = vector.shape_cast %8 : vector<1x256x128xf32> to vector<256x128xf32>
    %10 = arith.addf %7, %9 : vector<256x128xf32>
    %cst = arith.constant 0.000000e+00 : f32
    %11 = vector.broadcast %cst : f32 to vector<256x128xf32>
    %12 = arith.maximumf %10, %11 : vector<256x128xf32>
    %c0_9 = arith.constant 0 : index
    %c0_10 = arith.constant 0 : index
    %c0_11 = arith.constant 0 : index
    %13 = vector.load %arg5[%c0_9, %c0_10, %c0_11] : memref<1x256x128xf32, #tpu.memory_space<vmem>>, vector<1x256x128xf32>
    %14 = vector.shape_cast %13 : vector<1x256x128xf32> to vector<256x128xf32>
    %15 = vector.shape_cast %12 : vector<256x128xf32> to vector<1x256x128xf32>
    tpu.vector_store %arg5[%c0_9, %c0_10, %c0_11], %15 {strides = array<i32>} : memref<1x256x128xf32, #tpu.memory_space<vmem>>, vector<1x256x128xf32>,
    return
  }
  func.func @transform_0(%arg0: i32) -> (i32, i32, i32) {
    %c0_i32 = arith.constant 0 : i32
    %c0_i32_0 = arith.constant 0 : i32
    %c0_i32_1 = arith.constant 0 : i32
    return %arg0, %c0_i32, %c0_i32_0 : i32, i32, i32
  }
  func.func @transform_1(%arg0: i32) -> (i32, i32) {
    %c0_i32 = arith.constant 0 : i32
    %c0_i32_0 = arith.constant 0 : i32
    %c0_i32_1 = arith.constant 0 : i32
    return %c0_i32, %c0_i32_0 : i32, i32
  }
  func.func @transform_2(%arg0: i32) -> (i32, i32) {
    %c0_i32 = arith.constant 0 : i32
    %c0_i32_0 = arith.constant 0 : i32
    %c0_i32_1 = arith.constant 0 : i32
    return %c0_i32, %c0_i32_0 : i32, i32
  }
  func.func @transform_3(%arg0: i32) -> (i32, i32, i32) {
    %c0_i32 = arith.constant 0 : i32
    %c0_i32_0 = arith.constant 0 : i32
    %c0_i32_1 = arith.constant 0 : i32
    return %arg0, %c0_i32, %c0_i32_0 : i32, i32, i32
  }
  func.func @transform_4(%arg0: i32) -> (i32, i32, i32) {
    %c0_i32 = arith.constant 0 : i32
    %c0_i32_0 = arith.constant 0 : i32
    %c0_i32_1 = arith.constant 0 : i32
    return %arg0, %c0_i32, %c0_i32_0 : i32, i32, i32
  }
}

</mosaic_0001>

<bundles_post_ra>
// kernel: resnet50_basic_block.4
= control target key start
LH: loop header
LB: loop body
LE: loop exit
PB: predicated region body
PF: predicated region fallthrough
CT: control target
= control target key end

     0   :  { %9 = vsyncpa [#allocation3], 0  ;;  %s1420_s0 = inlined_call_operand.hbm [shape: f32[2,256,128], index: 0, kind: input, shape index: {}]   ;;  %s1421_s1 = inlined_call_operand.vmem [shape: bf16[128,32], index: 1, kind: input, shape index: {}]   ;;  %s1422_s2 = inlined_call_operand.vmem [shape: f32[2,16,16,32], index: 2, kind: output, shape index: {0}]   ;;  %s1423_s3 = inlined_call_operand.vmem [shape: f32[2,2,32], index: 3, kind: output, shape index: {1}]  }
   0x1   :  { %11 = vsyncpa [#allocation3 + $0x1], 0  ;;  %s1028_s12 = smov 0   ;;  %s1030_s13 = smov 0  }
   0x2   :  { %s1032_s14 = smov 0   ;;  %s1034_s15 = smov 0  }
   0x3 LB: > { %s1047_s16 = sadd.s32 4294967295, %s1003_s15   ;;  %s1050_s17 = sadd.s32 1, %s1003_s15   ;;  %s1003_s15 = sphi %s1034_s15, %s1432_s15   ;;  %s999_s14 = sphi %s1032_s14, %s1431_s14   ;;  %s995_s13 = sphi %s1030_s13, %s1430_s13   ;;  %s991_s12 = sphi %s1028_s12, %s1429_s12  }
   0x4   : > { %s21_s18 = ssub.s32 %s1003_s15, %s1050_s17  ;;  %s24_s19 = sadd.s32 1, %s999_s14 }
   0x5   : > { %p22_p0 = scmp.eq.s32.totalorder %s21_s18, 0  ;;  %p31_p1 = scmp.ne.s32.totalorder %s999_s14, %s995_s13 }
   0x6   : > { %p32_p2 = scmp.eq.s32.totalorder %s1003_s15, 0  ;;  %p37_p3 = scmp.ne.s32.totalorder %s995_s13, %s991_s12 }
   0x7   : > { %s1060_s20 = scalar_select %p22_p0, %s999_s14, %s24_s19  }
   0x8   : > { %p33_p4 = por %p32_p2, %p31_p1  ;;  %p38_p5 = scmp.eq.s32.totalorder %s1047_s16, 0 }
   0x9   : > { %p898_p6 = scmp.lt.s32.totalorder %s1003_s15, 2  ;;  %s137_s22 = sand.u32 1, %s999_s14  }
   0xa   : > { %p1064_p7 = por %p38_p5, %p37_p3  ;;  %s784_s23 = sshll.u32 %s137_s22, 8 }
   0xb   : > { %s802_s24 = sshll.u32 %s1003_s15, 12  ;;  %s141_s28 = scalar_lea.vmem [#allocation2], %s784_s23 }
   0xc   : > { %s1425_s21 = scalar_select %p1064_p7, 1, 0 }
   0xd   : > { %s1073_s27 = scalar_lea.hbm %s1420_s0, %s802_s24  ;;  %s148_s29 = sshll.u32 %s141_s28, 4  ;;  %s1075_s29 = int_to_ptr.vmem [resolvable:$true] %s148_s29 }
   0xe   : > { %p1077_p8 = pnand %p898_p6, %p33_p4  ;;  %s1082_s4 = scalar_lea.sflag [#allocation3], %s137_s22 }
   0xf   : > { %s941_s5 = scalar_lea.hbm %s1073_s27, 4096  ;;  %s946_s8 = scalar_lea.hbm %s1420_s0, 8192 }
  0x10   : > { %p942_p10 = scmp.ne.s32.totalorder %s1073_s27, %s941_s5  ;;  %p943_p11 = pneg %p1077_p8 }
  0x11   : > { %p947_p0 = scmp.lt.s32.totalorder %s1073_s27, %s1420_s0  ;;  %p948_p1 = scmp.lt.s32.totalorder %s946_s8, %s941_s5 }
  0x12   : > { %p944_p12 = pnand %p943_p11, %p942_p10 }
  0x13   : > { %p949_p2 = por %p948_p1, %p947_p0 }
  0x14   : > { %p945_p13 = pneg %p944_p12 }
  0x16   : > { %p950_p3 = pnand %p949_p2, %p945_p13 }
  0x18   : > { %953 = shalt.err (!%p950_p3)
}
  0x19   : > { %s954_s11 = scalar_lea.vmem %s1075_s29, 4096  ;;  %s1005_s12 = smov [#allocation2]  }
  0x1a   : > { %p955_p4 = scmp.ne.s32.totalorder %s1075_s29, %s954_s11  ;;  %s959_s18 = sshll.u32 %s1005_s12, 4  ;;  %s960_s18 = int_to_ptr.vmem [resolvable:$false] %s959_s18 }
  0x1b   : > { %s961_s19 = scalar_lea.vmem %s960_s18, 8192  ;;  %p962_p10 = scmp.lt.s32.totalorder %s1075_s29, %s960_s18 }
  0x1c   : > { %p957_p5 = pnand %p955_p4, %p943_p11  ;;  %p963_p12 = scmp.lt.s32.totalorder %s961_s19, %s954_s11 }
  0x1e   : > { %p958_p6 = pneg %p957_p5  ;;  %p964_p9 = por %p963_p12, %p962_p10 }
  0x20   : > { %p965_p7 = pnand %p964_p9, %p958_p6 }
  0x22   : > { %968 = shalt.err (!%p965_p7)
}
  0x23   : > { %s1006_s22 = smov 128   ;;  %s1007_s23 = smov 8  }
  0x24   : > { %897 = dma.hbm_to_vmem [thread:$0]  (!%p1077_p8), %s1073_s27, 4096, %s1075_s29, %s1082_s4, %s1006_s22, %s1006_s22, %s1007_s23  }
  0x25   : > { %p156_p11 = scmp.lt.s32.totalorder %s1003_s15, 3  ;;  %p1427_p13 = scmp.ge.s32.totalorder %s1003_s15, 1 }
  0x27   : > { %p157_p0 = pnand %p1427_p13, %p156_p11 }
  0x28   : > { %s162_s24 = sand.u32 (!%p157_p0), 1, %s995_s13   ;;  %p1428_p7 = scmp.ne.s32.totalorder (!%p157_p0), %s1425_s21, 0 }
  0x29   : > { %160 = sbr.rel (%p157_p0) target bundleno = 358 (0x166), region = 28  ;;  %s788_s25 = sshll.u32 (!%p157_p0), %s162_s24, 8 }
  0x2a   : > { %s163_s26 = scalar_lea.sflag (!%p157_p0), [#allocation3], %s162_s24  ;;  %s1107_s28 = scalar_lea.vmem (!%p157_p0), [#allocation2], %s788_s25 }
  0x2e   : > { %986 = dma.done.wait (%p1428_p7), %s163_s26, 4096  }
  0x2f   : > { %988 = vsyncadd (%p1428_p7), %s163_s26, 4294963200  ;;  %v933_v0 = vld [vmem:[%s1421_s1 + $0x38] sm:$0xff]   ;;  %v934_v1 = vld [vmem:[%s1421_s1 + $0x30] sm:$0xff]   ;;  %p193_p8 = scmp.lt.s32.totalorder %s1047_s16, 1  ;;  %vm476_vm0 = vcmask 261120   ;;  %vm679_vm1 = vcmask 1040384  }
  0x30   : > { %828 = vmatprep.subr.bf16.mxu0 %v933_v0  ;;  %876 = vmatprep.subr.bf16.mxu1 %v933_v0  ;;  %v935_v2 = vld [vmem:[%s1421_s1 + $0x28] sm:$0xff]   ;;  %v936_v3 = vld [vmem:[%s1421_s1 + $0x20] sm:$0xff]   ;;  %v937_v7 = vld [vmem:[%s1421_s1 + $0x18] sm:$0xff]   ;;  %vm681_vm2 = vcmask 254976  }
  0x31   : > { %829 = vmatpush3.bf16.msra.mxu0 %v933_v0  ;;  %884 = vmatpush3.bf16.msra.mxu1 %v933_v0  ;;  %v203_v4 = vld [vmem:[%s1107_s28] sm:$0xff]  ;;  %v204_v5 = vld [vmem:[%s1107_s28 + $0x8] sm:$0xff]  ;;  %v938_v11 = vld [vmem:[%s1421_s1 + $0x10] sm:$0xff]   ;;  %s1434_s16 = smov (!%p193_p8, %s1047_s16), 1 }
  0x32   : > { %830 = vmatprep.subr.bf16.mxu0 %v934_v1  ;;  %877 = vmatprep.subr.bf16.mxu1 %v934_v1  ;;  %v235_v6 = vpack.c.bf16 %v204_v5, %v203_v4  ;;  %v219_v8 = vld [vmem:[%s1107_s28 + $0x80] sm:$0xff]  ;;  %v220_v9 = vld [vmem:[%s1107_s28 + $0x88] sm:$0xff]  ;;  %v205_v14 = vld [vmem:[%s1107_s28 + $0x10] sm:$0xff]  ;;  %s803_s22 = sshll.u32 %s1434_s16, 8  ;;  %s791_s26 = sshll.u32 %s1434_s16, 1 }
  0x33   : > { %v243_v10 = vpack.c.bf16 %v220_v9, %v219_v8  ;;  %v939_v12 = vld [vmem:[%s1421_s1 + $0x8] sm:$0xff]   ;;  %v940_v13 = vld [vmem:[%s1421_s1] sm:$0xff]   ;;  %v206_v15 = vld [vmem:[%s1107_s28 + $0x18] sm:$0xff]  ;;  %s1177_s25 = scalar_lea.vmem %s1422_s2, %s803_s22  ;;  %s201_s6 = scalar_lea.vmem %s1423_s3, %s791_s26 }
  0x34   : > { %844 = vmatprep.mubr.bf16.mxu0 %v235_v6  ;;  %v207_v16 = vld [vmem:[%s1107_s28 + $0x20] sm:$0xff]  ;;  %v208_v17 = vld [vmem:[%s1107_s28 + $0x28] sm:$0xff]  ;;  %v221_v18 = vld [vmem:[%s1107_s28 + $0x90] sm:$0xff]  ;;  %v236_v22 = vpack.c.bf16 %v206_v15, %v205_v14 }
  0x35   : > { %831 = vmatpush3.bf16.msra.mxu0 %v934_v1  ;;  %885 = vmatpush3.bf16.msra.mxu1 %v934_v1  ;;  %v222_v19 = vld [vmem:[%s1107_s28 + $0x98] sm:$0xff]  ;;  %v223_v20 = vld [vmem:[%s1107_s28 + $0xa0] sm:$0xff]  ;;  %v224_v21 = vld [vmem:[%s1107_s28 + $0xa8] sm:$0xff]  ;;  %v237_v23 = vpack.c.bf16 %v208_v17, %v207_v16 }
  0x36   : > { %832 = vmatprep.subr.bf16.mxu0 %v935_v2  ;;  %878 = vmatprep.subr.bf16.mxu1 %v935_v2  ;;  %v244_v24 = vpack.c.bf16 %v222_v19, %v221_v18  ;;  %v245_v25 = vpack.c.bf16 %v224_v21, %v223_v20  ;;  %v209_v26 = vld [vmem:[%s1107_s28 + $0x30] sm:$0xff]  ;;  %v210_v27 = vld [vmem:[%s1107_s28 + $0x38] sm:$0xff]  ;;  %v211_v28 = vld [vmem:[%s1107_s28 + $0x40] sm:$0xff] }
  0x37   : > { %860 = vmatprep.mubr.bf16.mxu1 %v243_v10  ;;  %v212_v29 = vld [vmem:[%s1107_s28 + $0x48] sm:$0xff]  ;;  %v225_v30 = vld [vmem:[%s1107_s28 + $0xb0] sm:$0xff]  ;;  %v226_v31 = vld [vmem:[%s1107_s28 + $0xb8] sm:$0xff]  ;;  %v238_v34 = vpack.c.bf16 %v210_v27, %v209_v26 }
  0x38   : > { %v227_v32 = vld [vmem:[%s1107_s28 + $0xc0] sm:$0xff]  ;;  %v228_v33 = vld [vmem:[%s1107_s28 + $0xc8] sm:$0xff]  ;;  %v239_v35 = vpack.c.bf16 %v212_v29, %v211_v28  ;;  %v246_v36 = vpack.c.bf16 %v226_v31, %v225_v30  ;;  %v213_v38 = vld [vmem:[%s1107_s28 + $0x50] sm:$0xff] }
  0x39   : > { %833 = vmatpush3.bf16.msra.mxu0 %v935_v2  ;;  %886 = vmatpush3.bf16.msra.mxu1 %v935_v2  ;;  %v247_v37 = vpack.c.bf16 %v228_v33, %v227_v32  ;;  %v214_v39 = vld [vmem:[%s1107_s28 + $0x58] sm:$0xff]  ;;  %v215_v40 = vld [vmem:[%s1107_s28 + $0x60] sm:$0xff]  ;;  %v216_v41 = vld [vmem:[%s1107_s28 + $0x68] sm:$0xff] }
  0x3a   : > { %834 = vmatprep.subr.bf16.mxu0 %v936_v3  ;;  %879 = vmatprep.subr.bf16.mxu1 %v936_v3  ;;  %v229_v42 = vld [vmem:[%s1107_s28 + $0xd0] sm:$0xff]  ;;  %v230_v43 = vld [vmem:[%s1107_s28 + $0xd8] sm:$0xff]  ;;  %v231_v44 = vld [vmem:[%s1107_s28 + $0xe0] sm:$0xff]  ;;  %v240_v46 = vpack.c.bf16 %v214_v39, %v213_v38  ;;  %v241_v47 = vpack.c.bf16 %v216_v41, %v215_v40 }
  0x3b   : > { %v232_v45 = vld [vmem:[%s1107_s28 + $0xe8] sm:$0xff]  ;;  %v248_v48 = vpack.c.bf16 %v230_v43, %v229_v42  ;;  %v217_v50 = vld [vmem:[%s1107_s28 + $0x70] sm:$0xff]  ;;  %v218_v51 = vld [vmem:[%s1107_s28 + $0x78] sm:$0xff] }
  0x3c   : > { %v249_v49 = vpack.c.bf16 %v232_v45, %v231_v44  ;;  %v233_v52 = vld [vmem:[%s1107_s28 + $0xf0] sm:$0xff]  ;;  %v234_v53 = vld [vmem:[%s1107_s28 + $0xf8] sm:$0xff]  ;;  %v242_v54 = vpack.c.bf16 %v218_v51, %v217_v50 }
  0x3d   : > { %835 = vmatpush3.bf16.msra.mxu0 %v936_v3  ;;  %887 = vmatpush3.bf16.msra.mxu1 %v936_v3  ;;  %v250_v55 = vpack.c.bf16 %v234_v53, %v233_v52 }
  0x3e   : > { %836 = vmatprep.subr.bf16.mxu0 %v937_v7  ;;  %880 = vmatprep.subr.bf16.mxu1 %v937_v7 }
  0x41   : > { %837 = vmatpush3.bf16.msra.mxu0 %v937_v7  ;;  %888 = vmatpush3.bf16.msra.mxu1 %v937_v7 }
  0x42   : > { %838 = vmatprep.subr.bf16.mxu0 %v938_v11  ;;  %881 = vmatprep.subr.bf16.mxu1 %v938_v11 }
  0x45   : > { %839 = vmatpush3.bf16.msra.mxu0 %v938_v11  ;;  %889 = vmatpush3.bf16.msra.mxu1 %v938_v11 }
  0x46   : > { %840 = vmatprep.subr.bf16.mxu0 %v939_v12  ;;  %882 = vmatprep.subr.bf16.mxu1 %v939_v12 }
  0x49   : > { %841 = vmatpush3.bf16.msra.mxu0 %v939_v12  ;;  %890 = vmatpush3.bf16.msra.mxu1 %v939_v12 }
  0x4a   : > { %842 = vmatprep.subr.bf16.mxu0 %v940_v13  ;;  %883 = vmatprep.subr.bf16.mxu1 %v940_v13 }
  0x4d   : > { %843 = vmatpush3.bf16.msra.mxu0 %v940_v13  ;;  %891 = vmatpush3.bf16.msra.mxu1 %v940_v13 }
  0x50   : > { %845 = vmatmul.mubr.bf16.vlgmr.msra.gmra.mxu0 %v236_v22  ;;  %861 = vmatmul.mubr.bf16.vlgmr.msra.gmra.mxu1 %v244_v24 }
  0x51   : > { %848 = vmatprep.mubr.bf16.mxu0 %v237_v23  ;;  %864 = vmatprep.mubr.bf16.mxu1 %v245_v25 }
  0x58   : > { %849 = vmatmul.mubr.bf16.gmra.mxu0 %v238_v34  ;;  %865 = vmatmul.mubr.bf16.gmra.mxu1 %v246_v36 }
  0x59   : > { %852 = vmatprep.mubr.bf16.mxu0 %v239_v35  ;;  %868 = vmatprep.mubr.bf16.mxu1 %v247_v37 }
  0x60   : > { %853 = vmatmul.mubr.bf16.gmra.mxu0 %v240_v46  ;;  %869 = vmatmul.mubr.bf16.gmra.mxu1 %v248_v48 }
  0x61   : > { %856 = vmatprep.mubr.bf16.mxu0 %v241_v47  ;;  %872 = vmatprep.mubr.bf16.mxu1 %v249_v49 }
  0x68   : > { %857 = vmatmul.mubr.bf16.gmra.mxu0 %v242_v54  ;;  %873 = vmatmul.mubr.bf16.gmra.mxu1 %v250_v55 }
 0x110   : > { %v846_v56 = vpop.f32.mrf.mxu0  ;;  %v1181_v57 = vpop.f32.mrf.mxu1 }
 0x111   : > { %479 = vst.msk [vmem:[%s1177_s25 + $0x10] sm:$0xff] %vm476_vm0, %v846_v56  ;;  %495 = vst.msk [vmem:[%s1177_s25 + $0x90] sm:$0xff] %vm476_vm0, %v1181_v57  ;;  %v580_v0 = vmul.f32 %v846_v56, %v846_v56  ;;  %v512_v7 = vsel %vm476_vm0, %v846_v56, 0.0 }
 0x112   : > { %v349_v58 = vpop.f32.mrf.mxu0  ;;  %v1188_v59 = vpop.f32.mrf.mxu1 }
 0x113   : > { %477 = vst.msk [vmem:[%s1177_s25] sm:$0xff] %vm476_vm0, %v349_v58  ;;  %493 = vst.msk [vmem:[%s1177_s25 + $0x80] sm:$0xff] %vm476_vm0, %v1188_v59  ;;  %v578_v61 = vmul.f32 %v349_v58, %v349_v58  ;;  %v509_v1 = vsel %vm476_vm0, %v349_v58, 0.0  ;;  %v613_v15 = vsel %vm476_vm0, %v580_v0, 0.0 }
 0x114   : > { %v847_v60 = vpop.f32.mrf.mxu0  ;;  %v1195_v62 = vpop.f32.mrf.mxu1 }
 0x115   : > { %480 = vst.msk [vmem:[%s1177_s25 + $0x18] sm:$0xff] %vm476_vm0, %v847_v60  ;;  %496 = vst.msk [vmem:[%s1177_s25 + $0x98] sm:$0xff] %vm476_vm0, %v1195_v62  ;;  %v610_v8 = vsel %vm476_vm0, %v578_v61, 0.0  ;;  %v581_v9 = vmul.f32 %v847_v60, %v847_v60  ;;  %v514_v16 = vsel %vm476_vm0, %v847_v60, 0.0 }
 0x116   : > { %v352_v63 = vpop.f32.mrf.mxu0  ;;  %v1204_v4 = vpop.f32.mrf.mxu1 }
 0x117   : > { %478 = vst.msk [vmem:[%s1177_s25 + $0x8] sm:$0xff] %vm476_vm0, %v352_v63  ;;  %v510_v2 = vsel %vm476_vm0, %v352_v63, 0.0  ;;  %v579_v3 = vmul.f32 %v352_v63, %v352_v63  ;;  %494 = vst.msk [vmem:[%s1177_s25 + $0x88] sm:$0xff] %vm476_vm0, %v1204_v4  ;;  %v615_v22 = vsel %vm476_vm0, %v581_v9, 0.0 }
 0x118   : > { %v511_v5 = vadd.f32 %v510_v2, %v509_v1  ;;  %v850_v6 = vpop.f32.mrf.mxu0  ;;  %v1214_v11 = vpop.f32.mrf.mxu1 }
 0x119   : > { %v611_v10 = vsel %vm476_vm0, %v579_v3, 0.0  ;;  %483 = vst.msk [vmem:[%s1177_s25 + $0x30] sm:$0xff] %vm476_vm0, %v850_v6  ;;  %499 = vst.msk [vmem:[%s1177_s25 + $0xb0] sm:$0xff] %vm476_vm0, %v1214_v11  ;;  %v584_v28 = vmul.f32 %v850_v6, %v850_v6  ;;  %v520_v36 = vsel %vm476_vm0, %v850_v6, 0.0 }
 0x11a   : > { %v513_v12 = vadd.f32 %v512_v7, %v511_v5  ;;  %v612_v13 = vadd.f32 %v611_v10, %v610_v8  ;;  %v365_v14 = vpop.f32.mrf.mxu0  ;;  %v1223_v18 = vpop.f32.mrf.mxu1 }
 0x11b   : > { %481 = vst.msk [vmem:[%s1177_s25 + $0x20] sm:$0xff] %vm476_vm0, %v365_v14  ;;  %v582_v17 = vmul.f32 %v365_v14, %v365_v14  ;;  %497 = vst.msk [vmem:[%s1177_s25 + $0xa0] sm:$0xff] %vm476_vm0, %v1223_v18  ;;  %v516_v23 = vsel %vm476_vm0, %v365_v14, 0.0  ;;  %v621_v43 = vsel %vm476_vm0, %v584_v28, 0.0 }
 0x11c   : > { %v614_v19 = vadd.f32 %v613_v15, %v612_v13  ;;  %v515_v20 = vadd.f32 %v514_v16, %v513_v12  ;;  %v851_v21 = vpop.f32.mrf.mxu0  ;;  %v1232_v24 = vpop.f32.mrf.mxu1 }
 0x11d   : > { %484 = vst.msk [vmem:[%s1177_s25 + $0x38] sm:$0xff] %vm476_vm0, %v851_v21  ;;  %500 = vst.msk [vmem:[%s1177_s25 + $0xb8] sm:$0xff] %vm476_vm0, %v1232_v24  ;;  %v617_v29 = vsel %vm476_vm0, %v582_v17, 0.0  ;;  %v585_v37 = vmul.f32 %v851_v21, %v851_v21  ;;  %v522_v44 = vsel %vm476_vm0, %v851_v21, 0.0 }
 0x11e   : > { %v517_v25 = vadd.f32 %v516_v23, %v515_v20  ;;  %v616_v26 = vadd.f32 %v615_v22, %v614_v19  ;;  %v368_v27 = vpop.f32.mrf.mxu0  ;;  %v1241_v32 = vpop.f32.mrf.mxu1 }
 0x11f   : > { %482 = vst.msk [vmem:[%s1177_s25 + $0x28] sm:$0xff] %vm476_vm0, %v368_v27  ;;  %v518_v30 = vsel %vm476_vm0, %v368_v27, 0.0  ;;  %v583_v31 = vmul.f32 %v368_v27, %v368_v27  ;;  %498 = vst.msk [vmem:[%s1177_s25 + $0xa8] sm:$0xff] %vm476_vm0, %v1241_v32  ;;  %v623_v50 = vsel %vm476_vm0, %v585_v37, 0.0 }
 0x120   : > { %v618_v33 = vadd.f32 %v617_v29, %v616_v26  ;;  %v519_v34 = vadd.f32 %v518_v30, %v517_v25  ;;  %v854_v35 = vpop.f32.mrf.mxu0  ;;  %v1250_v39 = vpop.f32.mrf.mxu1 }
 0x121   : > { %v619_v38 = vsel %vm476_vm0, %v583_v31, 0.0  ;;  %487 = vst.msk [vmem:[%s1177_s25 + $0x50] sm:$0xff] %vm476_vm0, %v854_v35  ;;  %503 = vst.msk [vmem:[%s1177_s25 + $0xd0] sm:$0xff] %vm476_vm0, %v1250_v39  ;;  %v588_v56 = vmul.f32 %v854_v35, %v854_v35  ;;  %v528_v3 = vsel %vm476_vm0, %v854_v35, 0.0 }
 0x122   : > { %v521_v40 = vadd.f32 %v520_v36, %v519_v34  ;;  %v620_v41 = vadd.f32 %v619_v38, %v618_v33  ;;  %v381_v42 = vpop.f32.mrf.mxu0  ;;  %v1259_v46 = vpop.f32.mrf.mxu1 }
 0x123   : > { %485 = vst.msk [vmem:[%s1177_s25 + $0x40] sm:$0xff] %vm476_vm0, %v381_v42  ;;  %v586_v45 = vmul.f32 %v381_v42, %v381_v42  ;;  %501 = vst.msk [vmem:[%s1177_s25 + $0xc0] sm:$0xff] %vm476_vm0, %v1259_v46  ;;  %v524_v51 = vsel %vm476_vm0, %v381_v42, 0.0  ;;  %v629_v12 = vsel %vm476_vm0, %v588_v56, 0.0 }
 0x124   : > { %v622_v47 = vadd.f32 %v621_v43, %v620_v41  ;;  %v523_v48 = vadd.f32 %v522_v44, %v521_v40  ;;  %v855_v49 = vpop.f32.mrf.mxu0  ;;  %v1268_v52 = vpop.f32.mrf.mxu1  ;;  %v594_v43 = vmul.f32 %v1188_v59, %v1188_v59 }
 0x125   : > { %488 = vst.msk [vmem:[%s1177_s25 + $0x58] sm:$0xff] %vm476_vm0, %v855_v49  ;;  %504 = vst.msk [vmem:[%s1177_s25 + $0xd8] sm:$0xff] %vm476_vm0, %v1268_v52  ;;  %v625_v58 = vsel %vm476_vm0, %v586_v45, 0.0  ;;  %v589_v5 = vmul.f32 %v855_v49, %v855_v49  ;;  %v530_v13 = vsel %vm476_vm0, %v855_v49, 0.0  ;;  %v595_v49 = vmul.f32 %v1204_v4, %v1204_v4 }
 0x126   : > { %v525_v53 = vadd.f32 %v524_v51, %v523_v48  ;;  %v624_v54 = vadd.f32 %v623_v50, %v622_v47  ;;  %v384_v55 = vpop.f32.mrf.mxu0  ;;  %v1277_v63 = vpop.f32.mrf.mxu1  ;;  %v540_v48 = vsel %vm476_vm0, %v1188_v59, 0.0  ;;  %v597_v59 = vmul.f32 %v1195_v62, %v1195_v62 }
 0x127   : > { %486 = vst.msk [vmem:[%s1177_s25 + $0x48] sm:$0xff] %vm476_vm0, %v384_v55  ;;  %v526_v60 = vsel %vm476_vm0, %v384_v55, 0.0  ;;  %v587_v61 = vmul.f32 %v384_v55, %v384_v55  ;;  %502 = vst.msk [vmem:[%s1177_s25 + $0xc8] sm:$0xff] %vm476_vm0, %v1277_v63  ;;  %v631_v20 = vsel %vm476_vm0, %v589_v5, 0.0  ;;  %v542_v55 = vsel %vm476_vm0, %v1204_v4, 0.0 }
 0x128   : > { %v626_v0 = vadd.f32 %v625_v58, %v624_v54  ;;  %v527_v1 = vadd.f32 %v526_v60, %v525_v53  ;;  %v858_v2 = vpop.f32.mrf.mxu0  ;;  %v1286_v7 = vpop.f32.mrf.mxu1  ;;  %v596_v53 = vmul.f32 %v1181_v57, %v1181_v57  ;;  %v641_v54 = vsel %vm476_vm0, %v594_v43, 0.0 }
 0x129   : > { %v627_v6 = vsel %vm476_vm0, %v587_v61, 0.0  ;;  %491 = vst.msk [vmem:[%s1177_s25 + $0x70] sm:$0xff] %vm476_vm0, %v858_v2  ;;  %507 = vst.msk [vmem:[%s1177_s25 + $0xf0] sm:$0xff] %vm476_vm0, %v1286_v7  ;;  %v592_v27 = vmul.f32 %v858_v2, %v858_v2  ;;  %v536_v35 = vsel %vm476_vm0, %v858_v2, 0.0  ;;  %v544_v60 = vsel %vm476_vm0, %v1181_v57, 0.0 }
 0x12a   : > { %v529_v8 = vadd.f32 %v528_v3, %v527_v1  ;;  %v628_v9 = vadd.f32 %v627_v6, %v626_v0  ;;  %v397_v10 = vpop.f32.mrf.mxu0  ;;  %v1295_v15 = vpop.f32.mrf.mxu1  ;;  %v643_v61 = vsel %vm476_vm0, %v595_v49, 0.0  ;;  %v645_v2 = vsel %vm476_vm0, %v596_v53, 0.0 }
 0x12b   : > { %489 = vst.msk [vmem:[%s1177_s25 + $0x60] sm:$0xff] %vm476_vm0, %v397_v10  ;;  %v590_v14 = vmul.f32 %v397_v10, %v397_v10  ;;  %505 = vst.msk [vmem:[%s1177_s25 + $0xe0] sm:$0xff] %vm476_vm0, %v1295_v15  ;;  %v532_v21 = vsel %vm476_vm0, %v397_v10, 0.0  ;;  %v637_v41 = vsel %vm476_vm0, %v592_v27, 0.0  ;;  %v546_v3 = vsel %vm476_vm0, %v1195_v62, 0.0 }
 0x12c   : > { %v630_v16 = vadd.f32 %v629_v12, %v628_v9  ;;  %v531_v17 = vadd.f32 %v530_v13, %v529_v8  ;;  %v859_v19 = vpop.f32.mrf.mxu0  ;;  %v1304_v22 = vpop.f32.mrf.mxu1  ;;  %v598_v4 = vmul.f32 %v1223_v18, %v1223_v18  ;;  %v647_v8 = vsel %vm476_vm0, %v597_v59, 0.0 }
 0x12d   : > { %492 = vst.msk [vmem:[%s1177_s25 + $0x78] sm:$0xff] %vm476_vm0, %v859_v19  ;;  %508 = vst.msk [vmem:[%s1177_s25 + $0xf8] sm:$0xff] %vm476_vm0, %v1304_v22  ;;  %v633_v28 = vsel %vm476_vm0, %v590_v14, 0.0  ;;  %v593_v36 = vmul.f32 %v859_v19, %v859_v19  ;;  %v538_v42 = vsel %vm476_vm0, %v859_v19, 0.0  ;;  %v548_v57 = vsel %vm476_vm0, %v1223_v18, 0.0 }
 0x12e   : > { %v533_v23 = vadd.f32 %v532_v21, %v531_v17  ;;  %v632_v25 = vadd.f32 %v631_v20, %v630_v16  ;;  %v400_v26 = vpop.f32.mrf.mxu0  ;;  %v1313_v31 = vpop.f32.mrf.mxu1  ;;  %v599_v9 = vmul.f32 %v1241_v32, %v1241_v32  ;;  %v600_v13 = vmul.f32 %v1214_v11, %v1214_v11 }
 0x12f   : > { %490 = vst.msk [vmem:[%s1177_s25 + $0x68] sm:$0xff] %vm476_vm0, %v400_v26  ;;  %v534_v29 = vsel %vm476_vm0, %v400_v26, 0.0  ;;  %v591_v30 = vmul.f32 %v400_v26, %v400_v26  ;;  %506 = vst.msk [vmem:[%s1177_s25 + $0xe8] sm:$0xff] %vm476_vm0, %v1313_v31  ;;  %v639_v47 = vsel %vm476_vm0, %v593_v36, 0.0  ;;  %v649_v62 = vsel %vm476_vm0, %v598_v4, 0.0 }
 0x130   : > { %v634_v33 = vadd.f32 %v633_v28, %v632_v25  ;;  %v535_v34 = vadd.f32 %v534_v29, %v533_v23  ;;  %v550_v14 = vsel %vm476_vm0, %v1241_v32, 0.0  ;;  %v552_v19 = vsel %vm476_vm0, %v1214_v11, 0.0 }
 0x131   : > { %v635_v37 = vsel %vm476_vm0, %v591_v30, 0.0  ;;  %v601_v18 = vmul.f32 %v1232_v24, %v1232_v24  ;;  %v651_v20 = vsel %vm476_vm0, %v599_v9, 0.0  ;;  %v653_v25 = vsel %vm476_vm0, %v600_v13, 0.0 }
 0x132   : > { %v537_v38 = vadd.f32 %v536_v35, %v535_v34  ;;  %v636_v40 = vadd.f32 %v635_v37, %v634_v33  ;;  %v554_v26 = vsel %vm476_vm0, %v1232_v24, 0.0  ;;  %v602_v32 = vmul.f32 %v1259_v46, %v1259_v46 }
 0x133   : > { %v655_v29 = vsel %vm476_vm0, %v601_v18, 0.0  ;;  %v556_v11 = vsel %vm476_vm0, %v1259_v46, 0.0  ;;  %v603_v30 = vmul.f32 %v1277_v63, %v1277_v63  ;;  %v604_v35 = vmul.f32 %v1250_v39, %v1250_v39 }
 0x134   : > { %v539_v44 = vadd.f32 %v538_v42, %v537_v38  ;;  %v638_v45 = vadd.f32 %v637_v41, %v636_v40  ;;  %v657_v24 = vsel %vm476_vm0, %v602_v32, 0.0  ;;  %v558_v36 = vsel %vm476_vm0, %v1277_v63, 0.0 }
 0x135   : > { %v560_v40 = vsel %vm476_vm0, %v1250_v39, 0.0  ;;  %v605_v46 = vmul.f32 %v1268_v52, %v1268_v52  ;;  %v659_v41 = vsel %vm476_vm0, %v603_v30, 0.0  ;;  %v606_v63 = vmul.f32 %v1295_v15, %v1295_v15 }
 0x136   : > { %v640_v50 = vadd.f32 %v639_v47, %v638_v45  ;;  %v541_v51 = vadd.f32 %v540_v48, %v539_v44  ;;  %v661_v44 = vsel %vm476_vm0, %v604_v35, 0.0  ;;  %v562_v45 = vsel %vm476_vm0, %v1268_v52, 0.0 }
 0x137   : > { %v663_v49 = vsel %vm476_vm0, %v605_v46, 0.0  ;;  %v564_v39 = vsel %vm476_vm0, %v1295_v15, 0.0  ;;  %v665_v52 = vsel %vm476_vm0, %v606_v63, 0.0  ;;  %v609_v15 = vmul.f32 %v1304_v22, %v1304_v22 }
 0x138   : > { %v543_v56 = vadd.f32 %v542_v55, %v541_v51  ;;  %v642_v58 = vadd.f32 %v641_v54, %v640_v50  ;;  %v607_v50 = vmul.f32 %v1313_v31, %v1313_v31  ;;  %v608_v54 = vmul.f32 %v1286_v7, %v1286_v7 }
 0x139   : > { %v566_v55 = vsel %vm476_vm0, %v1313_v31, 0.0  ;;  %v671_v4 = vsel %vm476_vm0, %v609_v15, 0.0 }
 0x13a   : > { %v545_v0 = vadd.f32 %v544_v60, %v543_v56  ;;  %v644_v1 = vadd.f32 %v643_v61, %v642_v58  ;;  %v568_v60 = vsel %vm476_vm0, %v1286_v7, 0.0  ;;  %v667_v59 = vsel %vm476_vm0, %v607_v50, 0.0 }
 0x13c   : > { %v646_v5 = vadd.f32 %v645_v2, %v644_v1  ;;  %v547_v6 = vadd.f32 %v546_v3, %v545_v0  ;;  %v669_v1 = vsel %vm476_vm0, %v608_v54, 0.0  ;;  %v570_v2 = vsel %vm476_vm0, %v1304_v22, 0.0 }
 0x13e   : > { %v549_v10 = vadd.f32 %v548_v57, %v547_v6  ;;  %v648_v12 = vadd.f32 %v647_v8, %v646_v5 }
 0x140   : > { %v650_v16 = vadd.f32 %v649_v62, %v648_v12  ;;  %v551_v17 = vadd.f32 %v550_v14, %v549_v10 }
 0x142   : > { %v553_v21 = vadd.f32 %v552_v19, %v551_v17  ;;  %v652_v23 = vadd.f32 %v651_v20, %v650_v16 }
 0x144   : > { %v654_v27 = vadd.f32 %v653_v25, %v652_v23  ;;  %v555_v28 = vadd.f32 %v554_v26, %v553_v21 }
 0x146   : > { %v557_v33 = vadd.f32 %v556_v11, %v555_v28  ;;  %v656_v34 = vadd.f32 %v655_v29, %v654_v27 }
 0x148   : > { %v658_v37 = vadd.f32 %v657_v24, %v656_v34  ;;  %v559_v38 = vadd.f32 %v558_v36, %v557_v33 }
 0x14a   : > { %v561_v42 = vadd.f32 %v560_v40, %v559_v38  ;;  %v660_v43 = vadd.f32 %v659_v41, %v658_v37 }
 0x14c   : > { %v662_v47 = vadd.f32 %v661_v44, %v660_v43  ;;  %v563_v48 = vadd.f32 %v562_v45, %v561_v42 }
 0x14e   : > { %v565_v51 = vadd.f32 %v564_v39, %v563_v48  ;;  %v664_v53 = vadd.f32 %v663_v49, %v662_v47 }
 0x150   : > { %v666_v56 = vadd.f32 %v665_v52, %v664_v53  ;;  %v567_v58 = vadd.f32 %v566_v55, %v565_v51 }
 0x152   : > { %v569_v61 = vadd.f32 %v568_v60, %v567_v58  ;;  %v668_v0 = vadd.f32 %v667_v59, %v666_v56 }
 0x154   : > { %v571_v3 = vadd.f32 %v570_v2, %v569_v61  ;;  %v670_v31 = vadd.f32 %v669_v1, %v668_v0 }
 0x156   : > { %v572_v5 = vrot.slane %v571_v3, 4  ;;  %v672_v6 = vadd.f32 %v671_v4, %v670_v31 }
 0x158   : > { %v573_v7 = vadd.f32 %v572_v5, %v571_v3  ;;  %v673_v8 = vrot.slane %v672_v6, 4 }
 0x15a   : > { %v574_v57 = vrot.slane %v573_v7, 2  ;;  %v674_v9 = vadd.f32 %v673_v8, %v672_v6 }
 0x15c   : > { %v575_v10 = vadd.f32 %v574_v57, %v573_v7  ;;  %v675_v12 = vrot.slane %v674_v9, 2 }
 0x15e   : > { %v576_v13 = vrot.slane %v575_v10, 1  ;;  %v676_v62 = vadd.f32 %v675_v12, %v674_v9 }
 0x160   : > { %v677_v14 = vrot.slane %v676_v62, 1  ;;  %v577_v22 = vadd.f32 %v576_v13, %v575_v10 }
 0x162   : > { %v678_v16 = vadd.f32 %v677_v14, %v676_v62 }
 0x164   : > { %v680_v17 = vsel %vm679_vm1, %v577_v22, %v678_v16 }
 0x165   : > { %682 = vst.msk [vmem:[%s201_s6] sm:$0x3] %vm681_vm2, %v680_v17 }
 0x166 PF: > { %p14_p9 = scmp.ge.s32.totalorder %s1050_s17, 4   ;;  %s1429_s12 = smov %s995_s13 }
 0x167   : > { %s1430_s13 = smov %s999_s14  ;;  %s1431_s14 = smov %s1060_s20 }
 0x168   : > { %s1432_s15 = smov %s1050_s17  ;;  %16 = sbr.rel (!%p14_p9) target bundleno = 3 (0x3), region = 80 }
 0x16d   :  { %718 = vsyncpa [#allocation3], 1 }
 0x16e   :  { %720 = vsyncpa [#allocation3 + $0x1], 1 }

// kernel: resnet50_basic_block.7
= control target key start
LH: loop header
LB: loop body
LE: loop exit
PB: predicated region body
PF: predicated region fallthrough
CT: control target
= control target key end

     0   :  { %9 = vsyncpa [#allocation3], 0  ;;  %s981_s0 = inlined_call_operand.vmem [shape: f32[2,256,128], index: 0, kind: input, shape index: {}]   ;;  %s982_s1 = inlined_call_operand.vmem [shape: f32[1,128], index: 1, kind: input, shape index: {}]   ;;  %s983_s2 = inlined_call_operand.vmem [shape: f32[1,128], index: 2, kind: input, shape index: {}]   ;;  %s984_s3 = inlined_call_operand.vmem [shape: f32[2,256,128], index: 3, kind: input, shape index: {}]   ;;  %s985_s4 = inlined_call_operand.hbm [shape: f32[2,256,128], index: 4, kind: output, shape index: {}]  }
   0x1   :  { %11 = vsyncpa [#allocation3 + $0x1], 0  ;;  %s692_s15 = smov 0   ;;  %s694_s16 = smov 0  }
   0x2   :  { %s696_s17 = smov 0   ;;  %s698_s18 = smov 0  }
   0x3 LB: > { %s713_s19 = sadd.s32 4294967295, %s662_s18   ;;  %s542_s20 = sadd.s32 4294967294, %s662_s18   ;;  %s662_s18 = sphi %s698_s18, %s991_s18   ;;  %s658_s17 = sphi %s696_s17, %s990_s17   ;;  %s654_s16 = sphi %s694_s16, %s989_s16   ;;  %s650_s15 = sphi %s692_s15, %s988_s15  }
   0x4   : > { %s717_s21 = sadd.s32 1, %s662_s18   ;;  %s118_s22 = sadd.s32 1, %s658_s17 }
   0x5   : > { %s115_s23 = ssub.s32 %s662_s18, %s717_s21  ;;  %p128_p0 = scmp.ne.s32.totalorder %s658_s17, %s654_s16 }
   0x6   : > { %p116_p1 = scmp.eq.s32.totalorder %s115_s23, 0  ;;  %p129_p2 = scmp.eq.s32.totalorder %s713_s19, 1 }
   0x7   : > { %p134_p3 = scmp.ne.s32.totalorder %s654_s16, %s650_s15  ;;  %p135_p4 = scmp.eq.s32.totalorder %s542_s20, 1 }
   0x8   : > { %s728_s24 = scalar_select %p116_p1, %s658_s17, %s118_s22  }
   0x9   : > { %p730_p5 = por %p129_p2, %p128_p0  ;;  %p734_p6 = por %p135_p4, %p134_p3 }
   0xa   : > { %p545_p7 = scmp.ge.s32.totalorder %s662_s18, 1  ;;  %p175_p8 = scmp.lt.s32.totalorder %s662_s18, 3 }
   0xc   : > { %p176_p9 = pnand %p545_p7, %p175_p8 }
   0xd   : > { %p206_p10 = scmp.lt.s32.totalorder (!%p176_p9), %s713_s19, 1  ;;  %s203_s11 = sand.u32 (!%p176_p9), 1, %s654_s16  }
   0xe   : > { %179 = sbr.rel (%p176_p9) target bundleno = 75 (0x4b), region = 36  ;;  %s775_s14 = sshll.u32 (!%p176_p9), %s203_s11, 8 }
   0xf   : > { %s805_s20 = scalar_lea.vmem (!%p176_p9), [#allocation2], %s775_s14  ;;  %s560_s22 = sshll.u32 (!%p176_p9), %s713_s19, 12 }
  0x10   : > { %s468_s23 = sshll.u32 (!%p176_p9), %s805_s20, 4  ;;  %s932_s29 = scalar_lea.hbm (!%p176_p9), %s985_s4, %s560_s22  ;;  %s934_s23 = int_to_ptr.vmem [resolvable:$true] %s468_s23 }
  0x11   : > { %s602_s30 = scalar_lea.vmem (!%p176_p9), %s934_s23, 4096  ;;  %s664_s5 = smov (!%p176_p9), [#allocation2]  }
  0x12   : > { %p603_p11 = scmp.ne.s32.totalorder (!%p176_p9), %s934_s23, %s602_s30  ;;  %s606_s6 = sshll.u32 (!%p176_p9), %s664_s5, 4  ;;  %s607_s6 = int_to_ptr.vmem [resolvable:$false] %s606_s6 }
  0x13   : > { %s207_s27 = scalar_select %p206_p10, %s713_s19, 1  ;;  %v745_v0 = vld [vmem:[%s982_s1] ss:$0 sm:$0xff] }
  0x14   : > { %v762_v2 = vld [vmem:[%s983_s2] ss:$0 sm:$0xff]  ;;  %s941_s19 = scalar_lea.sflag [#allocation3], %s203_s11  ;;  %p604_p12 = pnand %p603_p11, %p730_p5 }
  0x15   : > { %s558_s28 = sshll.u32 %s207_s27, 8  ;;  %p609_p0 = scmp.lt.s32.totalorder %s934_s23, %s607_s6 }
  0x16   : > { %s750_s7 = scalar_lea.vmem %s981_s0, %s558_s28  ;;  %s755_s10 = scalar_lea.vmem %s984_s3, %s558_s28 }
  0x17   : > { %v216_v1 = vld [vmem:[%s750_s7] sm:$0xff]  ;;  %v217_v3 = vld [vmem:[%s750_s7 + $0x8] sm:$0xff]  ;;  %v218_v7 = vld [vmem:[%s750_s7 + $0x10] sm:$0xff]  ;;  %p605_p13 = pneg %p604_p12 }
  0x18   : > { %v255_v4 = vmul.f32 %v745_v0, %v216_v1  ;;  %v326_v5 = vld [vmem:[%s755_s10] sm:$0xff]  ;;  %v256_v6 = vmul.f32 %v745_v0, %v217_v3  ;;  %v327_v8 = vld [vmem:[%s755_s10 + $0x8] sm:$0xff]  ;;  %v257_v9 = vmul.f32 %v745_v0, %v218_v7  ;;  %v219_v10 = vld [vmem:[%s750_s7 + $0x18] sm:$0xff] }
  0x19   : > { %v220_v11 = vld [vmem:[%s750_s7 + $0x20] sm:$0xff]  ;;  %v328_v14 = vld [vmem:[%s755_s10 + $0x10] sm:$0xff]  ;;  %v258_v15 = vmul.f32 %v745_v0, %v219_v10  ;;  %v329_v16 = vld [vmem:[%s755_s10 + $0x18] sm:$0xff] }
  0x1a   : > { %v294_v12 = vadd.f32 %v762_v2, %v255_v4  ;;  %v295_v13 = vadd.f32 %v762_v2, %v256_v6  ;;  %v259_v17 = vmul.f32 %v745_v0, %v220_v11  ;;  %v221_v18 = vld [vmem:[%s750_s7 + $0x28] sm:$0xff]  ;;  %v296_v19 = vadd.f32 %v762_v2, %v257_v9  ;;  %v330_v20 = vld [vmem:[%s755_s10 + $0x20] sm:$0xff]  ;;  %v222_v22 = vld [vmem:[%s750_s7 + $0x30] sm:$0xff] }
  0x1b   : > { %v260_v21 = vmul.f32 %v745_v0, %v221_v18  ;;  %v223_v23 = vld [vmem:[%s750_s7 + $0x38] sm:$0xff]  ;;  %v297_v26 = vadd.f32 %v762_v2, %v258_v15  ;;  %v331_v28 = vld [vmem:[%s755_s10 + $0x28] sm:$0xff]  ;;  %v261_v31 = vmul.f32 %v745_v0, %v222_v22  ;;  %v224_v33 = vld [vmem:[%s750_s7 + $0x40] sm:$0xff] }
  0x1c   : > { %v358_v24 = vadd.f32 %v326_v5, %v294_v12  ;;  %v359_v25 = vadd.f32 %v327_v8, %v295_v13  ;;  %v298_v27 = vadd.f32 %v762_v2, %v259_v17  ;;  %v360_v29 = vadd.f32 %v328_v14, %v296_v19  ;;  %v225_v34 = vld [vmem:[%s750_s7 + $0x48] sm:$0xff]  ;;  %v332_v39 = vld [vmem:[%s755_s10 + $0x30] sm:$0xff]  ;;  %v333_v40 = vld [vmem:[%s755_s10 + $0x38] sm:$0xff] }
  0x1d   : > { %v299_v30 = vadd.f32 %v762_v2, %v260_v21  ;;  %v262_v32 = vmul.f32 %v745_v0, %v223_v23  ;;  %v361_v37 = vadd.f32 %v329_v16, %v297_v26  ;;  %v226_v41 = vld [vmem:[%s750_s7 + $0x50] sm:$0xff]  ;;  %v300_v44 = vadd.f32 %v762_v2, %v261_v31  ;;  %v227_v46 = vld [vmem:[%s750_s7 + $0x58] sm:$0xff]  ;;  %v228_v47 = vld [vmem:[%s750_s7 + $0x60] sm:$0xff] }
  0x1e   : > { %v390_v35 = vmax.f32 %v358_v24, 0.0  ;;  %v391_v36 = vmax.f32 %v359_v25, 0.0  ;;  %v362_v38 = vadd.f32 %v330_v20, %v298_v27  ;;  %v392_v42 = vmax.f32 %v360_v29, 0.0  ;;  %v229_v52 = vld [vmem:[%s750_s7 + $0x68] sm:$0xff]  ;;  %v334_v56 = vld [vmem:[%s755_s10 + $0x40] sm:$0xff]  ;;  %v336_v61 = vld [vmem:[%s755_s10 + $0x50] sm:$0xff] }
  0x1f   : > { %v363_v43 = vadd.f32 %v331_v28, %v299_v30  ;;  %v301_v45 = vadd.f32 %v762_v2, %v262_v32  ;;  %v393_v48 = vmax.f32 %v361_v37, 0.0  ;;  %v263_v50 = vmul.f32 %v745_v0, %v224_v33  ;;  %v335_v57 = vld [vmem:[%s755_s10 + $0x48] sm:$0xff]  ;;  %v230_v1 = vld [vmem:[%s750_s7 + $0x70] sm:$0xff]  ;;  %v231_v3 = vld [vmem:[%s750_s7 + $0x78] sm:$0xff] }
  0x20   : > { %422 = vst [vmem:[%s805_s20] sm:$0xff] %v390_v35  ;;  %423 = vst [vmem:[%s805_s20 + $0x8] sm:$0xff] %v391_v36  ;;  %v394_v49 = vmax.f32 %v362_v38, 0.0  ;;  %v264_v51 = vmul.f32 %v745_v0, %v225_v34  ;;  %v364_v54 = vadd.f32 %v332_v39, %v300_v44  ;;  %v265_v58 = vmul.f32 %v745_v0, %v226_v41  ;;  %v337_v7 = vld [vmem:[%s755_s10 + $0x58] sm:$0xff]  ;;  %v338_v8 = vld [vmem:[%s755_s10 + $0x60] sm:$0xff] }
  0x21   : > { %424 = vst [vmem:[%s805_s20 + $0x10] sm:$0xff] %v392_v42  ;;  %v395_v53 = vmax.f32 %v363_v43, 0.0  ;;  %v365_v55 = vadd.f32 %v333_v40, %v301_v45  ;;  %425 = vst [vmem:[%s805_s20 + $0x18] sm:$0xff] %v393_v48  ;;  %v302_v59 = vadd.f32 %v762_v2, %v263_v50  ;;  %v266_v62 = vmul.f32 %v745_v0, %v227_v46  ;;  %v339_v14 = vld [vmem:[%s755_s10 + $0x68] sm:$0xff]  ;;  %v232_v19 = vld [vmem:[%s750_s7 + $0x80] sm:$0xff] }
  0x22   : > { %426 = vst [vmem:[%s805_s20 + $0x20] sm:$0xff] %v394_v49  ;;  %v303_v60 = vadd.f32 %v762_v2, %v264_v51  ;;  %v267_v63 = vmul.f32 %v745_v0, %v228_v47  ;;  %v396_v4 = vmax.f32 %v364_v54, 0.0  ;;  %v304_v6 = vadd.f32 %v762_v2, %v265_v58  ;;  %v233_v20 = vld [vmem:[%s750_s7 + $0x88] sm:$0xff]  ;;  %v340_v25 = vld [vmem:[%s755_s10 + $0x70] sm:$0xff]  ;;  %v341_v26 = vld [vmem:[%s755_s10 + $0x78] sm:$0xff] }
  0x23   : > { %427 = vst [vmem:[%s805_s20 + $0x28] sm:$0xff] %v395_v53  ;;  %v397_v5 = vmax.f32 %v365_v55, 0.0  ;;  %v268_v9 = vmul.f32 %v745_v0, %v229_v52  ;;  %v366_v10 = vadd.f32 %v334_v56, %v302_v59  ;;  %v305_v12 = vadd.f32 %v762_v2, %v266_v62  ;;  %v234_v27 = vld [vmem:[%s750_s7 + $0x90] sm:$0xff]  ;;  %v235_v32 = vld [vmem:[%s750_s7 + $0x98] sm:$0xff]  ;;  %v236_v33 = vld [vmem:[%s750_s7 + $0xa0] sm:$0xff] }
  0x24   : > { %v367_v11 = vadd.f32 %v335_v57, %v303_v60  ;;  %v306_v13 = vadd.f32 %v762_v2, %v267_v63  ;;  %428 = vst [vmem:[%s805_s20 + $0x30] sm:$0xff] %v396_v4  ;;  %v368_v15 = vadd.f32 %v336_v61, %v304_v6  ;;  %v269_v17 = vmul.f32 %v745_v0, %v230_v1  ;;  %v237_v38 = vld [vmem:[%s750_s7 + $0xa8] sm:$0xff]  ;;  %v342_v42 = vld [vmem:[%s755_s10 + $0x80] sm:$0xff]  ;;  %v344_v47 = vld [vmem:[%s755_s10 + $0x90] sm:$0xff] }
  0x25   : > { %429 = vst [vmem:[%s805_s20 + $0x38] sm:$0xff] %v397_v5  ;;  %v307_v16 = vadd.f32 %v762_v2, %v268_v9  ;;  %v270_v18 = vmul.f32 %v745_v0, %v231_v3  ;;  %v398_v21 = vmax.f32 %v366_v10, 0.0  ;;  %v369_v23 = vadd.f32 %v337_v7, %v305_v12  ;;  %v343_v43 = vld [vmem:[%s755_s10 + $0x88] sm:$0xff]  ;;  %v238_v50 = vld [vmem:[%s750_s7 + $0xb0] sm:$0xff]  ;;  %v239_v51 = vld [vmem:[%s750_s7 + $0xb8] sm:$0xff] }
  0x26   : > { %v399_v22 = vmax.f32 %v367_v11, 0.0  ;;  %v370_v24 = vadd.f32 %v338_v8, %v306_v13  ;;  %v400_v28 = vmax.f32 %v368_v15, 0.0  ;;  %v308_v30 = vadd.f32 %v762_v2, %v269_v17  ;;  %v345_v55 = vld [vmem:[%s755_s10 + $0x98] sm:$0xff]  ;;  %v346_v56 = vld [vmem:[%s755_s10 + $0xa0] sm:$0xff]  ;;  %v347_v62 = vld [vmem:[%s755_s10 + $0xa8] sm:$0xff] }
  0x27   : > { %v371_v29 = vadd.f32 %v339_v14, %v307_v16  ;;  %v309_v31 = vadd.f32 %v762_v2, %v270_v18  ;;  %430 = vst [vmem:[%s805_s20 + $0x40] sm:$0xff] %v398_v21  ;;  %v401_v34 = vmax.f32 %v369_v23, 0.0  ;;  %v271_v36 = vmul.f32 %v745_v0, %v232_v19  ;;  %v240_v5 = vld [vmem:[%s750_s7 + $0xc0] sm:$0xff]  ;;  %v241_v6 = vld [vmem:[%s750_s7 + $0xc8] sm:$0xff]  ;;  %v348_v11 = vld [vmem:[%s755_s10 + $0xb0] sm:$0xff] }
  0x28   : > { %431 = vst [vmem:[%s805_s20 + $0x48] sm:$0xff] %v399_v22  ;;  %v402_v35 = vmax.f32 %v370_v24, 0.0  ;;  %v272_v37 = vmul.f32 %v745_v0, %v233_v20  ;;  %432 = vst [vmem:[%s805_s20 + $0x50] sm:$0xff] %v400_v28  ;;  %v372_v40 = vadd.f32 %v340_v25, %v308_v30  ;;  %v273_v44 = vmul.f32 %v745_v0, %v234_v27  ;;  %v349_v12 = vld [vmem:[%s755_s10 + $0xb8] sm:$0xff]  ;;  %v242_v13 = vld [vmem:[%s750_s7 + $0xd0] sm:$0xff] }
  0x29   : > { %v403_v39 = vmax.f32 %v371_v29, 0.0  ;;  %v373_v41 = vadd.f32 %v341_v26, %v309_v31  ;;  %433 = vst [vmem:[%s805_s20 + $0x58] sm:$0xff] %v401_v34  ;;  %v310_v45 = vadd.f32 %v762_v2, %v271_v36  ;;  %v274_v48 = vmul.f32 %v745_v0, %v235_v32  ;;  %v243_v18 = vld [vmem:[%s750_s7 + $0xd8] sm:$0xff]  ;;  %v244_v19 = vld [vmem:[%s750_s7 + $0xe0] sm:$0xff]  ;;  %v245_v24 = vld [vmem:[%s750_s7 + $0xe8] sm:$0xff] }
  0x2a   : > { %434 = vst [vmem:[%s805_s20 + $0x60] sm:$0xff] %v402_v35  ;;  %v311_v46 = vadd.f32 %v762_v2, %v272_v37  ;;  %v275_v49 = vmul.f32 %v745_v0, %v236_v33  ;;  %v404_v52 = vmax.f32 %v372_v40, 0.0  ;;  %v312_v54 = vadd.f32 %v762_v2, %v273_v44  ;;  %v350_v28 = vld [vmem:[%s755_s10 + $0xc0] sm:$0xff]  ;;  %v351_v29 = vld [vmem:[%s755_s10 + $0xc8] sm:$0xff]  ;;  %v352_v33 = vld [vmem:[%s755_s10 + $0xd0] sm:$0xff] }
  0x2b   : > { %435 = vst [vmem:[%s805_s20 + $0x68] sm:$0xff] %v403_v39  ;;  %v405_v53 = vmax.f32 %v373_v41, 0.0  ;;  %v276_v57 = vmul.f32 %v745_v0, %v237_v38  ;;  %v374_v58 = vadd.f32 %v342_v42, %v310_v45  ;;  %v313_v60 = vadd.f32 %v762_v2, %v274_v48  ;;  %v246_v36 = vld [vmem:[%s750_s7 + $0xf0] sm:$0xff]  ;;  %v247_v37 = vld [vmem:[%s750_s7 + $0xf8] sm:$0xff]  ;;  %v354_v42 = vld [vmem:[%s755_s10 + $0xe0] sm:$0xff]  ;;  %s608_s7 = scalar_lea.vmem %s607_s6, 8192 }
  0x2c   : > { %v375_v59 = vadd.f32 %v343_v43, %v311_v46  ;;  %v314_v61 = vadd.f32 %v762_v2, %v275_v49  ;;  %436 = vst [vmem:[%s805_s20 + $0x70] sm:$0xff] %v404_v52  ;;  %v376_v63 = vadd.f32 %v344_v47, %v312_v54  ;;  %v277_v3 = vmul.f32 %v745_v0, %v238_v50  ;;  %v353_v41 = vld [vmem:[%s755_s10 + $0xd8] sm:$0xff]  ;;  %v355_v48 = vld [vmem:[%s755_s10 + $0xe8] sm:$0xff]  ;;  %p610_p1 = scmp.lt.s32.totalorder %s608_s7, %s602_s30 }
  0x2d   : > { %437 = vst [vmem:[%s805_s20 + $0x78] sm:$0xff] %v405_v53  ;;  %v315_v1 = vadd.f32 %v762_v2, %v276_v57  ;;  %v278_v4 = vmul.f32 %v745_v0, %v239_v51  ;;  %v406_v7 = vmax.f32 %v374_v58, 0.0  ;;  %v377_v9 = vadd.f32 %v345_v55, %v313_v60  ;;  %v356_v57 = vld [vmem:[%s755_s10 + $0xf0] sm:$0xff]  ;;  %v357_v58 = vld [vmem:[%s755_s10 + $0xf8] sm:$0xff] }
  0x2e   : > { %v407_v8 = vmax.f32 %v375_v59, 0.0  ;;  %v378_v10 = vadd.f32 %v346_v56, %v314_v61  ;;  %v408_v14 = vmax.f32 %v376_v63, 0.0  ;;  %v316_v16 = vadd.f32 %v762_v2, %v277_v3  ;;  %p611_p2 = por %p610_p1, %p609_p0 }
  0x2f   : > { %v379_v15 = vadd.f32 %v347_v62, %v315_v1  ;;  %v317_v17 = vadd.f32 %v762_v2, %v278_v4  ;;  %438 = vst [vmem:[%s805_s20 + $0x80] sm:$0xff] %v406_v7  ;;  %v409_v20 = vmax.f32 %v377_v9, 0.0  ;;  %v279_v22 = vmul.f32 %v745_v0, %v240_v5 }
  0x30   : > { %439 = vst [vmem:[%s805_s20 + $0x88] sm:$0xff] %v407_v8  ;;  %v410_v21 = vmax.f32 %v378_v10, 0.0  ;;  %v280_v23 = vmul.f32 %v745_v0, %v241_v6  ;;  %440 = vst [vmem:[%s805_s20 + $0x90] sm:$0xff] %v408_v14  ;;  %v380_v26 = vadd.f32 %v348_v11, %v316_v16  ;;  %v281_v30 = vmul.f32 %v745_v0, %v242_v13  ;;  %p612_p3 = pnand %p611_p2, %p605_p13 }
  0x31   : > { %v411_v25 = vmax.f32 %v379_v15, 0.0  ;;  %v381_v27 = vadd.f32 %v349_v12, %v317_v17  ;;  %441 = vst [vmem:[%s805_s20 + $0x98] sm:$0xff] %v409_v20  ;;  %v318_v31 = vadd.f32 %v762_v2, %v279_v22  ;;  %v282_v34 = vmul.f32 %v745_v0, %v243_v18 }
  0x32   : > { %442 = vst [vmem:[%s805_s20 + $0xa0] sm:$0xff] %v410_v21  ;;  %v319_v32 = vadd.f32 %v762_v2, %v280_v23  ;;  %v283_v35 = vmul.f32 %v745_v0, %v244_v19  ;;  %v412_v38 = vmax.f32 %v380_v26, 0.0  ;;  %v320_v40 = vadd.f32 %v762_v2, %v281_v30 }
  0x33   : > { %443 = vst [vmem:[%s805_s20 + $0xa8] sm:$0xff] %v411_v25  ;;  %v413_v39 = vmax.f32 %v381_v27, 0.0  ;;  %v284_v43 = vmul.f32 %v745_v0, %v245_v24  ;;  %v382_v44 = vadd.f32 %v350_v28, %v318_v31  ;;  %v321_v46 = vadd.f32 %v762_v2, %v282_v34 }
  0x34   : > { %v383_v45 = vadd.f32 %v351_v29, %v319_v32  ;;  %v322_v47 = vadd.f32 %v762_v2, %v283_v35  ;;  %444 = vst [vmem:[%s805_s20 + $0xb0] sm:$0xff] %v412_v38  ;;  %v384_v49 = vadd.f32 %v352_v33, %v320_v40  ;;  %v285_v51 = vmul.f32 %v745_v0, %v246_v36 }
  0x35   : > { %445 = vst [vmem:[%s805_s20 + $0xb8] sm:$0xff] %v413_v39  ;;  %v323_v50 = vadd.f32 %v762_v2, %v284_v43  ;;  %v286_v52 = vmul.f32 %v745_v0, %v247_v37  ;;  %v414_v53 = vmax.f32 %v382_v44, 0.0  ;;  %v385_v55 = vadd.f32 %v353_v41, %v321_v46 }
  0x36   : > { %v415_v54 = vmax.f32 %v383_v45, 0.0  ;;  %v386_v56 = vadd.f32 %v354_v42, %v322_v47  ;;  %v416_v59 = vmax.f32 %v384_v49, 0.0  ;;  %v324_v61 = vadd.f32 %v762_v2, %v285_v51 }
  0x37   : > { %v387_v60 = vadd.f32 %v355_v48, %v323_v50  ;;  %v325_v62 = vadd.f32 %v762_v2, %v286_v52  ;;  %446 = vst [vmem:[%s805_s20 + $0xc0] sm:$0xff] %v414_v53  ;;  %v417_v0 = vmax.f32 %v385_v55, 0.0 }
  0x38   : > { %447 = vst [vmem:[%s805_s20 + $0xc8] sm:$0xff] %v415_v54  ;;  %v418_v63 = vmax.f32 %v386_v56, 0.0  ;;  %448 = vst [vmem:[%s805_s20 + $0xd0] sm:$0xff] %v416_v59  ;;  %v388_v3 = vadd.f32 %v356_v57, %v324_v61 }
  0x39   : > { %v419_v1 = vmax.f32 %v387_v60, 0.0  ;;  %v389_v4 = vadd.f32 %v357_v58, %v325_v62  ;;  %449 = vst [vmem:[%s805_s20 + $0xd8] sm:$0xff] %v417_v0 }
  0x3a   : > { %450 = vst [vmem:[%s805_s20 + $0xe0] sm:$0xff] %v418_v63  ;;  %v420_v2 = vmax.f32 %v388_v3, 0.0 }
  0x3b   : > { %451 = vst [vmem:[%s805_s20 + $0xe8] sm:$0xff] %v419_v1  ;;  %v421_v5 = vmax.f32 %v389_v4, 0.0 }
  0x3c   : > { %452 = vst [vmem:[%s805_s20 + $0xf0] sm:$0xff] %v420_v2 }
  0x3d   : > { %453 = vst [vmem:[%s805_s20 + $0xf8] sm:$0xff] %v421_v5 }
  0x3e   : > { %615 = shalt.err (!%p612_p3)
}
  0x3f   : > { %s616_s8 = scalar_lea.hbm %s932_s29, 4096  ;;  %s620_s11 = scalar_lea.hbm %s985_s4, 8192 }
  0x40   : > { %p617_p4 = scmp.ne.s32.totalorder %s932_s29, %s616_s8  ;;  %p621_p9 = scmp.lt.s32.totalorder %s932_s29, %s985_s4 }
  0x41   : > { %p622_p10 = scmp.lt.s32.totalorder %s620_s11, %s616_s8 }
  0x42   : > { %p618_p7 = pnand %p617_p4, %p730_p5 }
  0x43   : > { %p623_p11 = por %p622_p10, %p621_p9 }
  0x44   : > { %p619_p8 = pneg %p618_p7 }
  0x46   : > { %p624_p12 = pnand %p623_p11, %p619_p8 }
  0x48   : > { %627 = shalt.err (!%p624_p12)
}
  0x49   : > { %s665_s14 = smov 128   ;;  %s666_s20 = smov 8  }
  0x4a   : > { %561 = dma.vmem_to_hbm [thread:$0]  (%p730_p5), %s934_s23, 4096, %s932_s29, %s941_s19, %s665_s14, %s665_s14, %s666_s20  }
  0x4b PF: > { %p567_p13 = scmp.ge.s32.totalorder %s662_s18, 2  ;;  %s483_s22 = sand.u32 1, %s650_s15  }
  0x4c   : > { %s484_s27 = scalar_lea.sflag [#allocation3], %s483_s22 }
  0x4d   : > { %p564_p0 = pnand %p567_p13, %p734_p6 }
  0x4f   : > { %p565_p1 = pneg %p564_p0 }
  0x51   : > { %645 = dma.done.wait (%p565_p1), %s484_s27, 4096  }
  0x52   : > { %647 = vsyncadd (%p565_p1), %s484_s27, 4294963200  ;;  %p14_p2 = scmp.ge.s32.totalorder %s717_s21, 4   ;;  %s988_s15 = smov %s654_s16 }
  0x53   : > { %s989_s16 = smov %s658_s17  ;;  %s990_s17 = smov %s728_s24 }
  0x54   : > { %s991_s18 = smov %s717_s21  ;;  %16 = sbr.rel (!%p14_p2) target bundleno = 3 (0x3), region = 74 }
  0x59   :  { %489 = vsyncpa [#allocation3], 1 }
  0x5a   :  { %491 = vsyncpa [#allocation3 + $0x1], 1 }

// kernel: resnet50_basic_block.6
= control target key start
LH: loop header
LB: loop body
LE: loop exit
PB: predicated region body
PF: predicated region fallthrough
CT: control target
= control target key end

     0   :  { %s988_s18 = smov 0   ;;  %s1213_s0 = inlined_call_operand.vmem [shape: f32[2,256,32], index: 0, kind: input, shape index: {}]   ;;  %s1214_s1 = inlined_call_operand.vmem [shape: f32[1,32], index: 1, kind: input, shape index: {}]   ;;  %s1215_s2 = inlined_call_operand.vmem [shape: f32[1,32], index: 2, kind: input, shape index: {}]   ;;  %s1216_s3 = inlined_call_operand.vmem [shape: bf16[32,128], index: 3, kind: input, shape index: {}]   ;;  %s1217_s4 = inlined_call_operand.vmem [shape: f32[2,256,128], index: 4, kind: output, shape index: {0}]   ;;  %s1218_s5 = inlined_call_operand.vmem [shape: f32[2,2,128], index: 5, kind: output, shape index: {1}]  }
   0x1 LB: > { %s848_s19 = sadd.s32 4294967295, %s956_s18   ;;  %p852_p0 = scmp.ge.s32.totalorder %s956_s18, 1  ;;  %s956_s18 = sphi %s988_s18, %s16_s18  }
   0x2   : > { %p190_p1 = scmp.lt.s32.totalorder %s956_s18, 3 }
   0x4   : > { %p191_p2 = pnand %p852_p0, %p190_p1 }
   0x5   : > { %p222_p3 = scmp.lt.s32.totalorder (!%p191_p2), %s848_s19, 1 }
   0x6   : > { %194 = sbr.rel (%p191_p2) target bundleno = 301 (0x12d), region = 36 }
   0xb   : > { %v948_v0 = vld [vmem:[%s1216_s3 + $0x8] sm:$0xff]   ;;  %v949_v1 = vld [vmem:[%s1216_s3] sm:$0xff]   ;;  %s1220_s19 = smov (!%p222_p3, %s848_s19), 1  ;;  %vm411_vm0 = vcmask 261120   ;;  %vm759_vm1 = vcmask 1040384  }
   0xc   : > { %900 = vmatprep.subr.bf16.mxu0 %v948_v0  ;;  %936 = vmatprep.subr.bf16.mxu1 %v948_v0  ;;  %s880_s24 = sshll.u32 %s1220_s19, 8  ;;  %v1008_v2 = vld [vmem:[%s1214_s1] ss:$0 sm:$0xff]  ;;  %s857_s10 = sshll.u32 %s1220_s19, 1 }
   0xd   : > { %901 = vmatpush3.bf16.msra.mxu0 %v948_v0  ;;  %938 = vmatpush3.bf16.msra.mxu1 %v948_v0  ;;  %s1015_s29 = scalar_lea.vmem %s1213_s0, %s880_s24  ;;  %v1020_v3 = vld [vmem:[%s1215_s2] ss:$0 sm:$0xff]  ;;  %s1142_s9 = scalar_lea.vmem %s1217_s4, %s880_s24 }
   0xe   : > { %902 = vmatprep.subr.bf16.mxu0 %v949_v1  ;;  %937 = vmatprep.subr.bf16.mxu1 %v949_v1  ;;  %v237_v4 = vld [vmem:[%s1015_s29] sm:$0xff]  ;;  %v238_v5 = vld [vmem:[%s1015_s29 + $0x8] sm:$0xff]  ;;  %v239_v6 = vld [vmem:[%s1015_s29 + $0x10] sm:$0xff]  ;;  %s235_s13 = scalar_lea.vmem %s1218_s5, %s857_s10 }
   0xf   : > { %v276_v7 = vmul.f32 %v1008_v2, %v237_v4  ;;  %v277_v8 = vmul.f32 %v1008_v2, %v238_v5  ;;  %v240_v9 = vld [vmem:[%s1015_s29 + $0x18] sm:$0xff]  ;;  %v278_v10 = vmul.f32 %v1008_v2, %v239_v6  ;;  %v241_v11 = vld [vmem:[%s1015_s29 + $0x20] sm:$0xff]  ;;  %v242_v12 = vld [vmem:[%s1015_s29 + $0x28] sm:$0xff] }
  0x10   : > { %v279_v13 = vmul.f32 %v1008_v2, %v240_v9  ;;  %v280_v14 = vmul.f32 %v1008_v2, %v241_v11  ;;  %v281_v15 = vmul.f32 %v1008_v2, %v242_v12  ;;  %v243_v16 = vld [vmem:[%s1015_s29 + $0x30] sm:$0xff]  ;;  %v244_v17 = vld [vmem:[%s1015_s29 + $0x38] sm:$0xff]  ;;  %v245_v26 = vld [vmem:[%s1015_s29 + $0x40] sm:$0xff] }
  0x11   : > { %903 = vmatpush3.bf16.msra.mxu0 %v949_v1  ;;  %939 = vmatpush3.bf16.msra.mxu1 %v949_v1  ;;  %v315_v18 = vadd.f32 %v1020_v3, %v276_v7  ;;  %v316_v19 = vadd.f32 %v1020_v3, %v277_v8  ;;  %v317_v20 = vadd.f32 %v1020_v3, %v278_v10  ;;  %v246_v27 = vld [vmem:[%s1015_s29 + $0x48] sm:$0xff]  ;;  %v247_v32 = vld [vmem:[%s1015_s29 + $0x50] sm:$0xff]  ;;  %v248_v37 = vld [vmem:[%s1015_s29 + $0x58] sm:$0xff] }
  0x12   : > { %v282_v21 = vmul.f32 %v1008_v2, %v243_v16  ;;  %v318_v22 = vadd.f32 %v1020_v3, %v279_v13  ;;  %v319_v23 = vadd.f32 %v1020_v3, %v280_v14  ;;  %v320_v24 = vadd.f32 %v1020_v3, %v281_v15  ;;  %v249_v38 = vld [vmem:[%s1015_s29 + $0x60] sm:$0xff]  ;;  %v250_v43 = vld [vmem:[%s1015_s29 + $0x68] sm:$0xff]  ;;  %v251_v44 = vld [vmem:[%s1015_s29 + $0x70] sm:$0xff] }
  0x13   : > { %v283_v25 = vmul.f32 %v1008_v2, %v244_v17  ;;  %v347_v28 = vmax.f32 %v315_v18, 0.0  ;;  %v348_v29 = vmax.f32 %v316_v19, 0.0  ;;  %v349_v30 = vmax.f32 %v317_v20, 0.0  ;;  %v252_v53 = vld [vmem:[%s1015_s29 + $0x78] sm:$0xff]  ;;  %v253_v57 = vld [vmem:[%s1015_s29 + $0x80] sm:$0xff]  ;;  %v254_v62 = vld [vmem:[%s1015_s29 + $0x88] sm:$0xff] }
  0x14   : > { %v321_v31 = vadd.f32 %v1020_v3, %v282_v21  ;;  %v350_v33 = vmax.f32 %v318_v22, 0.0  ;;  %v351_v34 = vmax.f32 %v319_v23, 0.0  ;;  %v352_v35 = vmax.f32 %v320_v24, 0.0  ;;  %v255_v1 = vld [vmem:[%s1015_s29 + $0x90] sm:$0xff]  ;;  %v256_v4 = vld [vmem:[%s1015_s29 + $0x98] sm:$0xff]  ;;  %v257_v8 = vld [vmem:[%s1015_s29 + $0xa0] sm:$0xff] }
  0x15   : > { %v322_v36 = vadd.f32 %v1020_v3, %v283_v25  ;;  %v379_v39 = vpack.c.bf16 %v348_v29, %v347_v28  ;;  %v284_v41 = vmul.f32 %v1008_v2, %v245_v26  ;;  %v285_v42 = vmul.f32 %v1008_v2, %v246_v27  ;;  %v258_v13 = vld [vmem:[%s1015_s29 + $0xa8] sm:$0xff]  ;;  %v259_v18 = vld [vmem:[%s1015_s29 + $0xb0] sm:$0xff]  ;;  %v260_v23 = vld [vmem:[%s1015_s29 + $0xb8] sm:$0xff] }
  0x16   : > { %v353_v40 = vmax.f32 %v321_v31, 0.0  ;;  %v380_v45 = vpack.c.bf16 %v350_v33, %v349_v30  ;;  %v381_v46 = vpack.c.bf16 %v352_v35, %v351_v34  ;;  %v286_v48 = vmul.f32 %v1008_v2, %v247_v32  ;;  %v261_v28 = vld [vmem:[%s1015_s29 + $0xc0] sm:$0xff]  ;;  %v262_v33 = vld [vmem:[%s1015_s29 + $0xc8] sm:$0xff] }
  0x17   : > { %v354_v47 = vmax.f32 %v322_v36, 0.0  ;;  %904 = vmatprep.mubr.msk.bf16.mxu0 %vm411_vm0, %v379_v39  ;;  %v323_v49 = vadd.f32 %v1020_v3, %v284_v41  ;;  %v324_v50 = vadd.f32 %v1020_v3, %v285_v42  ;;  %v287_v51 = vmul.f32 %v1008_v2, %v248_v37 }
  0x18   : > { %v288_v52 = vmul.f32 %v1008_v2, %v249_v38  ;;  %905 = vmatmul.mubr.msk.bf16.vlgmr.msra.gmra.mxu0 %vm411_vm0, %v380_v45  ;;  %v325_v54 = vadd.f32 %v1020_v3, %v286_v48  ;;  %v289_v55 = vmul.f32 %v1008_v2, %v250_v43  ;;  %v290_v56 = vmul.f32 %v1008_v2, %v251_v44  ;;  %v263_v38 = vld [vmem:[%s1015_s29 + $0xd0] sm:$0xff]  ;;  %v264_v43 = vld [vmem:[%s1015_s29 + $0xd8] sm:$0xff]  ;;  %v265_v48 = vld [vmem:[%s1015_s29 + $0xe0] sm:$0xff] }
  0x19   : > { %908 = vmatprep.mubr.msk.bf16.mxu0 %vm411_vm0, %v381_v46  ;;  %v355_v58 = vmax.f32 %v323_v49, 0.0  ;;  %v356_v59 = vmax.f32 %v324_v50, 0.0  ;;  %v326_v60 = vadd.f32 %v1020_v3, %v287_v51  ;;  %v291_v0 = vmul.f32 %v1008_v2, %v252_v53  ;;  %v266_v49 = vld [vmem:[%s1015_s29 + $0xe8] sm:$0xff] }
  0x1a   : > { %v327_v61 = vadd.f32 %v1020_v3, %v288_v52  ;;  %v328_v63 = vadd.f32 %v1020_v3, %v289_v55  ;;  %v382_v5 = vpack.c.bf16 %v354_v47, %v353_v40  ;;  %v357_v6 = vmax.f32 %v325_v54, 0.0 }
  0x1b   : > { %v292_v7 = vmul.f32 %v1008_v2, %v253_v57  ;;  %v383_v9 = vpack.c.bf16 %v356_v59, %v355_v58  ;;  %v358_v10 = vmax.f32 %v326_v60, 0.0  ;;  %v1078_v11 = vadd.f32 %v1020_v3, %v290_v56 }
  0x1c   : > { %v293_v12 = vmul.f32 %v1008_v2, %v254_v62  ;;  %v359_v14 = vmax.f32 %v327_v61, 0.0  ;;  %v294_v16 = vmul.f32 %v1008_v2, %v255_v1  ;;  %v295_v17 = vmul.f32 %v1008_v2, %v256_v4 }
  0x1d   : > { %v331_v15 = vadd.f32 %v1020_v3, %v292_v7  ;;  %v360_v19 = vmax.f32 %v328_v63, 0.0  ;;  %v330_v20 = vadd.f32 %v1020_v3, %v291_v0  ;;  %v296_v22 = vmul.f32 %v1008_v2, %v257_v8  ;;  %v267_v8 = vld [vmem:[%s1015_s29 + $0xf0] sm:$0xff] }
  0x1e   : > { %v332_v21 = vadd.f32 %v1020_v3, %v293_v12  ;;  %v333_v25 = vadd.f32 %v1020_v3, %v294_v16  ;;  %v334_v26 = vadd.f32 %v1020_v3, %v295_v17  ;;  %v297_v27 = vmul.f32 %v1008_v2, %v258_v13 }
  0x1f   : > { %v363_v24 = vmax.f32 %v331_v15, 0.0  ;;  %v384_v29 = vpack.c.bf16 %v358_v10, %v357_v6  ;;  %v335_v31 = vadd.f32 %v1020_v3, %v296_v22  ;;  %v298_v32 = vmul.f32 %v1008_v2, %v259_v18 }
  0x20   : > { %909 = vmatmul.mubr.msk.bf16.gmra.mxu0 %vm411_vm0, %v382_v5  ;;  %v364_v30 = vmax.f32 %v332_v21, 0.0  ;;  %v365_v34 = vmax.f32 %v333_v25, 0.0  ;;  %v366_v35 = vmax.f32 %v334_v26, 0.0  ;;  %v336_v36 = vadd.f32 %v1020_v3, %v297_v27 }
  0x21   : > { %912 = vmatprep.mubr.msk.bf16.mxu0 %vm411_vm0, %v383_v9  ;;  %v299_v37 = vmul.f32 %v1008_v2, %v260_v23  ;;  %v367_v40 = vmax.f32 %v335_v31, 0.0  ;;  %v337_v41 = vadd.f32 %v1020_v3, %v298_v32  ;;  %v300_v42 = vmul.f32 %v1008_v2, %v261_v28  ;;  %v268_v9 = vld [vmem:[%s1015_s29 + $0xf8] sm:$0xff] }
  0x22   : > { %v387_v39 = vpack.c.bf16 %v364_v30, %v363_v24  ;;  %v388_v44 = vpack.c.bf16 %v366_v35, %v365_v34  ;;  %v368_v45 = vmax.f32 %v336_v36, 0.0  ;;  %v301_v47 = vmul.f32 %v1008_v2, %v262_v33 }
  0x23   : > { %v338_v46 = vadd.f32 %v1020_v3, %v299_v37  ;;  %v385_v50 = vpack.c.bf16 %v360_v19, %v359_v14  ;;  %v369_v51 = vmax.f32 %v337_v41, 0.0  ;;  %v339_v52 = vadd.f32 %v1020_v3, %v300_v42 }
  0x24   : > { %920 = vmatprep.mubr.msk.bf16.mxu1 %vm411_vm0, %v387_v39  ;;  %v302_v53 = vmul.f32 %v1008_v2, %v263_v38  ;;  %v389_v54 = vpack.c.bf16 %v368_v45, %v367_v40  ;;  %v340_v56 = vadd.f32 %v1020_v3, %v301_v47  ;;  %v303_v57 = vmul.f32 %v1008_v2, %v264_v43 }
  0x25   : > { %921 = vmatmul.mubr.msk.bf16.vlgmr.msra.gmra.mxu1 %vm411_vm0, %v388_v44  ;;  %v370_v55 = vmax.f32 %v338_v46, 0.0  ;;  %v371_v58 = vmax.f32 %v339_v52, 0.0  ;;  %v304_v59 = vmul.f32 %v1008_v2, %v265_v48  ;;  %v305_v60 = vmul.f32 %v1008_v2, %v266_v49 }
  0x26   : > { %924 = vmatprep.mubr.msk.bf16.mxu1 %vm411_vm0, %v389_v54  ;;  %v372_v61 = vmax.f32 %v340_v56, 0.0  ;;  %v361_v62 = vmax.f32 %v1078_v11, 0.0  ;;  %v362_v63 = vmax.f32 %v330_v20, 0.0  ;;  %v341_v1 = vadd.f32 %v1020_v3, %v302_v53 }
  0x27   : > { %v390_v0 = vpack.c.bf16 %v370_v55, %v369_v51  ;;  %v342_v4 = vadd.f32 %v1020_v3, %v303_v57  ;;  %v343_v6 = vadd.f32 %v1020_v3, %v304_v59  ;;  %v344_v7 = vadd.f32 %v1020_v3, %v305_v60 }
  0x28   : > { %913 = vmatmul.mubr.msk.bf16.gmra.mxu0 %vm411_vm0, %v384_v29  ;;  %v391_v5 = vpack.c.bf16 %v372_v61, %v371_v58  ;;  %v386_v10 = vpack.c.bf16 %v362_v63, %v361_v62  ;;  %v373_v12 = vmax.f32 %v341_v1, 0.0  ;;  %v306_v13 = vmul.f32 %v1008_v2, %v267_v8 }
  0x29   : > { %916 = vmatprep.mubr.msk.bf16.mxu0 %vm411_vm0, %v385_v50  ;;  %v374_v11 = vmax.f32 %v342_v4, 0.0  ;;  %v307_v14 = vmul.f32 %v1008_v2, %v268_v9  ;;  %v375_v15 = vmax.f32 %v343_v6, 0.0  ;;  %v376_v16 = vmax.f32 %v344_v7, 0.0 }
  0x2a   : > { %v345_v18 = vadd.f32 %v1020_v3, %v306_v13 }
  0x2b   : > { %v392_v17 = vpack.c.bf16 %v374_v11, %v373_v12  ;;  %v346_v19 = vadd.f32 %v1020_v3, %v307_v14  ;;  %v393_v20 = vpack.c.bf16 %v376_v16, %v375_v15 }
  0x2c   : > { %v377_v21 = vmax.f32 %v345_v18, 0.0 }
  0x2d   : > { %925 = vmatmul.mubr.msk.bf16.gmra.mxu1 %vm411_vm0, %v390_v0  ;;  %v378_v22 = vmax.f32 %v346_v19, 0.0 }
  0x2e   : > { %928 = vmatprep.mubr.msk.bf16.mxu1 %vm411_vm0, %v391_v5 }
  0x2f   : > { %v394_v23 = vpack.c.bf16 %v378_v22, %v377_v21 }
  0x30   : > { %917 = vmatmul.mubr.msk.bf16.gmra.mxu0 %vm411_vm0, %v386_v10 }
  0x35   : > { %929 = vmatmul.mubr.msk.bf16.gmra.mxu1 %vm411_vm0, %v392_v17 }
  0x36   : > { %932 = vmatprep.mubr.msk.bf16.mxu1 %vm411_vm0, %v393_v20 }
  0x3d   : > { %933 = vmatmul.mubr.msk.bf16.gmra.mxu1 %vm411_vm0, %v394_v23 }
  0xd8   : > { %v906_v2 = vpop.f32.mrf.mxu0 }
  0xd9   : > { %623 = vst [vmem:[%s1142_s9 + $0x10] sm:$0xff] %v906_v2  ;;  %v692_v30 = vmul.f32 %v906_v2, %v906_v2 }
  0xda   : > { %v494_v3 = vpop.f32.mrf.mxu0 }
  0xdb   : > { %621 = vst [vmem:[%s1142_s9] sm:$0xff] %v494_v3  ;;  %v690_v26 = vmul.f32 %v494_v3, %v494_v3 }
  0xdc   : > { %v907_v24 = vpop.f32.mrf.mxu0 }
  0xdd   : > { %624 = vst [vmem:[%s1142_s9 + $0x18] sm:$0xff] %v907_v24  ;;  %v693_v34 = vmul.f32 %v907_v24, %v907_v24 }
  0xde   : > { %v497_v25 = vpop.f32.mrf.mxu0 }
  0xdf   : > { %622 = vst [vmem:[%s1142_s9 + $0x8] sm:$0xff] %v497_v25  ;;  %v653_v27 = vadd.f32 %v497_v25, %v494_v3  ;;  %v691_v28 = vmul.f32 %v497_v25, %v497_v25 }
  0xe0   : > { %v910_v29 = vpop.f32.mrf.mxu0 }
  0xe1   : > { %v654_v31 = vadd.f32 %v906_v2, %v653_v27  ;;  %v722_v32 = vadd.f32 %v691_v28, %v690_v26  ;;  %627 = vst [vmem:[%s1142_s9 + $0x30] sm:$0xff] %v910_v29  ;;  %v696_v48 = vmul.f32 %v910_v29, %v910_v29 }
  0xe2   : > { %v510_v33 = vpop.f32.mrf.mxu0 }
  0xe3   : > { %v723_v35 = vadd.f32 %v722_v32, %v692_v30  ;;  %625 = vst [vmem:[%s1142_s9 + $0x20] sm:$0xff] %v510_v33  ;;  %v655_v36 = vadd.f32 %v907_v24, %v654_v31  ;;  %v694_v39 = vmul.f32 %v510_v33, %v510_v33 }
  0xe4   : > { %v911_v37 = vpop.f32.mrf.mxu0 }
  0xe5   : > { %v656_v38 = vadd.f32 %v655_v36, %v510_v33  ;;  %v724_v40 = vadd.f32 %v723_v35, %v693_v34  ;;  %628 = vst [vmem:[%s1142_s9 + $0x38] sm:$0xff] %v911_v37  ;;  %v1151_v41 = vpop.f32.mrf.mxu1  ;;  %v697_v53 = vmul.f32 %v911_v37, %v911_v37 }
  0xe6   : > { %v513_v42 = vpop.f32.mrf.mxu0  ;;  %639 = vst [vmem:[%s1142_s9 + $0x90] sm:$0xff] %v1151_v41 }
  0xe7   : > { %v725_v43 = vadd.f32 %v724_v40, %v694_v39  ;;  %626 = vst [vmem:[%s1142_s9 + $0x28] sm:$0xff] %v513_v42  ;;  %v657_v44 = vadd.f32 %v656_v38, %v513_v42  ;;  %v695_v45 = vmul.f32 %v513_v42, %v513_v42  ;;  %v1156_v46 = vpop.f32.mrf.mxu1  ;;  %v708_v39 = vmul.f32 %v1151_v41, %v1151_v41 }
  0xe8   : > { %v914_v47 = vpop.f32.mrf.mxu0  ;;  %637 = vst [vmem:[%s1142_s9 + $0x80] sm:$0xff] %v1156_v46  ;;  %v706_v31 = vmul.f32 %v1156_v46, %v1156_v46 }
  0xe9   : > { %v658_v49 = vadd.f32 %v910_v29, %v657_v44  ;;  %v726_v50 = vadd.f32 %v725_v43, %v695_v45  ;;  %631 = vst [vmem:[%s1142_s9 + $0x50] sm:$0xff] %v914_v47  ;;  %v1161_v51 = vpop.f32.mrf.mxu1  ;;  %v700_v6 = vmul.f32 %v914_v47, %v914_v47 }
  0xea   : > { %v526_v52 = vpop.f32.mrf.mxu0  ;;  %640 = vst [vmem:[%s1142_s9 + $0x98] sm:$0xff] %v1161_v51  ;;  %v709_v44 = vmul.f32 %v1161_v51, %v1161_v51 }
  0xeb   : > { %v727_v54 = vadd.f32 %v726_v50, %v696_v48  ;;  %629 = vst [vmem:[%s1142_s9 + $0x40] sm:$0xff] %v526_v52  ;;  %v659_v55 = vadd.f32 %v911_v37, %v658_v49  ;;  %v561_v56 = vpop.f32.mrf.mxu1  ;;  %v698_v59 = vmul.f32 %v526_v52, %v526_v52 }
  0xec   : > { %v915_v57 = vpop.f32.mrf.mxu0  ;;  %638 = vst [vmem:[%s1142_s9 + $0x88] sm:$0xff] %v561_v56  ;;  %v707_v36 = vmul.f32 %v561_v56, %v561_v56 }
  0xed   : > { %v660_v58 = vadd.f32 %v659_v55, %v526_v52  ;;  %v728_v60 = vadd.f32 %v727_v54, %v697_v53  ;;  %632 = vst [vmem:[%s1142_s9 + $0x58] sm:$0xff] %v915_v57  ;;  %v1168_v61 = vpop.f32.mrf.mxu1  ;;  %v701_v12 = vmul.f32 %v915_v57, %v915_v57 }
  0xee   : > { %v529_v62 = vpop.f32.mrf.mxu0  ;;  %643 = vst [vmem:[%s1142_s9 + $0xb0] sm:$0xff] %v1168_v61 }
  0xef   : > { %v729_v63 = vadd.f32 %v728_v60, %v698_v59  ;;  %630 = vst [vmem:[%s1142_s9 + $0x48] sm:$0xff] %v529_v62  ;;  %v661_v0 = vadd.f32 %v660_v58, %v529_v62  ;;  %v699_v1 = vmul.f32 %v529_v62, %v529_v62  ;;  %v574_v4 = vpop.f32.mrf.mxu1 }
  0xf0   : > { %v918_v5 = vpop.f32.mrf.mxu0  ;;  %641 = vst [vmem:[%s1142_s9 + $0xa0] sm:$0xff] %v574_v4  ;;  %v710_v49 = vmul.f32 %v574_v4, %v574_v4 }
  0xf1   : > { %v662_v7 = vadd.f32 %v914_v47, %v661_v0  ;;  %v730_v8 = vadd.f32 %v729_v63, %v699_v1  ;;  %635 = vst [vmem:[%s1142_s9 + $0x70] sm:$0xff] %v918_v5  ;;  %v1175_v9 = vpop.f32.mrf.mxu1  ;;  %v704_v3 = vmul.f32 %v918_v5, %v918_v5 }
  0xf2   : > { %v542_v10 = vpop.f32.mrf.mxu0  ;;  %644 = vst [vmem:[%s1142_s9 + $0xb8] sm:$0xff] %v1175_v9 }
  0xf3   : > { %v731_v11 = vadd.f32 %v730_v8, %v700_v6  ;;  %633 = vst [vmem:[%s1142_s9 + $0x60] sm:$0xff] %v542_v10  ;;  %v663_v13 = vadd.f32 %v915_v57, %v662_v7  ;;  %v577_v14 = vpop.f32.mrf.mxu1  ;;  %v702_v17 = vmul.f32 %v542_v10, %v542_v10  ;;  %v713_v57 = vmul.f32 %v1175_v9, %v1175_v9 }
  0xf4   : > { %v919_v15 = vpop.f32.mrf.mxu0  ;;  %642 = vst [vmem:[%s1142_s9 + $0xa8] sm:$0xff] %v577_v14  ;;  %v711_v54 = vmul.f32 %v577_v14, %v577_v14 }
  0xf5   : > { %v664_v16 = vadd.f32 %v663_v13, %v542_v10  ;;  %v732_v18 = vadd.f32 %v731_v11, %v701_v12  ;;  %636 = vst [vmem:[%s1142_s9 + $0x78] sm:$0xff] %v919_v15  ;;  %v930_v19 = vpop.f32.mrf.mxu1  ;;  %v705_v27 = vmul.f32 %v919_v15, %v919_v15 }
  0xf6   : > { %v545_v20 = vpop.f32.mrf.mxu0  ;;  %647 = vst [vmem:[%s1142_s9 + $0xd0] sm:$0xff] %v930_v19 }
  0xf7   : > { %v733_v21 = vadd.f32 %v732_v18, %v702_v17  ;;  %634 = vst [vmem:[%s1142_s9 + $0x68] sm:$0xff] %v545_v20  ;;  %v665_v22 = vadd.f32 %v664_v16, %v545_v20  ;;  %v703_v23 = vmul.f32 %v545_v20, %v545_v20  ;;  %v590_v2 = vpop.f32.mrf.mxu1 }
  0xf8   : > { %645 = vst [vmem:[%s1142_s9 + $0xc0] sm:$0xff] %v590_v2  ;;  %v714_v60 = vmul.f32 %v590_v2, %v590_v2 }
  0xf9   : > { %v666_v24 = vadd.f32 %v918_v5, %v665_v22  ;;  %v734_v25 = vadd.f32 %v733_v21, %v703_v23  ;;  %v931_v26 = vpop.f32.mrf.mxu1 }
  0xfa   : > { %648 = vst [vmem:[%s1142_s9 + $0xd8] sm:$0xff] %v931_v26  ;;  %v717_v7 = vmul.f32 %v931_v26, %v931_v26 }
  0xfb   : > { %v667_v28 = vadd.f32 %v919_v15, %v666_v24  ;;  %v735_v29 = vadd.f32 %v734_v25, %v704_v3  ;;  %v593_v30 = vpop.f32.mrf.mxu1 }
  0xfc   : > { %646 = vst [vmem:[%s1142_s9 + $0xc8] sm:$0xff] %v593_v30  ;;  %v715_v1 = vmul.f32 %v593_v30, %v593_v30 }
  0xfd   : > { %v736_v32 = vadd.f32 %v735_v29, %v705_v27  ;;  %v668_v33 = vadd.f32 %v667_v28, %v1156_v46  ;;  %v934_v34 = vpop.f32.mrf.mxu1 }
  0xfe   : > { %651 = vst [vmem:[%s1142_s9 + $0xf0] sm:$0xff] %v934_v34  ;;  %v720_v16 = vmul.f32 %v934_v34, %v934_v34 }
  0xff   : > { %v669_v35 = vadd.f32 %v668_v33, %v561_v56  ;;  %v737_v37 = vadd.f32 %v736_v32, %v706_v31  ;;  %v606_v38 = vpop.f32.mrf.mxu1 }
 0x100   : > { %649 = vst [vmem:[%s1142_s9 + $0xe0] sm:$0xff] %v606_v38  ;;  %v718_v12 = vmul.f32 %v606_v38, %v606_v38 }
 0x101   : > { %v670_v40 = vadd.f32 %v1151_v41, %v669_v35  ;;  %v738_v42 = vadd.f32 %v737_v37, %v707_v36  ;;  %v935_v43 = vpop.f32.mrf.mxu1  ;;  %v712_v41 = vmul.f32 %v1168_v61, %v1168_v61 }
 0x102   : > { %652 = vst [vmem:[%s1142_s9 + $0xf8] sm:$0xff] %v935_v43  ;;  %v721_v18 = vmul.f32 %v935_v43, %v935_v43 }
 0x103   : > { %v739_v45 = vadd.f32 %v738_v42, %v708_v39  ;;  %v671_v46 = vadd.f32 %v1161_v51, %v670_v40  ;;  %v609_v47 = vpop.f32.mrf.mxu1 }
 0x104   : > { %650 = vst [vmem:[%s1142_s9 + $0xe8] sm:$0xff] %v609_v47  ;;  %v719_v15 = vmul.f32 %v609_v47, %v609_v47 }
 0x105   : > { %v672_v48 = vadd.f32 %v671_v46, %v574_v4  ;;  %v740_v50 = vadd.f32 %v739_v45, %v709_v44  ;;  %v716_v4 = vmul.f32 %v930_v19, %v930_v19 }
 0x107   : > { %v741_v52 = vadd.f32 %v740_v50, %v710_v49  ;;  %v673_v53 = vadd.f32 %v672_v48, %v577_v14 }
 0x109   : > { %v674_v55 = vadd.f32 %v1168_v61, %v673_v53  ;;  %v742_v56 = vadd.f32 %v741_v52, %v711_v54 }
 0x10b   : > { %v743_v58 = vadd.f32 %v742_v56, %v712_v41  ;;  %v675_v51 = vadd.f32 %v1175_v9, %v674_v55 }
 0x10d   : > { %v676_v59 = vadd.f32 %v675_v51, %v590_v2  ;;  %v744_v62 = vadd.f32 %v743_v58, %v713_v57 }
 0x10f   : > { %v745_v63 = vadd.f32 %v744_v62, %v714_v60  ;;  %v677_v0 = vadd.f32 %v676_v59, %v593_v30 }
 0x111   : > { %v678_v5 = vadd.f32 %v930_v19, %v677_v0  ;;  %v746_v6 = vadd.f32 %v745_v63, %v715_v1 }
 0x113   : > { %v747_v8 = vadd.f32 %v746_v6, %v716_v4  ;;  %v679_v10 = vadd.f32 %v931_v26, %v678_v5 }
 0x115   : > { %v680_v61 = vadd.f32 %v679_v10, %v606_v38  ;;  %v748_v11 = vadd.f32 %v747_v8, %v717_v7 }
 0x117   : > { %v749_v13 = vadd.f32 %v748_v11, %v718_v12  ;;  %v681_v14 = vadd.f32 %v680_v61, %v609_v47 }
 0x119   : > { %v682_v9 = vadd.f32 %v934_v34, %v681_v14  ;;  %v750_v17 = vadd.f32 %v749_v13, %v719_v15 }
 0x11b   : > { %v683_v20 = vadd.f32 %v935_v43, %v682_v9  ;;  %v751_v21 = vadd.f32 %v750_v17, %v720_v16 }
 0x11d   : > { %v684_v22 = vrot.slane %v683_v20, 4  ;;  %v752_v23 = vadd.f32 %v751_v21, %v721_v18 }
 0x11f   : > { %v685_v19 = vadd.f32 %v684_v22, %v683_v20  ;;  %v753_v2 = vrot.slane %v752_v23, 4 }
 0x121   : > { %v686_v3 = vrot.slane %v685_v19, 2  ;;  %v754_v24 = vadd.f32 %v753_v2, %v752_v23 }
 0x123   : > { %v687_v25 = vadd.f32 %v686_v3, %v685_v19  ;;  %v755_v26 = vrot.slane %v754_v24, 2 }
 0x125   : > { %v688_v27 = vrot.slane %v687_v25, 1  ;;  %v756_v28 = vadd.f32 %v755_v26, %v754_v24 }
 0x127   : > { %v757_v29 = vrot.slane %v756_v28, 1  ;;  %v689_v30 = vadd.f32 %v688_v27, %v687_v25 }
 0x129   : > { %v758_v31 = vadd.f32 %v757_v29, %v756_v28 }
 0x12b   : > { %v760_v32 = vsel %vm759_vm1, %v689_v30, %v758_v31 }
 0x12c   : > { %761 = vst [vmem:[%s235_s13] sm:$0x3] %v760_v32 }
 0x12d PF: > { %s16_s18 = sadd.s32 1, %s956_s18  }
 0x12e   : > { %p13_p4 = scmp.ge.s32.totalorder %s16_s18, 4  }
 0x130   :  { %15 = sbr.rel (!%p13_p4) target bundleno = 1 (0x1), region = 78 }

// kernel: resnet50_basic_block.5
= control target key start
LH: loop header
LB: loop body
LE: loop exit
PB: predicated region body
PF: predicated region fallthrough
CT: control target
= control target key end

     0   :  { %s2083_s18 = smov 0   ;;  %s3049_s0 = inlined_call_operand.vmem [shape: f32[2,16,16,32], index: 0, kind: input, shape index: {}]   ;;  %s3050_s1 = inlined_call_operand.vmem [shape: f32[1,32], index: 1, kind: input, shape index: {}]   ;;  %s3051_s2 = inlined_call_operand.vmem [shape: f32[1,32], index: 2, kind: input, shape index: {}]   ;;  %s3052_s3 = inlined_call_operand.vmem [shape: bf16[288,32], index: 3, kind: input, shape index: {}]   ;;  %s3053_s4 = inlined_call_operand.vmem [shape: f32[2,256,32], index: 4, kind: output, shape index: {0}]   ;;  %s3054_s5 = inlined_call_operand.vmem [shape: f32[2,2,32], index: 5, kind: output, shape index: {1}]  }
   0x1 LB: > { %s1779_s19 = sadd.s32 4294967295, %s2047_s18   ;;  %p1783_p0 = scmp.ge.s32.totalorder %s2047_s18, 1  ;;  %s2047_s18 = sphi %s2083_s18, %s16_s18  }
   0x2   : > { %p190_p1 = scmp.lt.s32.totalorder %s2047_s18, 3 }
   0x4   : > { %p191_p2 = pnand %p1783_p0, %p190_p1 }
   0x5   : > { %p222_p3 = scmp.lt.s32.totalorder (!%p191_p2), %s1779_s19, 1  ;;  %s2049_s28 = smov (!%p191_p2), 32  }
   0x6   : > { %194 = sbr.rel (%p191_p2) target bundleno = 638 (0x27e), region = 36  ;;  %s2050_s29 = smov (!%p191_p2), 64  }
   0x7   : > { %s2052_s16 = smov (!%p191_p2), 96  }
   0xb   : > { %s3060_s19 = smov (!%p222_p3, %s1779_s19), 1  ;;  %v2096_v0 = vld [vmem:[%s3050_s1] ss:$0 sm:$0xff]  ;;  %vm602_vm0 = vcmask 1047552   ;;  %vm603_vm1 = vsmask.f32 7424 }
   0xc   : > { %s1827_s22 = sshll.u32 %s3060_s19, 8  ;;  %v2102_v1 = vld [vmem:[%s3051_s2] ss:$0 sm:$0xff]  ;;  %vm2161_vm2 = vmand %vm602_vm0, %vm603_vm1  ;;  %vm531_vm3 = vcmask 1040384   ;;  %vm532_vm4 = vsmask.f32 256 }
   0xd   : > { %s2109_s27 = scalar_lea.vmem %s3049_s0, %s1827_s22  ;;  %vm2468_vm5 = vmand %vm531_vm3, %vm532_vm4  ;;  %vm724_vm6 = vcmask 261120   ;;  %vm776_vm7 = vcmask 523264   ;;  %vm892_vm8 = vcmask 785408   ;;  %s2835_s25 = scalar_lea.vmem %s3053_s4, %s1827_s22  ;;  %vm1691_vm9 = vcmask 254976  }
   0xe   : > { %v237_v2 = vld [vmem:[%s2109_s27] sm:$0xff]  ;;  %v238_v3 = vld [vmem:[%s2109_s27 + $0x8] sm:$0xff]  ;;  %v239_v4 = vld [vmem:[%s2109_s27 + $0x10] sm:$0xff]  ;;  %s1788_s22 = sshll.u32 %s3060_s19, 1 }
   0xf   : > { %v276_v5 = vmul.f32 %v2096_v0, %v237_v2  ;;  %v277_v6 = vmul.f32 %v2096_v0, %v238_v3  ;;  %v240_v7 = vld [vmem:[%s2109_s27 + $0x18] sm:$0xff]  ;;  %v278_v8 = vmul.f32 %v2096_v0, %v239_v4  ;;  %v241_v9 = vld [vmem:[%s2109_s27 + $0x20] sm:$0xff]  ;;  %v242_v10 = vld [vmem:[%s2109_s27 + $0x28] sm:$0xff]  ;;  %s235_s30 = scalar_lea.vmem %s3054_s5, %s1788_s22 }
  0x10   : > { %v279_v11 = vmul.f32 %v2096_v0, %v240_v7  ;;  %v280_v12 = vmul.f32 %v2096_v0, %v241_v9  ;;  %v281_v13 = vmul.f32 %v2096_v0, %v242_v10  ;;  %v261_v14 = vld [vmem:[%s2109_s27 + $0xc0] sm:$0xff]  ;;  %v262_v15 = vld [vmem:[%s2109_s27 + $0xc8] sm:$0xff]  ;;  %v263_v24 = vld [vmem:[%s2109_s27 + $0xd0] sm:$0xff] }
  0x11   : > { %v315_v16 = vadd.f32 %v2102_v1, %v276_v5  ;;  %v316_v17 = vadd.f32 %v2102_v1, %v277_v6  ;;  %v317_v18 = vadd.f32 %v2102_v1, %v278_v8  ;;  %v300_v19 = vmul.f32 %v2096_v0, %v261_v14  ;;  %v264_v25 = vld [vmem:[%s2109_s27 + $0xd8] sm:$0xff]  ;;  %v243_v45 = vld [vmem:[%s2109_s27 + $0x30] sm:$0xff]  ;;  %v265_v58 = vld [vmem:[%s2109_s27 + $0xe0] sm:$0xff] }
  0x12   : > { %v318_v20 = vadd.f32 %v2102_v1, %v279_v11  ;;  %v319_v21 = vadd.f32 %v2102_v1, %v280_v12  ;;  %v320_v22 = vadd.f32 %v2102_v1, %v281_v13  ;;  %v301_v23 = vmul.f32 %v2096_v0, %v262_v15  ;;  %v244_v52 = vld [vmem:[%s2109_s27 + $0x38] sm:$0xff]  ;;  %v266_v63 = vld [vmem:[%s2109_s27 + $0xe8] sm:$0xff]  ;;  %v245_v5 = vld [vmem:[%s2109_s27 + $0x40] sm:$0xff] }
  0x13   : > { %v347_v26 = vmax.f32 %v315_v16, 0.0  ;;  %v348_v27 = vmax.f32 %v316_v17, 0.0  ;;  %v349_v28 = vmax.f32 %v317_v18, 0.0  ;;  %v339_v29 = vadd.f32 %v2102_v1, %v300_v19  ;;  %v246_v9 = vld [vmem:[%s2109_s27 + $0x48] sm:$0xff]  ;;  %v267_v13 = vld [vmem:[%s2109_s27 + $0xf0] sm:$0xff] }
  0x14   : > { %v350_v30 = vmax.f32 %v318_v20, 0.0  ;;  %v351_v31 = vmax.f32 %v319_v21, 0.0  ;;  %v352_v32 = vmax.f32 %v320_v22, 0.0  ;;  %v340_v33 = vadd.f32 %v2102_v1, %v301_v23  ;;  %v268_v22 = vld [vmem:[%s2109_s27 + $0xf8] sm:$0xff] }
  0x15   : > { %v2137_v34 = vpack.c.bf16 %v348_v27, %v347_v26  ;;  %v371_v35 = vmax.f32 %v339_v29, 0.0  ;;  %v302_v36 = vmul.f32 %v2096_v0, %v263_v24  ;;  %v303_v37 = vmul.f32 %v2096_v0, %v264_v25  ;;  %v247_v26 = vld [vmem:[%s2109_s27 + $0x50] sm:$0xff] }
  0x16   : > { %v2141_v38 = vpack.c.bf16 %v350_v30, %v349_v28  ;;  %v2143_v39 = vpack.c.bf16 %v352_v32, %v351_v31  ;;  %v372_v40 = vmax.f32 %v340_v33, 0.0  ;;  %v282_v57 = vmul.f32 %v2096_v0, %v243_v45 }
  0x17   : > { %641 = vrot.lane.b32.xlu0 %v2137_v34, %s2049_s28  ;;  %v403_v41 = vshrl.u32 %v2137_v34, 16  ;;  %v406_v42 = vshll.u32 %v2137_v34, 16  ;;  %v341_v43 = vadd.f32 %v2102_v1, %v302_v36  ;;  %v342_v44 = vadd.f32 %v2102_v1, %v303_v37 }
  0x18   : > { %v410_v46 = vshrl.u32 %v2141_v38, 16  ;;  %v413_v47 = vshll.u32 %v2141_v38, 16  ;;  %v2154_v48 = vpack.c.bf16 %v372_v40, %v371_v35  ;;  %v417_v61 = vshrl.u32 %v2143_v39, 16 }
  0x19   : > { %v553_v49 = vrot.slane %v406_v42, 1  ;;  %v373_v50 = vmax.f32 %v341_v43, 0.0  ;;  %v374_v51 = vmax.f32 %v342_v44, 0.0  ;;  %v420_v62 = vshll.u32 %v2143_v39, 16  ;;  %v248_v44 = vld [vmem:[%s2109_s27 + $0x58] sm:$0xff] }
  0x1a   : > { %v555_v54 = vrot.slane %v413_v47, 1  ;;  %v487_v55 = vshrl.u32 %v2154_v48, 16  ;;  %v490_v56 = vshll.u32 %v2154_v48, 16  ;;  %v283_v4 = vmul.f32 %v2096_v0, %v244_v52 }
  0x1b   : > { %643 = vrot.lane.b32.xlu0 %v2141_v38, %s2049_s28  ;;  %v554_v59 = vor.u32 %v553_v49, %v403_v41  ;;  %v2175_v60 = vpack.c.bf16 %v374_v51, %v373_v50  ;;  %v557_v7 = vrot.slane %v420_v62, 1  ;;  %v321_v11 = vadd.f32 %v2102_v1, %v282_v57 }
  0x1c   : > { %v556_v2 = vor.u32 %v555_v54, %v410_v46  ;;  %v577_v3 = vrot.slane %v490_v56, 1  ;;  %v322_v12 = vadd.f32 %v2102_v1, %v283_v4  ;;  %v304_v17 = vmul.f32 %v2096_v0, %v265_v58 }
  0x1d   : > { %v606_v6 = vsel %vm2161_vm2, %v554_v59, 0  ;;  %v497_v8 = vshll.u32 %v2175_v60, 16  ;;  %v558_v15 = vor.u32 %v557_v7, %v417_v61  ;;  %v494_v16 = vshrl.u32 %v2175_v60, 16  ;;  %v249_v59 = vld [vmem:[%s2109_s27 + $0x60] sm:$0xff] }
  0x1e   : > { %692 = vrot.lane.b32.xlu1 %v606_v6, %s2050_s29  ;;  %v578_v10 = vor.u32 %v577_v3, %v487_v55  ;;  %v607_v14 = vsel %vm2161_vm2, %v556_v2, 0  ;;  %v353_v19 = vmax.f32 %v321_v11, 0.0  ;;  %v354_v20 = vmax.f32 %v322_v12, 0.0 }
  0x1f   : > { %645 = vrot.lane.b32.xlu0 %v2143_v39, %s2049_s28  ;;  %v579_v18 = vrot.slane %v497_v8, 1  ;;  %v305_v21 = vmul.f32 %v2096_v0, %v266_v63  ;;  %v343_v24 = vadd.f32 %v2102_v1, %v304_v17  ;;  %v284_v25 = vmul.f32 %v2096_v0, %v245_v5 }
  0x20   : > { %v618_v23 = vsel %vm2161_vm2, %v578_v10, 0  ;;  %v2216_v27 = vpack.c.bf16 %v354_v20, %v353_v19  ;;  %v285_v29 = vmul.f32 %v2096_v0, %v246_v9  ;;  %v306_v30 = vmul.f32 %v2096_v0, %v267_v13  ;;  %v250_v10 = vld [vmem:[%s2109_s27 + $0x68] sm:$0xff]  ;;  %v251_v20 = vld [vmem:[%s2109_s27 + $0x70] sm:$0xff] }
  0x21   : > { %v344_v28 = vadd.f32 %v2102_v1, %v305_v21  ;;  %v608_v31 = vsel %vm2161_vm2, %v558_v15, 0  ;;  %v375_v32 = vmax.f32 %v343_v24, 0.0  ;;  %v323_v33 = vadd.f32 %v2102_v1, %v284_v25 }
  0x22   : > { %694 = vrot.lane.b32.xlu1 %v607_v14, %s2050_s29  ;;  %v307_v35 = vmul.f32 %v2096_v0, %v268_v22  ;;  %v580_v36 = vor.u32 %v579_v18, %v494_v16  ;;  %v427_v37 = vshll.u32 %v2216_v27, 16  ;;  %v324_v43 = vadd.f32 %v2102_v1, %v285_v29 }
  0x23   : > { %665 = vrot.lane.b32.xlu0 %v2154_v48, %s2049_s28  ;;  %v376_v40 = vmax.f32 %v344_v28, 0.0  ;;  %v355_v45 = vmax.f32 %v323_v33, 0.0  ;;  %v345_v49 = vadd.f32 %v2102_v1, %v306_v30  ;;  %v286_v51 = vmul.f32 %v2096_v0, %v247_v26  ;;  %v252_v26 = vld [vmem:[%s2109_s27 + $0x78] sm:$0xff]  ;;  %v253_v28 = vld [vmem:[%s2109_s27 + $0x80] sm:$0xff] }
  0x24   : > { %v346_v50 = vadd.f32 %v2102_v1, %v307_v35  ;;  %v424_v52 = vshrl.u32 %v2216_v27, 16  ;;  %v559_v54 = vrot.slane %v427_v37, 1  ;;  %v356_v58 = vmax.f32 %v324_v43, 0.0  ;;  %v254_v43 = vld [vmem:[%s2109_s27 + $0x88] sm:$0xff] }
  0x25   : > { %v2240_v57 = vpack.c.bf16 %v376_v40, %v375_v32  ;;  %v377_v63 = vmax.f32 %v345_v49, 0.0  ;;  %v287_v3 = vmul.f32 %v2096_v0, %v248_v44  ;;  %v325_v4 = vadd.f32 %v2102_v1, %v286_v51 }
  0x26   : > { %667 = vrot.lane.b32.xlu1 %v2175_v60, %s2049_s28  ;;  %v378_v2 = vmax.f32 %v346_v50, 0.0  ;;  %v2247_v6 = vpack.c.bf16 %v356_v58, %v355_v45  ;;  %v288_v11 = vmul.f32 %v2096_v0, %v249_v59  ;;  %v619_v12 = vsel %vm2161_vm2, %v580_v36, 0  ;;  %v255_v58 = vld [vmem:[%s2109_s27 + $0x90] sm:$0xff] }
  0x27   : > { %716 = vrot.lane.b32.xlu0 %v618_v23, %s2050_s29  ;;  %v504_v5 = vshll.u32 %v2240_v57, 16  ;;  %v326_v7 = vadd.f32 %v2102_v1, %v287_v3  ;;  %v357_v9 = vmax.f32 %v325_v4, 0.0  ;;  %v560_v13 = vor.u32 %v559_v54, %v424_v52  ;;  %v256_v4 = vld [vmem:[%s2109_s27 + $0x98] sm:$0xff] }
  0x28   : > { %v2257_v14 = vpack.c.bf16 %v378_v2, %v377_v63  ;;  %v501_v15 = vshrl.u32 %v2240_v57, 16  ;;  %v434_v18 = vshll.u32 %v2247_v6, 16  ;;  %v289_v21 = vmul.f32 %v2096_v0, %v250_v10 }
  0x29   : > { %v581_v17 = vrot.slane %v504_v5, 1  ;;  %v358_v19 = vmax.f32 %v326_v7, 0.0  ;;  %v327_v22 = vadd.f32 %v2102_v1, %v288_v11  ;;  %v2051_v24 = vmov 0  }
  0x2a   : > { %696 = vrot.lane.b32.xlu1 %v608_v31, %s2050_s29  ;;  %v2271_v25 = vrot.slane %v2051_v24, 1  ;;  %v609_v29 = vsel %vm2161_vm2, %v560_v13, 0  ;;  %v511_v30 = vshll.u32 %v2257_v14, 16  ;;  %v328_v31 = vadd.f32 %v2102_v1, %v289_v21 }
  0x2b   : > { %647 = vrot.lane.b32.xlu0 %v2216_v27, %s2049_s28  ;;  %v2268_v23 = vpack.c.bf16 %v358_v19, %v357_v9  ;;  %v290_v32 = vmul.f32 %v2096_v0, %v251_v20  ;;  %v582_v33 = vor.u32 %v581_v17, %v501_v15  ;;  %v431_v35 = vshrl.u32 %v2247_v6, 16 }
  0x2c   : > { %v561_v36 = vrot.slane %v434_v18, 1  ;;  %v359_v40 = vmax.f32 %v327_v22, 0.0  ;;  %v360_v45 = vmax.f32 %v328_v31, 0.0  ;;  %v291_v49 = vmul.f32 %v2096_v0, %v252_v26 }
  0x2d   : > { %v441_v44 = vshll.u32 %v2268_v23, 16  ;;  %v292_v50 = vmul.f32 %v2096_v0, %v253_v28  ;;  %v605_v51 = vsel %vm2161_vm2, %v2271_v25, 0  ;;  %v329_v54 = vadd.f32 %v2102_v1, %v290_v32 }
  0x2e   : > { %718 = vrot.lane.b32.xlu1 %v619_v12, %s2050_s29  ;;  %v508_v59 = vshrl.u32 %v2257_v14, 16  ;;  %v583_v63 = vrot.slane %v511_v30, 1  ;;  %v330_v2 = vadd.f32 %v2102_v1, %v291_v49  ;;  %v293_v3 = vmul.f32 %v2096_v0, %v254_v43 }
  0x2f   : > { %669 = vrot.lane.b32.xlu0 %v2240_v57, %s2049_s28  ;;  %v405_v7 = vrot.slane %v403_v41, 7  ;;  %v620_v9 = vsel %vm2161_vm2, %v582_v33, 0  ;;  %v562_v10 = vor.u32 %v561_v36, %v431_v35  ;;  %v2310_v11 = vpack.c.bf16 %v360_v45, %v359_v40  ;;  %v257_v41 = vld [vmem:[%s2109_s27 + $0xa0] sm:$0xff]  ;;  %v258_v33 = vld [vmem:[%s2109_s27 + $0xa8] sm:$0xff] }
  0x30   : > { %v438_v12 = vshrl.u32 %v2268_v23, 16  ;;  %v563_v13 = vrot.slane %v441_v44, 1  ;;  %v331_v17 = vadd.f32 %v2102_v1, %v292_v50  ;;  %v294_v19 = vmul.f32 %v2096_v0, %v255_v58 }
  0x31   : > { %v361_v20 = vmax.f32 %v329_v54, 0.0  ;;  %v362_v21 = vmax.f32 %v330_v2, 0.0  ;;  %v332_v22 = vadd.f32 %v2102_v1, %v293_v3  ;;  %v295_v26 = vmul.f32 %v2096_v0, %v256_v4 }
  0x32   : > { %698 = vrot.lane.b32.xlu1 %v609_v29, %s2050_s29  ;;  %v412_v28 = vrot.slane %v410_v46, 7  ;;  %v489_v29 = vrot.slane %v487_v55, 7  ;;  %v419_v31 = vrot.slane %v417_v61, 7  ;;  %v584_v32 = vor.u32 %v583_v63, %v508_v59 }
  0x33   : > { %649 = vrot.lane.b32.xlu0 %v2247_v6, %s2049_s28  ;;  %v610_v36 = vsel %vm2161_vm2, %v562_v10, 0  ;;  %v448_v40 = vshll.u32 %v2310_v11, 16  ;;  %v2335_v46 = vor.u32 %v406_v42, %v405_v7  ;;  %v296_v55 = vmul.f32 %v2096_v0, %v257_v41 }
  0x34   : > { %v496_v61 = vrot.slane %v494_v16, 7  ;;  %v564_v43 = vor.u32 %v563_v13, %v438_v12  ;;  %v363_v45 = vmax.f32 %v331_v17, 0.0  ;;  %v333_v49 = vadd.f32 %v2102_v1, %v294_v19 }
  0x35   : > { %v2341_v50 = vpack.c.bf16 %v362_v21, %v361_v20  ;;  %v364_v54 = vmax.f32 %v332_v22, 0.0  ;;  %v334_v58 = vadd.f32 %v2102_v1, %v295_v26  ;;  %v297_v34 = vmul.f32 %v2096_v0, %v258_v33 }
  0x36   : > { %720 = vrot.lane.b32.xlu1 %v620_v9, %s2050_s29  ;;  %v426_v42 = vrot.slane %v424_v52, 7  ;;  %v503_v63 = vrot.slane %v501_v15, 7  ;;  %v433_v16 = vrot.slane %v431_v35, 7  ;;  %v335_v2 = vadd.f32 %v2102_v1, %v296_v55  ;;  %v259_v9 = vld [vmem:[%s2109_s27 + $0xb0] sm:$0xff]  ;;  %v260_v15 = vld [vmem:[%s2109_s27 + $0xb8] sm:$0xff] }
  0x37   : > { %671 = vrot.lane.b32.xlu0 %v2257_v14, %s2049_s28  ;;  %v621_v3 = vsel %vm2161_vm2, %v584_v32, 0  ;;  %v445_v4 = vshrl.u32 %v2310_v11, 16  ;;  %v565_v7 = vrot.slane %v448_v40, 1  ;;  %v336_v52 = vadd.f32 %v2102_v1, %v297_v34 }
  0x38   : > { %v510_v35 = vrot.slane %v508_v59, 7  ;;  %v440_v10 = vrot.slane %v438_v12, 7  ;;  %v611_v13 = vsel %vm2161_vm2, %v564_v43, 0  ;;  %v2365_v17 = vor.u32 %v413_v47, %v412_v28 }
  0x39   : > { %v455_v19 = vshll.u32 %v2341_v50, 16  ;;  %v2368_v41 = vpack.c.bf16 %v364_v54, %v363_v45  ;;  %v365_v20 = vmax.f32 %v333_v49, 0.0  ;;  %v366_v21 = vmax.f32 %v334_v58, 0.0 }
  0x3a   : > { %700 = vrot.lane.b32.xlu1 %v610_v36, %s2050_s29  ;;  %v367_v22 = vmax.f32 %v335_v2, 0.0  ;;  %v368_v26 = vmax.f32 %v336_v52, 0.0  ;;  %v298_v59 = vmul.f32 %v2096_v0, %v259_v9  ;;  %v299_v12 = vmul.f32 %v2096_v0, %v260_v15 }
  0x3b   : > { %651 = vrot.lane.b32.xlu0 %v2268_v23, %s2049_s28  ;;  %v447_v38 = vrot.slane %v445_v4, 7  ;;  %v566_v47 = vor.u32 %v565_v7, %v445_v4  ;;  %v452_v28 = vshrl.u32 %v2341_v50, 16  ;;  %v2378_v32 = vor.u32 %v420_v62, %v419_v31 }
  0x3c   : > { %v337_v33 = vadd.f32 %v2102_v1, %v298_v59  ;;  %v338_v36 = vadd.f32 %v2102_v1, %v299_v12  ;;  %v2384_v55 = vor.u32 %v490_v56, %v489_v29  ;;  %v2388_v0 = vor.u32 %v497_v8, %v496_v61  ;;  %v2029_v59 = vld [vmem:[%s3052_s3 + $0x60] sm:$0xff]  }
  0x3d   : > { %v454_v43 = vrot.slane %v452_v28, 7  ;;  %v567_v45 = vrot.slane %v455_v19, 1  ;;  %v459_v49 = vshrl.u32 %v2368_v41, 16  ;;  %v388_v39 = vpack.c.bf16 %v366_v21, %v365_v20  ;;  %v2027_v20 = vld [vmem:[%s3052_s3 + $0x68] sm:$0xff]  }
  0x3e   : > { %722 = vrot.lane.b32.xlu1 %v621_v3, %s2050_s29  ;;  %v462_v62 = vshll.u32 %v2368_v41, 16  ;;  %v2393_v31 = vpack.c.bf16 %v368_v26, %v367_v22  ;;  %v369_v1 = vmax.f32 %v337_v33, 0.0  ;;  %v370_v54 = vmax.f32 %v338_v36, 0.0  ;;  %v2028_v26 = vld [vmem:[%s3052_s3 + $0x28] sm:$0xff]   ;;  %v2033_v33 = vld [vmem:[%s3052_s3 + $0x50] sm:$0xff]  }
  0x3f   : > { %639 = vrot.lane.b32.xlu0 %v2051_v24, %s2049_s28  ;;  %v461_v48 = vrot.slane %v459_v49, 7  ;;  %v466_v56 = vshrl.u32 %v388_v39, 16  ;;  %v2399_v60 = vor.u32 %v427_v37, %v426_v42  ;;  %v2403_v8 = vor.u32 %v504_v5, %v503_v63  ;;  %v2034_v36 = vld [vmem:[%s3052_s3 + $0x10] sm:$0xff]  }
  0x40   : > { %v2405_v29 = vpack.c.bf16 %v370_v54, %v369_v1  ;;  %v473_v61 = vshrl.u32 %v2393_v31, 16  ;;  %v2410_v58 = vor.u32 %v434_v18, %v433_v16  ;;  %v2414_v34 = vor.u32 %v511_v30, %v510_v35 }
  0x41   : > { %v612_v27 = vsel %vm2161_vm2, %v566_v47, 0  ;;  %v468_v37 = vrot.slane %v466_v56, 7  ;;  %v2420_v57 = vor.u32 %v441_v44, %v440_v10  ;;  %v469_v5 = vshll.u32 %v388_v39, 16  ;;  %v2031_v47 = vld [vmem:[%s3052_s3 + $0x58] sm:$0xff]  }
  0x42   : > { %702 = vrot.lane.b32.xlu1 %v611_v13, %s2050_s29  ;;  %v475_v6 = vrot.slane %v473_v61, 7  ;;  %v480_v14 = vshrl.u32 %v2405_v29, 16  ;;  %v483_v18 = vshll.u32 %v2405_v29, 16  ;;  %v568_v23 = vor.u32 %v567_v45, %v452_v28  ;;  %v2032_v28 = vld [vmem:[%s3052_s3 + $0x18] sm:$0xff]   ;;  %v2036_v45 = vld [vmem:[%s3052_s3 + $0x8] sm:$0xff]  }
  0x43   : > { %653 = vrot.lane.b32.xlu0 %v2310_v11, %s2049_s28  ;;  %v569_v30 = vrot.slane %v462_v62, 1  ;;  %v2435_v44 = vor.u32 %v448_v40, %v447_v38  ;;  %v2437_v42 = vor.u32 %v455_v19, %v454_v43  ;;  %v476_v25 = vshll.u32 %v2393_v31, 16  ;;  %v2023_v11 = vld [vmem:[%s3052_s3 + $0x78] sm:$0xff]   ;;  %v2030_v38 = vld [vmem:[%s3052_s3 + $0x20] sm:$0xff]   ;;  %v2035_v43 = vld [vmem:[%s3052_s3 + $0x48] sm:$0xff]  }
  0x44   : > { %v575_v63 = vrot.slane %v483_v18, 1  ;;  %v2440_v16 = vor.u32 %v462_v62, %v461_v48  ;;  %v2442_v2 = vor.u32 %v469_v5, %v468_v37  ;;  %v2024_v40 = vld [vmem:[%s3052_s3 + $0x38] sm:$0xff]   ;;  %v613_v52 = vsel %vm2161_vm2, %v568_v23, 0  ;;  %1829 = vmatprep.subr.bf16.mxu0 %v2023_v11  ;;  %1995 = vmatprep.subr.bf16.mxu1 %v2023_v11 }
  0x45   : > { %v2458_v4 = vor.u32 %v476_v25, %v475_v6  ;;  %v570_v9 = vor.u32 %v569_v30, %v459_v49  ;;  %v571_v15 = vrot.slane %v469_v5, 1  ;;  %1830 = vmatpush3.bf16.msra.mxu0 %v2024_v40  ;;  %2003 = vmatpush3.bf16.msra.mxu1 %v2024_v40  ;;  %v2037_v49 = vld [vmem:[%s3052_s3 + $0x40] sm:$0xff]   ;;  %v535_v1 = vsel %vm2468_vm5, 0, %v2335_v46 }
  0x46   : > { %690 = vrot.lane.b32.xlu1 %v605_v51, %s2050_s29  ;;  %v482_v51 = vrot.slane %v480_v14, 7  ;;  %v2445_v3 = vor.u32 %v575_v63, %v480_v14  ;;  %v573_v54 = vrot.slane %v476_v25, 1  ;;  %v537_v23 = vsel %vm2468_vm5, 0, %v2378_v32 }
  0x47   : > { %655 = vrot.lane.b32.xlu0 %v2341_v50, %s2049_s28  ;;  %v2025_v50 = vld [vmem:[%s3052_s3 + $0x70] sm:$0xff]   ;;  %v545_v13 = vsel %vm2468_vm5, 0, %v2458_v4  ;;  %v614_v21 = vsel %vm2161_vm2, %v570_v9, 0  ;;  %v572_v22 = vor.u32 %v571_v15, %v466_v56 }
  0x48   : > { %v2460_v7 = vor.u32 %v483_v18, %v482_v51  ;;  %v617_v10 = vsel %vm2161_vm2, %v2445_v3, 0  ;;  %1831 = vmatprep.subr.bf16.mxu0 %v2025_v50  ;;  %1996 = vmatprep.subr.bf16.mxu1 %v2025_v50 }
  0x49   : > { %v615_v12 = vsel %vm2161_vm2, %v572_v22, 0  ;;  %v539_v22 = vsel %vm2468_vm5, 0, %v2410_v58 }
  0x4a   : > { %704 = vrot.lane.b32.xlu1 %v612_v27, %s2050_s29  ;;  %v546_v19 = vsel %vm2468_vm5, 0, %v2460_v7  ;;  %v574_v27 = vor.u32 %v573_v54, %v473_v61 }
  0x4b   : > { %657 = vrot.lane.b32.xlu0 %v2368_v41, %s2049_s28  ;;  %v2026_v41 = vld [vmem:[%s3052_s3 + $0x30] sm:$0xff]  }
  0x4c   : > { %1832 = vmatpush3.bf16.msra.mxu0 %v2026_v41  ;;  %2004 = vmatpush3.bf16.msra.mxu1 %v2026_v41  ;;  %v616_v14 = vsel %vm2161_vm2, %v574_v27, 0 }
  0x4d   : > { %1833 = vmatprep.subr.bf16.mxu0 %v2027_v20  ;;  %1997 = vmatprep.subr.bf16.mxu1 %v2027_v20 }
  0x4e   : > { %706 = vrot.lane.b32.xlu1 %v613_v52, %s2050_s29 }
  0x4f   : > { %659 = vrot.lane.b32.xlu0 %v388_v39, %s2049_s28  ;;  %v2038_v39 = vld [vmem:[%s3052_s3] sm:$0xff]  }
  0x50   : > { %1834 = vmatpush3.bf16.msra.mxu0 %v2028_v26  ;;  %2005 = vmatpush3.bf16.msra.mxu1 %v2028_v26 }
  0x51   : > { %1835 = vmatprep.subr.bf16.mxu0 %v2029_v59  ;;  %1998 = vmatprep.subr.bf16.mxu1 %v2029_v59 }
  0x52   : > { %708 = vrot.lane.b32.xlu1 %v614_v21, %s2050_s29 }
  0x53   : > { %661 = vrot.lane.b32.xlu0 %v2393_v31, %s2049_s28  ;;  %v547_v31 = vsel %vm2468_vm5, 0, %v2384_v55  ;;  %v548_v55 = vsel %vm2468_vm5, 0, %v2388_v0  ;;  %v538_v0 = vsel %vm2468_vm5, 0, %v2399_v60 }
  0x54   : > { %1836 = vmatpush3.bf16.msra.mxu0 %v2030_v38  ;;  %2006 = vmatpush3.bf16.msra.mxu1 %v2030_v38  ;;  %v550_v38 = vsel %vm2468_vm5, 0, %v2414_v34  ;;  %v398_v34 = vrot.slane %v2051_v24, 7 }
  0x55   : > { %1837 = vmatprep.subr.bf16.mxu0 %v2031_v47  ;;  %1999 = vmatprep.subr.bf16.mxu1 %v2031_v47 }
  0x56   : > { %710 = vrot.lane.b32.xlu1 %v615_v12, %s2050_s29  ;;  %v534_v24 = vsel %vm2468_vm5, 0, %v398_v34 }
  0x58   : > { %1838 = vmatpush3.bf16.msra.mxu0 %v2032_v28  ;;  %2007 = vmatpush3.bf16.msra.mxu1 %v2032_v28 }
  0x59   : > { %1839 = vmatprep.subr.bf16.mxu0 %v2033_v33  ;;  %2000 = vmatprep.subr.bf16.mxu1 %v2033_v33 }
  0x5a   : > { %663 = vrot.lane.b32.xlu1 %v2405_v29, %s2049_s28  ;;  %v536_v29 = vsel %vm2468_vm5, 0, %v2365_v17 }
  0x5c   : > { %1840 = vmatpush3.bf16.msra.mxu0 %v2034_v36  ;;  %2008 = vmatpush3.bf16.msra.mxu1 %v2034_v36  ;;  %v2633_v36 = vld [vmem:[%s3052_s3 + $0x88] sm:$0xff]  }
  0x5d   : > { %1841 = vmatprep.subr.bf16.mxu0 %v2035_v43  ;;  %2001 = vmatprep.subr.bf16.mxu1 %v2035_v43  ;;  %v540_v43 = vsel %vm2468_vm5, 0, %v2420_v57 }
  0x60   : > { %1842 = vmatpush3.bf16.msra.mxu0 %v2036_v45  ;;  %2009 = vmatpush3.bf16.msra.mxu1 %v2036_v45 }
  0x61   : > { %1843 = vmatprep.subr.bf16.mxu0 %v2037_v49  ;;  %2002 = vmatprep.subr.bf16.mxu1 %v2037_v49 }
  0x64   : > { %1844 = vmatpush3.bf16.msra.mxu0 %v2038_v39  ;;  %2010 = vmatpush3.bf16.msra.mxu1 %v2038_v39 }
  0x65   : > { %1959 = vmatprep.subr.bf16.mxu1 %v2633_v36 }
  0x89   : > { %v642_v62 = vpop.permute.xlu0 %641 }
  0x8a   : > { %v730_v56 = vsel %vm724_vm6, %v535_v1, %v642_v62 }
  0x8d   : > { %v644_v48 = vpop.permute.xlu0 %643 }
  0x8e   : > { %v733_v46 = vsel %vm724_vm6, %v536_v29, %v644_v48 }
  0x90   : > { %v693_v37 = vpop.permute.xlu1 %692 }
  0x91   : > { %v2544_v5 = vsel %vm776_vm7, %v730_v56, %v693_v37  ;;  %v646_v6 = vpop.permute.xlu0 %645  ;;  %v541_v56 = vsel %vm2468_vm5, 0, %v2435_v44 }
  0x92   : > { %827 = vrot.lane.b32.xlu0 %v2544_v5, %s2052_s16  ;;  %v736_v63 = vsel %vm724_vm6, %v537_v23, %v646_v6 }
  0x94   : > { %v695_v18 = vpop.permute.xlu1 %694 }
  0x95   : > { %v2552_v17 = vsel %vm776_vm7, %v733_v46, %v695_v18  ;;  %v666_v61 = vpop.permute.xlu0 %665  ;;  %v542_v46 = vsel %vm2468_vm5, 0, %v2437_v42 }
  0x96   : > { %860 = vrot.lane.b32.xlu1 %v2552_v17, %s2050_s29  ;;  %712 = vrot.lane.b32.xlu0 %v616_v14, %s2050_s29  ;;  %v766_v30 = vsel %vm724_vm6, %v547_v31, %v666_v61  ;;  %v543_v61 = vsel %vm2468_vm5, 0, %v2440_v16 }
  0x98   : > { %v668_v25 = vpop.permute.xlu1 %667 }
  0x99   : > { %v717_v51 = vpop.permute.xlu0 %716  ;;  %v769_v53 = vsel %vm724_vm6, %v548_v55, %v668_v25  ;;  %v544_v25 = vsel %vm2468_vm5, 0, %v2442_v2 }
  0x9a   : > { %714 = vrot.lane.b32.xlu1 %v617_v10, %s2050_s29  ;;  %829 = vrot.lane.b32.xlu0 %v2552_v17, %s2052_s16  ;;  %v2576_v32 = vsel %vm776_vm7, %v766_v30, %v717_v51  ;;  %v549_v10 = vsel %vm2468_vm5, 0, %v2403_v8 }
  0x9c   : > { %v697_v11 = vpop.permute.xlu1 %696 }
  0x9d   : > { %v2579_v40 = vsel %vm776_vm7, %v736_v63, %v697_v11  ;;  %v648_v50 = vpop.permute.xlu0 %647 }
  0x9e   : > { %862 = vrot.lane.b32.xlu1 %v2579_v40, %s2050_s29  ;;  %851 = vrot.lane.b32.xlu0 %v2576_v32, %s2052_s16  ;;  %v739_v15 = vsel %vm724_vm6, %v538_v0, %v648_v50 }
  0xa0   : > { %v719_v3 = vpop.permute.xlu1 %718 }
  0xa1   : > { %v2590_v52 = vsel %vm776_vm7, %v769_v53, %v719_v3  ;;  %v670_v9 = vpop.permute.xlu0 %669 }
  0xa2   : > { %884 = vrot.lane.b32.xlu1 %v2590_v52, %s2050_s29  ;;  %831 = vrot.lane.b32.xlu0 %v2579_v40, %s2052_s16  ;;  %v772_v21 = vsel %vm724_vm6, %v549_v10, %v670_v9 }
  0xa4   : > { %v699_v41 = vpop.permute.xlu1 %698 }
  0xa5   : > { %v2601_v60 = vsel %vm776_vm7, %v739_v15, %v699_v41  ;;  %v650_v20 = vpop.permute.xlu0 %649 }
  0xa6   : > { %864 = vrot.lane.b32.xlu1 %v2601_v60, %s2050_s29  ;;  %853 = vrot.lane.b32.xlu0 %v2590_v52, %s2052_s16  ;;  %v742_v12 = vsel %vm724_vm6, %v539_v22, %v650_v20 }
  0xa8   : > { %v721_v26 = vpop.permute.xlu1 %720 }
  0xa9   : > { %v2612_v8 = vsel %vm776_vm7, %v772_v21, %v721_v26  ;;  %v672_v59 = vpop.permute.xlu0 %671 }
  0xaa   : > { %886 = vrot.lane.b32.xlu1 %v2612_v8, %s2050_s29  ;;  %833 = vrot.lane.b32.xlu0 %v2601_v60, %s2052_s16  ;;  %v775_v33 = vsel %vm724_vm6, %v550_v38, %v672_v59 }
  0xac   : > { %v701_v47 = vpop.permute.xlu1 %700 }
  0xad   : > { %v2623_v58 = vsel %vm776_vm7, %v742_v12, %v701_v47  ;;  %v652_v28 = vpop.permute.xlu0 %651  ;;  %v2040_v47 = vld [vmem:[%s3052_s3 + $0x80] sm:$0xff]  }
  0xae   : > { %866 = vrot.lane.b32.xlu1 %v2623_v58, %s2050_s29  ;;  %855 = vrot.lane.b32.xlu0 %v2612_v8, %s2052_s16  ;;  %v745_v62 = vsel %vm724_vm6, %v540_v43, %v652_v28 }
  0xb0   : > { %v723_v45 = vpop.permute.xlu1 %722 }
  0xb1   : > { %v810_v49 = vsel %vm776_vm7, %v775_v33, %v723_v45  ;;  %v640_v39 = vpop.permute.xlu0 %639 }
  0xb2   : > { %888 = vrot.lane.b32.xlu1 %v810_v49, %s2050_s29  ;;  %835 = vrot.lane.b32.xlu0 %v2623_v58, %s2052_s16  ;;  %v727_v48 = vsel %vm724_vm6, %v534_v24, %v640_v39 }
  0xb4   : > { %v703_v1 = vpop.permute.xlu1 %702 }
  0xb5   : > { %v2648_v54 = vsel %vm776_vm7, %v745_v62, %v703_v1  ;;  %v654_v57 = vpop.permute.xlu0 %653 }
  0xb6   : > { %868 = vrot.lane.b32.xlu1 %v2648_v54, %s2050_s29  ;;  %857 = vrot.lane.b32.xlu0 %v810_v49, %s2052_s16  ;;  %v748_v6 = vsel %vm724_vm6, %v541_v56, %v654_v57 }
  0xb8   : > { %v691_v29 = vpop.permute.xlu1 %690 }
  0xb9   : > { %v778_v27 = vsel %vm776_vm7, %v727_v48, %v691_v29  ;;  %v656_v37 = vpop.permute.xlu0 %655 }
  0xba   : > { %890 = vrot.lane.b32.xlu1 %v778_v27, %s2050_s29  ;;  %837 = vrot.lane.b32.xlu0 %v2648_v54, %s2052_s16  ;;  %v751_v31 = vsel %vm724_vm6, %v542_v46, %v656_v37 }
  0xbc   : > { %v705_v14 = vpop.permute.xlu1 %704 }
  0xbd   : > { %v2666_v18 = vsel %vm776_vm7, %v748_v6, %v705_v14  ;;  %v658_v44 = vpop.permute.xlu0 %657 }
  0xbe   : > { %870 = vrot.lane.b32.xlu1 %v2666_v18, %s2050_s29  ;;  %839 = vrot.lane.b32.xlu0 %v2666_v18, %s2052_s16  ;;  %v754_v30 = vsel %vm724_vm6, %v543_v61, %v658_v44 }
  0xc0   : > { %v707_v23 = vpop.permute.xlu1 %706 }
  0xc1   : > { %v2677_v42 = vsel %vm776_vm7, %v751_v31, %v707_v23  ;;  %v660_v51 = vpop.permute.xlu0 %659 }
  0xc2   : > { %841 = vrot.lane.b32.xlu0 %v2677_v42, %s2052_s16  ;;  %872 = vrot.lane.b32.xlu1 %v2677_v42, %s2050_s29  ;;  %v757_v55 = vsel %vm724_vm6, %v544_v25, %v660_v51 }
  0xc4   : > { %v709_v63 = vpop.permute.xlu1 %708 }
  0xc5   : > { %v2688_v16 = vsel %vm776_vm7, %v754_v30, %v709_v63  ;;  %v662_v2 = vpop.permute.xlu0 %661 }
  0xc6   : > { %843 = vrot.lane.b32.xlu0 %v2688_v16, %s2052_s16  ;;  %874 = vrot.lane.b32.xlu1 %v2688_v16, %s2050_s29  ;;  %v760_v3 = vsel %vm724_vm6, %v545_v13, %v662_v2 }
  0xc8   : > { %v711_v11 = vpop.permute.xlu1 %710 }
  0xc9   : > { %v2696_v50 = vsel %vm776_vm7, %v757_v55, %v711_v11 }
  0xca   : > { %845 = vrot.lane.b32.xlu0 %v2696_v50, %s2052_s16  ;;  %876 = vrot.lane.b32.xlu1 %v2696_v50, %s2050_s29 }
  0xcc   : > { %v664_v53 = vpop.permute.xlu1 %663 }
  0xcd   : > { %v763_v4 = vsel %vm724_vm6, %v546_v19, %v664_v53 }
 0x104   : > { %v828_v0 = vpop.permute.xlu0 %827 }
 0x105   : > { %v894_v20 = vsel %vm892_vm8, %v778_v27, %v828_v0 }
 0x108   : > { %v2707_v9 = vpop.permute.xlu1 %860  ;;  %v713_v15 = vpop.permute.xlu0 %712 }
 0x109   : > { %v942_v10 = vsel %vm776_vm7, %v828_v0, %v2707_v9  ;;  %v2712_v41 = vsel %vm776_vm7, %v760_v3, %v713_v15 }
 0x10a   : > { %1197 = vmatprep.mubr.bf16.mxu0 %v942_v10  ;;  %847 = vrot.lane.b32.xlu0 %v2712_v41, %s2052_s16 }
 0x10b   : > { %878 = vrot.lane.b32.xlu1 %v2712_v41, %s2050_s29  ;;  %1198 = vmatmul.mubr.bf16.vlgmr.msra.gmra.mxu0 %v894_v20 }
 0x10c   : > { %v715_v13 = vpop.permute.xlu1 %714  ;;  %v830_v21 = vpop.permute.xlu0 %829 }
 0x10d   : > { %v802_v22 = vsel %vm776_vm7, %v763_v4, %v715_v13  ;;  %v897_v7 = vsel %vm892_vm8, %v2544_v5, %v830_v21 }
 0x10e   : > { %849 = vrot.lane.b32.xlu0 %v802_v22, %s2052_s16 }
 0x10f   : > { %880 = vrot.lane.b32.xlu1 %v802_v22, %s2050_s29 }
 0x110   : > { %v2727_v26 = vpop.permute.xlu1 %862  ;;  %v852_v59 = vpop.permute.xlu0 %851 }
 0x111   : > { %v945_v12 = vsel %vm776_vm7, %v830_v21, %v2727_v26  ;;  %v930_v28 = vsel %vm892_vm8, %v802_v22, %v852_v59 }
 0x112   : > { %1205 = vmatprep.mubr.bf16.mxu0 %v945_v12 }
 0x113   : > { %882 = vrot.lane.b32.xlu1 %v2576_v32, %s2050_s29  ;;  %1206 = vmatmul.mubr.bf16.gmra.mxu0 %v897_v7 }
 0x114   : > { %v2735_v35 = vpop.permute.xlu1 %884  ;;  %v832_v19 = vpop.permute.xlu0 %831 }
 0x115   : > { %v978_v38 = vsel %vm776_vm7, %v852_v59, %v2735_v35  ;;  %v900_v43 = vsel %vm892_vm8, %v2552_v17, %v832_v19 }
 0x116   : > { %1293 = vmatprep.mubr.bf16.mxu1 %v978_v38 }
 0x117   : > { %1294 = vmatmul.mubr.bf16.vlgmr.msra.gmra.mxu1 %v930_v28 }
 0x118   : > { %v865_v33 = vpop.permute.xlu1 %864  ;;  %v854_v5 = vpop.permute.xlu0 %853  ;;  %1960 = vmatpush3.bf16.msra.mxu1 %v2633_v36 }
 0x119   : > { %v948_v34 = vsel %vm776_vm7, %v832_v19, %v865_v33  ;;  %1961 = vmatprep.subr.bf16.mxu1 %v2040_v47  ;;  %v933_v62 = vsel %vm892_vm8, %v2576_v32, %v854_v5 }
 0x11a   : > { %1213 = vmatprep.mubr.bf16.mxu0 %v948_v34 }
 0x11b   : > { %1214 = vmatmul.mubr.bf16.gmra.mxu0 %v900_v43 }
 0x11c   : > { %v2747_v45 = vpop.permute.xlu1 %886  ;;  %v834_v49 = vpop.permute.xlu0 %833  ;;  %1962 = vmatpush3.bf16.msra.mxu1 %v2040_v47 }
 0x11d   : > { %v981_v39 = vsel %vm776_vm7, %v854_v5, %v2747_v45  ;;  %v903_v17 = vsel %vm892_vm8, %v2579_v40, %v834_v49 }
 0x11e   : > { %1301 = vmatprep.mubr.bf16.mxu1 %v981_v39 }
 0x11f   : > { %1302 = vmatmul.mubr.bf16.gmra.mxu1 %v933_v62 }
 0x120   : > { %v867_v36 = vpop.permute.xlu1 %866  ;;  %v856_v24 = vpop.permute.xlu0 %855 }
 0x121   : > { %v951_v1 = vsel %vm776_vm7, %v834_v49, %v867_v36  ;;  %v936_v32 = vsel %vm892_vm8, %v2590_v52, %v856_v24 }
 0x122   : > { %1221 = vmatprep.mubr.bf16.mxu0 %v951_v1 }
 0x123   : > { %1222 = vmatmul.mubr.bf16.gmra.mxu0 %v903_v17 }
 0x124   : > { %v2756_v57 = vpop.permute.xlu1 %888  ;;  %v836_v48 = vpop.permute.xlu0 %835 }
 0x125   : > { %v984_v56 = vsel %vm776_vm7, %v856_v24, %v2756_v57  ;;  %v906_v40 = vsel %vm892_vm8, %v2601_v60, %v836_v48 }
 0x126   : > { %1309 = vmatprep.mubr.bf16.mxu1 %v984_v56 }
 0x127   : > { %1310 = vmatmul.mubr.bf16.gmra.mxu1 %v936_v32 }
 0x128   : > { %v869_v29 = vpop.permute.xlu1 %868  ;;  %v858_v27 = vpop.permute.xlu0 %857 }
 0x129   : > { %v954_v37 = vsel %vm776_vm7, %v836_v48, %v869_v29  ;;  %v939_v44 = vsel %vm892_vm8, %v2612_v8, %v858_v27 }
 0x12a   : > { %1229 = vmatprep.mubr.bf16.mxu0 %v954_v37 }
 0x12b   : > { %1230 = vmatmul.mubr.bf16.gmra.mxu0 %v906_v40 }
 0x12c   : > { %v891_v6 = vpop.permute.xlu1 %890  ;;  %v838_v46 = vpop.permute.xlu0 %837 }
 0x12d   : > { %v987_v14 = vsel %vm776_vm7, %v858_v27, %v891_v6  ;;  %v909_v60 = vsel %vm892_vm8, %v2623_v58, %v838_v46 }
 0x12e   : > { %1317 = vmatprep.mubr.bf16.mxu1 %v987_v14 }
 0x12f   : > { %1318 = vmatmul.mubr.bf16.gmra.mxu1 %v939_v44 }
 0x130   : > { %v871_v52 = vpop.permute.xlu1 %870  ;;  %1963 = vmatprep.mubr.msk.bf16.mxu1 %vm724_vm6, %v2707_v9  ;;  %v840_v61 = vpop.permute.xlu0 %839 }
 0x131   : > { %v957_v31 = vsel %vm776_vm7, %v838_v46, %v871_v52  ;;  %v912_v63 = vsel %vm892_vm8, %v2648_v54, %v840_v61 }
 0x132   : > { %1237 = vmatprep.mubr.bf16.mxu0 %v957_v31 }
 0x133   : > { %1238 = vmatmul.mubr.bf16.gmra.mxu0 %v909_v60 }
 0x134   : > { %v873_v23 = vpop.permute.xlu1 %872  ;;  %v842_v8 = vpop.permute.xlu0 %841 }
 0x135   : > { %v960_v30 = vsel %vm776_vm7, %v840_v61, %v873_v23  ;;  %v915_v2 = vsel %vm892_vm8, %v2666_v18, %v842_v8 }
 0x136   : > { %1245 = vmatprep.mubr.bf16.mxu0 %v960_v30 }
 0x137   : > { %1964 = vmatmul.mubr.msk.bf16.vlgmr.msra.gmra.mxu1 %vm724_vm6, %v2727_v26 }
 0x138   : > { %1967 = vmatprep.mubr.msk.bf16.mxu1 %vm724_vm6, %v865_v33  ;;  %v875_v25 = vpop.permute.xlu1 %874  ;;  %v844_v55 = vpop.permute.xlu0 %843 }
 0x139   : > { %v963_v51 = vsel %vm776_vm7, %v842_v8, %v875_v25  ;;  %v918_v54 = vsel %vm892_vm8, %v2677_v42, %v844_v55 }
 0x13b   : > { %1246 = vmatmul.mubr.bf16.gmra.mxu0 %v912_v63 }
 0x13c   : > { %1253 = vmatprep.mubr.bf16.mxu0 %v963_v51  ;;  %v877_v58 = vpop.permute.xlu1 %876  ;;  %v846_v53 = vpop.permute.xlu0 %845 }
 0x13d   : > { %v966_v11 = vsel %vm776_vm7, %v844_v55, %v877_v58  ;;  %v921_v3 = vsel %vm892_vm8, %v2688_v16, %v846_v53 }
 0x13f   : > { %1968 = vmatmul.mubr.msk.bf16.gmra.mxu1 %vm724_vm6, %v867_v36 }
 0x140   : > { %1971 = vmatprep.mubr.msk.bf16.mxu1 %vm724_vm6, %v869_v29 }
 0x143   : > { %1254 = vmatmul.mubr.bf16.gmra.mxu0 %v915_v2 }
 0x144   : > { %1261 = vmatprep.mubr.bf16.mxu0 %v966_v11 }
 0x147   : > { %1972 = vmatmul.mubr.msk.bf16.gmra.mxu1 %vm724_vm6, %v871_v52 }
 0x148   : > { %1975 = vmatprep.mubr.msk.bf16.mxu1 %vm724_vm6, %v873_v23 }
 0x14b   : > { %1262 = vmatmul.mubr.bf16.gmra.mxu0 %v918_v54 }
 0x14f   : > { %1976 = vmatmul.mubr.msk.bf16.gmra.mxu1 %vm724_vm6, %v875_v25 }
 0x150   : > { %1979 = vmatprep.mubr.msk.bf16.mxu1 %vm724_vm6, %v877_v58 }
 0x17c   : > { %v848_v9 = vpop.permute.xlu0 %847 }
 0x17d   : > { %v879_v0 = vpop.permute.xlu1 %878  ;;  %v924_v4 = vsel %vm892_vm8, %v2696_v50, %v848_v9 }
 0x17e   : > { %1980 = vmatmul.mubr.msk.bf16.gmra.mxu1 %vm724_vm6, %v879_v0  ;;  %v969_v18 = vsel %vm776_vm7, %v846_v53, %v879_v0 }
 0x17f   : > { %1269 = vmatprep.mubr.bf16.mxu0 %v969_v18 }
 0x180   : > { %1270 = vmatmul.mubr.bf16.gmra.mxu0 %v921_v3  ;;  %v850_v20 = vpop.permute.xlu0 %849 }
 0x181   : > { %v881_v15 = vpop.permute.xlu1 %880  ;;  %v927_v13 = vsel %vm892_vm8, %v2712_v41, %v850_v20 }
 0x182   : > { %1983 = vmatprep.mubr.msk.bf16.mxu1 %vm724_vm6, %v881_v15  ;;  %v972_v42 = vsel %vm776_vm7, %v848_v9, %v881_v15 }
 0x183   : > { %1277 = vmatprep.mubr.bf16.mxu0 %v972_v42 }
 0x185   : > { %v883_v10 = vpop.permute.xlu1 %882 }
 0x186   : > { %1984 = vmatmul.mubr.msk.bf16.gmra.mxu1 %vm724_vm6, %v883_v10  ;;  %v975_v16 = vsel %vm776_vm7, %v850_v20, %v883_v10 }
 0x187   : > { %1987 = vmatprep.mubr.msk.bf16.mxu1 %vm724_vm6, %v2735_v35 }
 0x188   : > { %1278 = vmatmul.mubr.bf16.gmra.mxu0 %v924_v4 }
 0x189   : > { %1285 = vmatprep.mubr.bf16.mxu0 %v975_v16 }
 0x18e   : > { %1988 = vmatmul.mubr.msk.bf16.gmra.mxu1 %vm724_vm6, %v2747_v45 }
 0x18f   : > { %1991 = vmatprep.mubr.msk.bf16.mxu1 %vm724_vm6, %v2756_v57 }
 0x190   : > { %1286 = vmatmul.mubr.bf16.gmra.mxu0 %v927_v13 }
 0x196   : > { %1992 = vmatmul.mubr.msk.bf16.gmra.mxu1 %vm724_vm6, %v891_v6 }
 0x1cb   : > { %v1845_v21 = vpop.f32.mrf.mxu0 }
 0x1cd   : > { %v1846_v22 = vpop.f32.mrf.mxu0 }
 0x1ce   : > { %v1847_v11 = vadd.f32 %v1846_v22, %v1845_v21 }
 0x1cf   : > { %v1848_v26 = vpop.f32.mrf.mxu0 }
 0x1d1   : > { %v1849_v50 = vpop.f32.mrf.mxu0 }
 0x1d2   : > { %v1850_v42 = vadd.f32 %v1849_v50, %v1848_v26 }
 0x1d3   : > { %v1851_v59 = vpop.f32.mrf.mxu0 }
 0x1d5   : > { %v1852_v12 = vpop.f32.mrf.mxu0 }
 0x1d6   : > { %v1853_v51 = vadd.f32 %v1852_v12, %v1851_v59 }
 0x1d7   : > { %v1854_v7 = vpop.f32.mrf.mxu0  ;;  %v1917_v35 = vpop.f32.mrf.mxu1 }
 0x1d9   : > { %v1855_v19 = vpop.f32.mrf.mxu0  ;;  %v1918_v38 = vpop.f32.mrf.mxu1 }
 0x1da   : > { %v2810_v47 = vadd.f32 %v1918_v38, %v1917_v35  ;;  %v1856_v0 = vadd.f32 %v1855_v19, %v1854_v7 }
 0x1db   : > { %v1857_v28 = vpop.f32.mrf.mxu0  ;;  %v1920_v33 = vpop.f32.mrf.mxu1 }
 0x1dd   : > { %v1858_v5 = vpop.f32.mrf.mxu0  ;;  %v1921_v34 = vpop.f32.mrf.mxu1 }
 0x1de   : > { %v2812_v41 = vadd.f32 %v1921_v34, %v1920_v33  ;;  %v1859_v59 = vadd.f32 %v1858_v5, %v1857_v28 }
 0x1df   : > { %v2814_v43 = vpop.f32.mrf.mxu0  ;;  %v1923_v45 = vpop.f32.mrf.mxu1 }
 0x1e1   : > { %v1861_v49 = vpop.f32.mrf.mxu0  ;;  %v1924_v39 = vpop.f32.mrf.mxu1 }
 0x1e2   : > { %v2816_v62 = vadd.f32 %v1924_v39, %v1923_v45  ;;  %v1862_v33 = vadd.f32 %v1861_v49, %v2814_v43 }
 0x1e3   : > { %v1863_v36 = vpop.f32.mrf.mxu0  ;;  %v1926_v24 = vpop.f32.mrf.mxu1 }
 0x1e5   : > { %v1864_v1 = vpop.f32.mrf.mxu0  ;;  %v1927_v17 = vpop.f32.mrf.mxu1 }
 0x1e6   : > { %v2818_v57 = vadd.f32 %v1927_v17, %v1926_v24  ;;  %v1865_v4 = vadd.f32 %v1864_v1, %v1863_v36 }
 0x1e7   : > { %v1866_v48 = vpop.f32.mrf.mxu0  ;;  %v1929_v56 = vpop.f32.mrf.mxu1 }
 0x1e9   : > { %v1867_v32 = vpop.f32.mrf.mxu0  ;;  %v1930_v29 = vpop.f32.mrf.mxu1 }
 0x1ea   : > { %v2820_v27 = vadd.f32 %v1930_v29, %v1929_v56  ;;  %v1868_v35 = vadd.f32 %v1867_v32, %v1866_v48 }
 0x1eb   : > { %v1869_v37 = vpop.f32.mrf.mxu0  ;;  %v1932_v40 = vpop.f32.mrf.mxu1 }
 0x1ed   : > { %v1870_v6 = vpop.f32.mrf.mxu0  ;;  %v1933_v46 = vpop.f32.mrf.mxu1 }
 0x1ee   : > { %v2822_v14 = vadd.f32 %v1933_v46, %v1932_v40  ;;  %v1871_v24 = vadd.f32 %v1870_v6, %v1869_v37 }
 0x1ef   : > { %v2824_v44 = vpop.f32.mrf.mxu0  ;;  %v1935_v52 = vpop.f32.mrf.mxu1 }
 0x1f1   : > { %v1873_v31 = vpop.f32.mrf.mxu0  ;;  %v1936_v61 = vpop.f32.mrf.mxu1 }
 0x1f2   : > { %v2826_v60 = vadd.f32 %v1936_v61, %v1935_v52  ;;  %v1874_v29 = vadd.f32 %v1873_v31, %v2824_v44 }
 0x1f3   : > { %v1875_v23 = vpop.f32.mrf.mxu0  ;;  %v1938_v30 = vpop.f32.mrf.mxu1 }
 0x1f5   : > { %v1876_v8 = vpop.f32.mrf.mxu0  ;;  %v1939_v25 = vpop.f32.mrf.mxu1 }
 0x1f6   : > { %v2828_v63 = vadd.f32 %v1939_v25, %v1938_v30  ;;  %v1877_v5 = vadd.f32 %v1876_v8, %v1875_v23 }
 0x1f7   : > { %v1878_v58 = vpop.f32.mrf.mxu0  ;;  %v1965_v55 = vpop.f32.mrf.mxu1 }
 0x1f8   : > { %v2837_v2 = vadd.f32 %v1965_v55, %v1853_v51 }
 0x1f9   : > { %v1879_v54 = vpop.f32.mrf.mxu0  ;;  %v1360_v53 = vpop.f32.mrf.mxu1 }
 0x1fa   : > { %1489 = vst.msk [vmem:[%s2835_s25 + $0x10] sm:$0xff] %vm724_vm6, %v2837_v2  ;;  %v1361_v18 = vadd.f32 %v1847_v11, %v1360_v53  ;;  %v1880_v43 = vadd.f32 %v1879_v54, %v1878_v58  ;;  %v1590_v25 = vmul.f32 %v2837_v2, %v2837_v2  ;;  %v1522_v53 = vsel %vm724_vm6, %v2837_v2, 0.0 }
 0x1fb   : > { %v1881_v3 = vpop.f32.mrf.mxu0  ;;  %v1966_v9 = vpop.f32.mrf.mxu1 }
 0x1fc   : > { %1487 = vst.msk [vmem:[%s2835_s25] sm:$0xff] %vm724_vm6, %v1361_v18  ;;  %v2844_v15 = vadd.f32 %v1966_v9, %v1856_v0  ;;  %v1588_v40 = vmul.f32 %v1361_v18, %v1361_v18  ;;  %v1519_v52 = vsel %vm724_vm6, %v1361_v18, 0.0 }
 0x1fd   : > { %v1882_v10 = vpop.f32.mrf.mxu0  ;;  %v1363_v20 = vpop.f32.mrf.mxu1 }
 0x1fe   : > { %1490 = vst.msk [vmem:[%s2835_s25 + $0x18] sm:$0xff] %vm724_vm6, %v2844_v15  ;;  %v1364_v16 = vadd.f32 %v1850_v42, %v1363_v20  ;;  %v1620_v51 = vsel %vm724_vm6, %v1588_v40, 0.0  ;;  %v1883_v58 = vadd.f32 %v1882_v10, %v1881_v3  ;;  %v1623_v3 = vsel %vm724_vm6, %v1590_v25, 0.0 }
 0x1ff   : > { %v1884_v13 = vpop.f32.mrf.mxu0  ;;  %v1969_v21 = vpop.f32.mrf.mxu1  ;;  %v1591_v10 = vmul.f32 %v2844_v15, %v2844_v15  ;;  %v1524_v2 = vsel %vm724_vm6, %v2844_v15, 0.0 }
 0x200   : > { %v2849_v22 = vadd.f32 %v1969_v21, %v1865_v4  ;;  %1488 = vst.msk [vmem:[%s2835_s25 + $0x8] sm:$0xff] %vm724_vm6, %v1364_v16  ;;  %v1589_v49 = vmul.f32 %v1364_v16, %v1364_v16  ;;  %v1520_v37 = vsel %vm724_vm6, %v1364_v16, 0.0 }
 0x201   : > { %v1885_v12 = vpop.f32.mrf.mxu0  ;;  %v1376_v7 = vpop.f32.mrf.mxu1  ;;  %v1521_v31 = vadd.f32 %v1520_v37, %v1519_v52 }
 0x202   : > { %1493 = vst.msk [vmem:[%s2835_s25 + $0x30] sm:$0xff] %vm724_vm6, %v2849_v22  ;;  %v2856_v26 = vadd.f32 %v1859_v59, %v1376_v7  ;;  %v1621_v61 = vsel %vm724_vm6, %v1589_v49, 0.0  ;;  %v1886_v20 = vadd.f32 %v1885_v12, %v1884_v13  ;;  %v1625_v7 = vsel %vm724_vm6, %v1591_v10, 0.0 }
 0x203   : > { %v1887_v50 = vpop.f32.mrf.mxu0  ;;  %v1970_v19 = vpop.f32.mrf.mxu1  ;;  %v1622_v11 = vadd.f32 %v1621_v61, %v1620_v51  ;;  %v1523_v9 = vadd.f32 %v1522_v53, %v1521_v31 }
 0x204   : > { %v2858_v38 = vadd.f32 %v1970_v19, %v1868_v35  ;;  %1491 = vst.msk [vmem:[%s2835_s25 + $0x20] sm:$0xff] %vm724_vm6, %v2856_v26  ;;  %v1592_v35 = vmul.f32 %v2856_v26, %v2856_v26  ;;  %v1526_v12 = vsel %vm724_vm6, %v2856_v26, 0.0 }
 0x205   : > { %v1379_v28 = vpop.f32.mrf.mxu1  ;;  %v1888_v34 = vpop.f32.mrf.mxu0  ;;  %v1624_v16 = vadd.f32 %v1623_v3, %v1622_v11  ;;  %v1525_v59 = vadd.f32 %v1524_v2, %v1523_v9 }
 0x206   : > { %1494 = vst.msk [vmem:[%s2835_s25 + $0x38] sm:$0xff] %vm724_vm6, %v2858_v38  ;;  %v1380_v45 = vadd.f32 %v1862_v33, %v1379_v28  ;;  %v1889_v46 = vadd.f32 %v1888_v34, %v1887_v50  ;;  %v1627_v33 = vsel %vm724_vm6, %v1592_v35, 0.0  ;;  %v1595_v49 = vmul.f32 %v2858_v38, %v2858_v38 }
 0x207   : > { %v1973_v39 = vpop.f32.mrf.mxu1  ;;  %v1890_v17 = vpop.f32.mrf.mxu0  ;;  %v1626_v13 = vadd.f32 %v1625_v7, %v1624_v16  ;;  %v1527_v19 = vadd.f32 %v1526_v12, %v1525_v59 }
 0x208   : > { %v2867_v36 = vadd.f32 %v1973_v39, %v1877_v5  ;;  %1492 = vst.msk [vmem:[%s2835_s25 + $0x28] sm:$0xff] %vm724_vm6, %v1380_v45  ;;  %v1593_v50 = vmul.f32 %v1380_v45, %v1380_v45  ;;  %v1528_v28 = vsel %vm724_vm6, %v1380_v45, 0.0  ;;  %v1594_v39 = vmul.f32 %v2849_v22, %v2849_v22 }
 0x209   : > { %v1392_v1 = vpop.f32.mrf.mxu1  ;;  %v1891_v23 = vpop.f32.mrf.mxu0  ;;  %v1628_v15 = vadd.f32 %v1627_v33, %v1626_v13  ;;  %v1529_v34 = vadd.f32 %v1528_v28, %v1527_v19  ;;  %v1532_v45 = vsel %vm724_vm6, %v2858_v38, 0.0 }
 0x20a   : > { %1497 = vst.msk [vmem:[%s2835_s25 + $0x50] sm:$0xff] %vm724_vm6, %v2867_v36  ;;  %v2874_v48 = vadd.f32 %v1871_v24, %v1392_v1  ;;  %v1892_v54 = vadd.f32 %v1891_v23, %v1890_v17  ;;  %v1629_v5 = vsel %vm724_vm6, %v1593_v50, 0.0  ;;  %v1530_v1 = vsel %vm724_vm6, %v2849_v22, 0.0 }
 0x20b   : > { %v1974_v56 = vpop.f32.mrf.mxu1  ;;  %v1630_v24 = vadd.f32 %v1629_v5, %v1628_v15  ;;  %v1631_v26 = vsel %vm724_vm6, %v1594_v39, 0.0  ;;  %v1598_v31 = vmul.f32 %v2867_v36, %v2867_v36  ;;  %v1893_v25 = vpop.f32.mrf.mxu0 }
 0x20c   : > { %v2876_v32 = vadd.f32 %v1974_v56, %v1880_v43  ;;  %1495 = vst.msk [vmem:[%s2835_s25 + $0x40] sm:$0xff] %vm724_vm6, %v2874_v48  ;;  %v1531_v43 = vadd.f32 %v1530_v1, %v1529_v34  ;;  %v1596_v40 = vmul.f32 %v2874_v48, %v2874_v48  ;;  %v1534_v22 = vsel %vm724_vm6, %v2874_v48, 0.0 }
 0x20d   : > { %v1395_v6 = vpop.f32.mrf.mxu1  ;;  %v1632_v17 = vadd.f32 %v1631_v26, %v1630_v24  ;;  %v1639_v48 = vsel %vm724_vm6, %v1598_v31, 0.0 }
 0x20e   : > { %1498 = vst.msk [vmem:[%s2835_s25 + $0x58] sm:$0xff] %vm724_vm6, %v2876_v32  ;;  %v1396_v30 = vadd.f32 %v1874_v29, %v1395_v6  ;;  %v1533_v56 = vadd.f32 %v1532_v45, %v1531_v43  ;;  %v1633_v29 = vsel %vm724_vm6, %v1595_v49, 0.0  ;;  %v1635_v52 = vsel %vm724_vm6, %v1596_v40, 0.0 }
 0x20f   : > { %v1977_v44 = vpop.f32.mrf.mxu1  ;;  %v1634_v37 = vadd.f32 %v1633_v29, %v1632_v17  ;;  %v1599_v11 = vmul.f32 %v2876_v32, %v2876_v32  ;;  %v1540_v53 = vsel %vm724_vm6, %v2876_v32, 0.0 }
 0x210   : > { %v2888_v8 = vadd.f32 %v1977_v44, %v1889_v46  ;;  %1496 = vst.msk [vmem:[%s2835_s25 + $0x48] sm:$0xff] %vm724_vm6, %v1396_v30  ;;  %v1597_v6 = vmul.f32 %v1396_v30, %v1396_v30  ;;  %v1535_v46 = vadd.f32 %v1534_v22, %v1533_v56  ;;  %v1536_v61 = vsel %vm724_vm6, %v1396_v30, 0.0 }
 0x211   : > { %v1408_v55 = vpop.f32.mrf.mxu1  ;;  %v1636_v23 = vadd.f32 %v1635_v52, %v1634_v37  ;;  %v1641_v9 = vsel %vm724_vm6, %v1599_v11, 0.0 }
 0x212   : > { %1501 = vst.msk [vmem:[%s2835_s25 + $0x70] sm:$0xff] %vm724_vm6, %v2888_v8  ;;  %v1409_v0 = vadd.f32 %v1883_v58, %v1408_v55  ;;  %v1637_v44 = vsel %vm724_vm6, %v1597_v6, 0.0  ;;  %v1537_v38 = vadd.f32 %v1536_v61, %v1535_v46  ;;  %v1538_v58 = vsel %vm724_vm6, %v2867_v36, 0.0 }
 0x213   : > { %v1978_v18 = vpop.f32.mrf.mxu1  ;;  %v1638_v51 = vadd.f32 %v1637_v44, %v1636_v23  ;;  %v1602_v50 = vmul.f32 %v2888_v8, %v2888_v8 }
 0x214   : > { %v2900_v42 = vadd.f32 %v1978_v18, %v1892_v54  ;;  %1499 = vst.msk [vmem:[%s2835_s25 + $0x60] sm:$0xff] %vm724_vm6, %v1409_v0  ;;  %v1539_v55 = vadd.f32 %v1538_v58, %v1537_v38  ;;  %v1894_v54 = vpop.f32.mrf.mxu0  ;;  %v1600_v3 = vmul.f32 %v1409_v0, %v1409_v0 }
 0x215   : > { %v1411_v4 = vpop.f32.mrf.mxu1  ;;  %v1640_v30 = vadd.f32 %v1639_v48, %v1638_v51  ;;  %v1895_v12 = vadd.f32 %v1894_v54, %v1893_v25  ;;  %v1647_v1 = vsel %vm724_vm6, %v1602_v50, 0.0 }
 0x216   : > { %1502 = vst.msk [vmem:[%s2835_s25 + $0x78] sm:$0xff] %vm724_vm6, %v2900_v42  ;;  %v1412_v21 = vadd.f32 %v1886_v20, %v1411_v4  ;;  %v1541_v18 = vadd.f32 %v1540_v53, %v1539_v55  ;;  %v1896_v10 = vpop.f32.mrf.mxu0  ;;  %v1542_v4 = vsel %vm724_vm6, %v1409_v0, 0.0  ;;  %v1643_v2 = vsel %vm724_vm6, %v1600_v3, 0.0 }
 0x217   : > { %v1642_v20 = vadd.f32 %v1641_v9, %v1640_v30  ;;  %v1603_v17 = vmul.f32 %v2900_v42, %v2900_v42  ;;  %v1548_v22 = vsel %vm724_vm6, %v2900_v42, 0.0 }
 0x218   : > { %1500 = vst.msk [vmem:[%s2835_s25 + $0x68] sm:$0xff] %vm724_vm6, %v1412_v21  ;;  %v1601_v36 = vmul.f32 %v1412_v21, %v1412_v21  ;;  %v1543_v16 = vadd.f32 %v1542_v4, %v1541_v18  ;;  %v1544_v59 = vsel %vm724_vm6, %v1412_v21, 0.0  ;;  %v1897_v7 = vpop.f32.mrf.mxu0  ;;  %v1546_v21 = vsel %vm724_vm6, %v2888_v8, 0.0 }
 0x219   : > { %v1644_v35 = vadd.f32 %v1643_v2, %v1642_v20  ;;  %v1898_v39 = vadd.f32 %v1897_v7, %v1896_v10  ;;  %v1649_v38 = vsel %vm724_vm6, %v1603_v17, 0.0 }
 0x21a   : > { %v1645_v32 = vsel %vm724_vm6, %v1601_v36, 0.0  ;;  %v1545_v19 = vadd.f32 %v1544_v59, %v1543_v16 }
 0x21b   : > { %v1646_v15 = vadd.f32 %v1645_v32, %v1644_v35 }
 0x21c   : > { %v1547_v43 = vadd.f32 %v1546_v21, %v1545_v19 }
 0x21d   : > { %v1648_v40 = vadd.f32 %v1647_v1, %v1646_v15 }
 0x21e   : > { %v1549_v52 = vadd.f32 %v1548_v22, %v1547_v43 }
 0x21f   : > { %v1650_v42 = vadd.f32 %v1649_v38, %v1648_v40 }
 0x23e   : > { %v1981_v13 = vpop.f32.mrf.mxu1 }
 0x240   : > { %v1899_v33 = vpop.f32.mrf.mxu0  ;;  %v1424_v28 = vpop.f32.mrf.mxu1 }
 0x241   : > { %v1425_v0 = vadd.f32 %v1895_v12, %v1424_v28 }
 0x242   : > { %v1900_v5 = vpop.f32.mrf.mxu0  ;;  %v1982_v34 = vpop.f32.mrf.mxu1 }
 0x243   : > { %1503 = vst.msk [vmem:[%s2835_s25 + $0x80] sm:$0xff] %vm724_vm6, %v1425_v0  ;;  %v1901_v24 = vadd.f32 %v1900_v5, %v1899_v33  ;;  %v1604_v45 = vmul.f32 %v1425_v0, %v1425_v0  ;;  %v1550_v6 = vsel %vm724_vm6, %v1425_v0, 0.0 }
 0x244   : > { %v1902_v26 = vpop.f32.mrf.mxu0  ;;  %v1427_v49 = vpop.f32.mrf.mxu1  ;;  %v1551_v51 = vadd.f32 %v1550_v6, %v1549_v52 }
 0x245   : > { %v1433_v56 = vadd.f32 %v1981_v13, %v1901_v24  ;;  %v1428_v29 = vadd.f32 %v1898_v39, %v1427_v49  ;;  %v1651_v31 = vsel %vm724_vm6, %v1604_v45, 0.0 }
 0x246   : > { %v1903_v37 = vpop.f32.mrf.mxu0  ;;  %v1985_v8 = vpop.f32.mrf.mxu1  ;;  %v1652_v30 = vadd.f32 %v1651_v31, %v1650_v42 }
 0x247   : > { %1505 = vst.msk [vmem:[%s2835_s25 + $0x90] sm:$0xff] %vm724_vm6, %v1433_v56  ;;  %1504 = vst.msk [vmem:[%s2835_s25 + $0x88] sm:$0xff] %vm724_vm6, %v1428_v29  ;;  %v1605_v46 = vmul.f32 %v1428_v29, %v1428_v29  ;;  %v1904_v61 = vadd.f32 %v1903_v37, %v1902_v26  ;;  %v1552_v25 = vsel %vm724_vm6, %v1428_v29, 0.0  ;;  %v1606_v53 = vmul.f32 %v1433_v56, %v1433_v56 }
 0x248   : > { %v1905_v23 = vpop.f32.mrf.mxu0  ;;  %v1440_v44 = vpop.f32.mrf.mxu1  ;;  %v1553_v18 = vadd.f32 %v1552_v25, %v1551_v51  ;;  %v1554_v16 = vsel %vm724_vm6, %v1433_v56, 0.0 }
 0x249   : > { %v1436_v58 = vadd.f32 %v1982_v34, %v1904_v61  ;;  %v1653_v11 = vsel %vm724_vm6, %v1605_v46, 0.0  ;;  %v1655_v7 = vsel %vm724_vm6, %v1606_v53, 0.0 }
 0x24a   : > { %v1906_v55 = vpop.f32.mrf.mxu0  ;;  %v1986_v48 = vpop.f32.mrf.mxu1  ;;  %v1654_v20 = vadd.f32 %v1653_v11, %v1652_v30  ;;  %v1555_v35 = vadd.f32 %v1554_v16, %v1553_v18 }
 0x24b   : > { %v1907_v54 = vadd.f32 %v1906_v55, %v1905_v23  ;;  %1506 = vst.msk [vmem:[%s2835_s25 + $0x98] sm:$0xff] %vm724_vm6, %v1436_v58  ;;  %v1607_v2 = vmul.f32 %v1436_v58, %v1436_v58  ;;  %v1556_v50 = vsel %vm724_vm6, %v1436_v58, 0.0 }
 0x24c   : > { %v1908_v9 = vpop.f32.mrf.mxu0  ;;  %v1443_v3 = vpop.f32.mrf.mxu1  ;;  %v1656_v0 = vadd.f32 %v1655_v7, %v1654_v20  ;;  %v1557_v39 = vadd.f32 %v1556_v50, %v1555_v35 }
 0x24d   : > { %v1441_v10 = vadd.f32 %v1907_v54, %v1440_v44  ;;  %v1657_v34 = vsel %vm724_vm6, %v1607_v2, 0.0 }
 0x24e   : > { %v1909_v4 = vpop.f32.mrf.mxu0  ;;  %v1989_v36 = vpop.f32.mrf.mxu1  ;;  %v1658_v45 = vadd.f32 %v1657_v34, %v1656_v0 }
 0x24f   : > { %1507 = vst.msk [vmem:[%s2835_s25 + $0xa0] sm:$0xff] %vm724_vm6, %v1441_v10  ;;  %v1910_v59 = vadd.f32 %v1909_v4, %v1908_v9  ;;  %v2980_v13 = vadd.f32 %v1989_v36, %v2816_v62  ;;  %v1608_v19 = vmul.f32 %v1441_v10, %v1441_v10  ;;  %v1558_v62 = vsel %vm724_vm6, %v1441_v10, 0.0 }
 0x250   : > { %v1911_v12 = vpop.f32.mrf.mxu0  ;;  %v1456_v32 = vpop.f32.mrf.mxu1  ;;  %v1559_v56 = vadd.f32 %v1558_v62, %v1557_v39 }
 0x251   : > { %v1444_v33 = vadd.f32 %v1910_v59, %v1443_v3  ;;  %v1457_v28 = vadd.f32 %v2810_v47, %v1456_v32  ;;  %1513 = vst.msk [vmem:[%s2835_s25 + $0xd0] sm:$0xff] %vm724_vm6, %v2980_v13  ;;  %v1659_v26 = vsel %vm724_vm6, %v1608_v19, 0.0  ;;  %v1614_v10 = vmul.f32 %v2980_v13, %v2980_v13 }
 0x252   : > { %v1912_v15 = vpop.f32.mrf.mxu0  ;;  %v1990_v5 = vpop.f32.mrf.mxu1  ;;  %v1660_v46 = vadd.f32 %v1659_v26, %v1658_v45  ;;  %v1570_v16 = vsel %vm724_vm6, %v2980_v13, 0.0 }
 0x253   : > { %1508 = vst.msk [vmem:[%s2835_s25 + $0xa8] sm:$0xff] %vm724_vm6, %v1444_v33  ;;  %v1609_v21 = vmul.f32 %v1444_v33, %v1444_v33  ;;  %1511 = vst.msk [vmem:[%s2835_s25 + $0xc0] sm:$0xff] %vm724_vm6, %v1457_v28  ;;  %v1913_v24 = vadd.f32 %v1912_v15, %v1911_v12  ;;  %v1468_v47 = vadd.f32 %v1990_v5, %v2818_v57  ;;  %v1560_v49 = vsel %vm724_vm6, %v1444_v33, 0.0 }
 0x254   : > { %v1914_v1 = vpop.f32.mrf.mxu0  ;;  %v1459_v43 = vpop.f32.mrf.mxu1  ;;  %v1561_v52 = vadd.f32 %v1560_v49, %v1559_v56  ;;  %v1612_v51 = vmul.f32 %v1457_v28, %v1457_v28  ;;  %v1566_v30 = vsel %vm724_vm6, %v1457_v28, 0.0  ;;  %v1671_v35 = vsel %vm724_vm6, %v1614_v10, 0.0 }
 0x255   : > { %v1460_v17 = vadd.f32 %v2812_v41, %v1459_v43  ;;  %v1449_v29 = vadd.f32 %v1985_v8, %v1913_v24  ;;  %1514 = vst.msk [vmem:[%s2835_s25 + $0xd8] sm:$0xff] %vm724_vm6, %v1468_v47  ;;  %v1661_v22 = vsel %vm724_vm6, %v1609_v21, 0.0  ;;  %v1615_v2 = vmul.f32 %v1468_v47, %v1468_v47 }
 0x256   : > { %v1915_v40 = vpop.f32.mrf.mxu0  ;;  %v1993_v37 = vpop.f32.mrf.mxu1  ;;  %v1662_v44 = vadd.f32 %v1661_v22, %v1660_v46  ;;  %v1572_v12 = vsel %vm724_vm6, %v1468_v47, 0.0 }
 0x257   : > { %1512 = vst.msk [vmem:[%s2835_s25 + $0xc8] sm:$0xff] %vm724_vm6, %v1460_v17  ;;  %v1916_v57 = vadd.f32 %v1915_v40, %v1914_v1  ;;  %v1481_v6 = vadd.f32 %v1993_v37, %v2826_v60  ;;  %1509 = vst.msk [vmem:[%s2835_s25 + $0xb0] sm:$0xff] %vm724_vm6, %v1449_v29  ;;  %v1562_v41 = vsel %vm724_vm6, %v1449_v29, 0.0  ;;  %v1610_v61 = vmul.f32 %v1449_v29, %v1449_v29 }
 0x258   : > { %v1472_v8 = vpop.f32.mrf.mxu1  ;;  %v1563_v38 = vadd.f32 %v1562_v41, %v1561_v52  ;;  %v1613_v53 = vmul.f32 %v1460_v17, %v1460_v17  ;;  %v1568_v20 = vsel %vm724_vm6, %v1460_v17, 0.0  ;;  %v1673_v33 = vsel %vm724_vm6, %v1615_v2, 0.0 }
 0x259   : > { %v1452_v23 = vadd.f32 %v1986_v48, %v1916_v57  ;;  %1517 = vst.msk [vmem:[%s2835_s25 + $0xf0] sm:$0xff] %vm724_vm6, %v1481_v6  ;;  %v1663_v31 = vsel %vm724_vm6, %v1610_v61, 0.0  ;;  %v1473_v25 = vadd.f32 %v2820_v27, %v1472_v8  ;;  %v1618_v13 = vmul.f32 %v1481_v6, %v1481_v6 }
 0x25a   : > { %v1994_v60 = vpop.f32.mrf.mxu1  ;;  %v1664_v48 = vadd.f32 %v1663_v31, %v1662_v44  ;;  %v1669_v59 = vsel %vm724_vm6, %v1613_v53, 0.0  ;;  %v1578_v24 = vsel %vm724_vm6, %v1481_v6, 0.0 }
 0x25b   : > { %1510 = vst.msk [vmem:[%s2835_s25 + $0xb8] sm:$0xff] %vm724_vm6, %v1452_v23  ;;  %v1564_v42 = vsel %vm724_vm6, %v1452_v23, 0.0  ;;  %v1611_v58 = vmul.f32 %v1452_v23, %v1452_v23  ;;  %v1484_v55 = vadd.f32 %v1994_v60, %v2828_v63  ;;  %1515 = vst.msk [vmem:[%s2835_s25 + $0xe0] sm:$0xff] %vm724_vm6, %v1473_v25  ;;  %v1667_v63 = vsel %vm724_vm6, %v1612_v51, 0.0 }
 0x25c   : > { %v1565_v11 = vadd.f32 %v1564_v42, %v1563_v38  ;;  %v1475_v54 = vpop.f32.mrf.mxu1  ;;  %v1616_v32 = vmul.f32 %v1473_v25, %v1473_v25  ;;  %v1574_v28 = vsel %vm724_vm6, %v1473_v25, 0.0  ;;  %v1679_v49 = vsel %vm724_vm6, %v1618_v13, 0.0 }
 0x25d   : > { %v1665_v27 = vsel %vm724_vm6, %v1611_v58, 0.0  ;;  %1518 = vst.msk [vmem:[%s2835_s25 + $0xf8] sm:$0xff] %vm724_vm6, %v1484_v55  ;;  %v1476_v18 = vadd.f32 %v2822_v14, %v1475_v54  ;;  %v1619_v47 = vmul.f32 %v1484_v55, %v1484_v55  ;;  %v1580_v17 = vsel %vm724_vm6, %v1484_v55, 0.0 }
 0x25e   : > { %v1567_v9 = vadd.f32 %v1566_v30, %v1565_v11  ;;  %v1666_v3 = vadd.f32 %v1665_v27, %v1664_v48  ;;  %v1675_v34 = vsel %vm724_vm6, %v1616_v32, 0.0 }
 0x25f   : > { %1516 = vst.msk [vmem:[%s2835_s25 + $0xe8] sm:$0xff] %vm724_vm6, %v1476_v18  ;;  %v1617_v0 = vmul.f32 %v1476_v18, %v1476_v18  ;;  %v1576_v62 = vsel %vm724_vm6, %v1476_v18, 0.0  ;;  %v1681_v29 = vsel %vm724_vm6, %v1619_v47, 0.0 }
 0x260   : > { %v1668_v4 = vadd.f32 %v1667_v63, %v1666_v3  ;;  %v1569_v36 = vadd.f32 %v1568_v20, %v1567_v9 }
 0x261   : > { %v1677_v1 = vsel %vm724_vm6, %v1617_v0, 0.0 }
 0x262   : > { %v1571_v14 = vadd.f32 %v1570_v16, %v1569_v36  ;;  %v1670_v7 = vadd.f32 %v1669_v59, %v1668_v4 }
 0x264   : > { %v1573_v50 = vadd.f32 %v1572_v12, %v1571_v14  ;;  %v1672_v19 = vadd.f32 %v1671_v35, %v1670_v7 }
 0x266   : > { %v1575_v15 = vadd.f32 %v1574_v28, %v1573_v50  ;;  %v1674_v5 = vadd.f32 %v1673_v33, %v1672_v19 }
 0x268   : > { %v1676_v21 = vadd.f32 %v1675_v34, %v1674_v5  ;;  %v1577_v39 = vadd.f32 %v1576_v62, %v1575_v15 }
 0x26a   : > { %v1579_v43 = vadd.f32 %v1578_v24, %v1577_v39  ;;  %v1678_v26 = vadd.f32 %v1677_v1, %v1676_v21 }
 0x26c   : > { %v1581_v45 = vadd.f32 %v1580_v17, %v1579_v43  ;;  %v1680_v56 = vadd.f32 %v1679_v49, %v1678_v26 }
 0x26e   : > { %v1582_v40 = vrot.slane %v1581_v45, 4  ;;  %v1682_v37 = vadd.f32 %v1681_v29, %v1680_v56 }
 0x270   : > { %v1583_v22 = vadd.f32 %v1582_v40, %v1581_v45  ;;  %v1683_v57 = vrot.slane %v1682_v37, 4 }
 0x272   : > { %v1584_v46 = vrot.slane %v1583_v22, 2  ;;  %v1684_v6 = vadd.f32 %v1683_v57, %v1682_v37 }
 0x274   : > { %v1585_v52 = vadd.f32 %v1584_v46, %v1583_v22  ;;  %v1685_v41 = vrot.slane %v1684_v6, 2 }
 0x276   : > { %v1586_v61 = vrot.slane %v1585_v52, 1  ;;  %v1686_v8 = vadd.f32 %v1685_v41, %v1684_v6 }
 0x278   : > { %v1687_v23 = vrot.slane %v1686_v8, 1  ;;  %v1587_v44 = vadd.f32 %v1586_v61, %v1585_v52 }
 0x27a   : > { %v1688_v38 = vadd.f32 %v1687_v23, %v1686_v8 }
 0x27c   : > { %v1690_v31 = vsel %vm531_vm3, %v1587_v44, %v1688_v38 }
 0x27d   : > { %1692 = vst.msk [vmem:[%s235_s30] sm:$0x3] %vm1691_vm9, %v1690_v31 }
 0x27e PF: > { %s16_s18 = sadd.s32 1, %s2047_s18  }
 0x27f   : > { %p13_p4 = scmp.ge.s32.totalorder %s16_s18, 4  }
 0x281   :  { %15 = sbr.rel (!%p13_p4) target bundleno = 1 (0x1), region = 78 }

</bundles_post_ra>
